<compile_context>
chip_gen: v7x
topology: tpu7x:2x2x1
jax: 0.10.0
libtpu: 0.0.40
codegen_flags: <defaults>
</compile_context>

<pallas_src>
import functools

import jax
import jax.numpy as jnp
from jax import lax
from jax.experimental import pallas as pl
from jax.experimental.pallas import tpu as pltpu

NEG_SLOPE = 0.1   # LeakyReLU negative slope used by the module
BN_EPS = 1e-5     # PyTorch BatchNorm2d default eps


def _leaky_relu(v):
    return jnp.where(v > 0, v, NEG_SLOPE * v)


def _conv3x3_im2col_dot(phases, w_ref, stride, wo, mask_l, mask_r):
    """3x3 conv (stride `stride`, padding 1) as one big-K MXU matmul.

    phases: list of stride*stride bf16 arrays, each (bblk, n, c) with
            phase[p][b, oy*wo + ox, c] = input pixel (oy*stride + py,
            ox*stride + px), p = py*stride + px.  For stride 1 this is just
            [the full image].
    w_ref:  (9*c, cout) bf16 VMEM-resident weights, rows in tap-major order.
    mask_l/mask_r: (n, 1) bf16, zero at ox == 0 / ox == wo-1.
    Returns (bblk, n, cout) f32.
    """
    bblk, n, c = phases[0].shape
    zext = jnp.zeros((bblk, wo + 1, c), phases[0].dtype)
    # Per-phase zero extension along the flattened row axis handles all row
    # (H-boundary) padding; any flattened "wrap" case is column-masked below.
    padded = [jnp.concatenate([zext, ph, zext], axis=1) for ph in phases]
    taps = []
    for dy in range(3):
        py, qy = (dy - 1) % stride, (dy - 1) // stride
        for dx in range(3):
            px, qx = (dx - 1) % stride, (dx - 1) // stride
            start = (wo + 1) + qy * wo + qx
            tap = padded[py * stride + px][:, start:start + n, :]
            if qx == -1:          # reads column ox-1 -> invalid at ox == 0
                tap = tap * mask_l
            elif qx == 1:         # reads column ox+1 -> invalid at ox == wo-1
                tap = tap * mask_r
            taps.append(tap)
    lhs = jnp.concatenate(taps, axis=-1).reshape(bblk * n, 9 * c)  # (rows, 9c)
    out = jnp.dot(lhs, w_ref[...], preferred_element_type=jnp.float32)
    return out.reshape(bblk, n, w_ref.shape[-1])


def _make_kernel(stride, wo, n_rows, equal_in_out, act_before_res):
    """Builds the fused BasicBlock kernel body (config closed over, static)."""
    P = stride * stride

    def body(x_ref, mask_ref, s1_ref, b1_ref, w1_ref, s2_ref, b2_ref, w2_ref,
             ws_ref, out_ref):
        mask_l = mask_ref[0]                      # (n, 1) bf16
        mask_r = mask_ref[1]
        x = x_ref[...]                            # (bblk, P, n, Cin) bf16
        bblk = x.shape[0]

        # ---- BN1 + LeakyReLU, following the module's exact branch logic ----
        if equal_in_out or act_before_res:
            a1 = _leaky_relu(x.astype(jnp.float32) * s1_ref[...] + b1_ref[...])
            a1 = a1.astype(jnp.bfloat16)

        if equal_in_out:
            conv1_src = a1
            resid = x[:, 0].astype(jnp.float32)   # raw-x residual (P == 1)
        elif act_before_res:
            conv1_src = a1
            short_in = a1[:, 0]                   # activated x, phase (0, 0)
        else:
            # Module quirk: BN1/ReLU1 output is discarded in this branch; both
            # conv1 and the shortcut consume the raw input.
            conv1_src = x
            short_in = x[:, 0]

        # ---- conv1: 3x3 stride s, computed directly at the output stride ----
        phases = [conv1_src[:, p] for p in range(P)]
        mid = _conv3x3_im2col_dot(phases, w1_ref, stride, wo, mask_l, mask_r)

        # ---- BN2 + LeakyReLU ------------------------------------------------
        a2 = _leaky_relu(mid * s2_ref[...] + b2_ref[...]).astype(jnp.bfloat16)
        # TODO(synk): training-mode dropout (drop_rate > 0) not implemented
        # (would use pltpu.prng_seed / pltpu.prng_random_bits); eval-mode
        # dropout is the identity, matching drop_rate=0.

        # ---- conv2: 3x3 stride 1 ---------------------------------------------
        out = _conv3x3_im2col_dot([a2], w2_ref, 1, wo, mask_l, mask_r)

        # ---- residual / shortcut ----------------------------------------------
        if equal_in_out:
            res = resid
        else:
            cin = short_in.shape[-1]
            res = jnp.dot(short_in.reshape(bblk * n_rows, cin), ws_ref[...],
                          preferred_element_type=jnp.float32
                          ).reshape(bblk, n_rows, ws_ref.shape[-1])

        out_ref[...] = (res + out).astype(out_ref.dtype)

    if equal_in_out:
        def kernel(x_ref, m, s1, b1, w1, s2, b2, w2, out_ref):
            body(x_ref, m, s1, b1, w1, s2, b2, w2, None, out_ref)
    else:
        def kernel(x_ref, m, s1, b1, w1, s2, b2, w2, ws, out_ref):
            body(x_ref, m, s1, b1, w1, s2, b2, w2, ws, out_ref)
    return kernel


def basic_block_forward(x, params, *, stride, activate_before_residual=False,
                        drop_rate=0.0, batch_block=8):
    """BasicBlock forward. x: (B, H, W, Cin) f32 NHWC.

    params: bn1/bn2 = {gamma, beta, mean, var}; conv1_w (Cout,Cin,3,3);
            conv2_w (Cout,Cout,3,3); shortcut_w (Cout,Cin,1,1) iff Cin != Cout.
    """
    del drop_rate  # eval-mode dropout is the identity (see TODO in the kernel)
    B, H, W, Cin = x.shape
    Cout = params["conv1_w"].shape[0]
    equal_in_out = (Cin == Cout)
    if equal_in_out:
        assert stride == 1, "equal-in/out BasicBlock uses stride 1"
    assert H % stride == 0 and W % stride == 0, "H, W must be divisible by stride"
    Ho, Wo = H // stride, W // stride
    N = Ho * Wo
    P = stride * stride

    # Batch blocking: amortize per-grid-step overhead; keep grid >= 2 when
    # B >= 2 so v7x megacore still has work for both TensorCores.
    cap = 1 if B < 2 else min(batch_block, max(1, B // 2))
    bblk = max(d for d in range(1, cap + 1) if B % d == 0)
    grid = (B // bblk,)

    def fold_bn(p):
        scale = p["gamma"] / jnp.sqrt(p["var"] + BN_EPS)
        shift = p["beta"] - p["mean"] * scale
        return (scale.reshape(1, -1).astype(jnp.float32),
                shift.reshape(1, -1).astype(jnp.float32))

    s1, b1 = fold_bn(params["bn1"])
    s2, b2 = fold_bn(params["bn2"])

    def conv_taps(w_oihw):  # OIHW -> (9*Cin, Cout) bf16 im2col weights
        co, ci, kh, kw = w_oihw.shape
        return (jnp.transpose(w_oihw, (2, 3, 1, 0))
                .reshape(kh * kw * ci, co).astype(jnp.bfloat16))

    w1 = conv_taps(params["conv1_w"])
    w2 = conv_taps(params["conv2_w"])

    # Phase-major input layout (pure layout plumbing, done by XLA):
    # x_ph[b, py*s+px, oy*Wo+ox, c] = x[b, oy*s+py, ox*s+px, c].
    x_ph = (x.astype(jnp.bfloat16)
            .reshape(B, Ho, stride, Wo, stride, Cin)
            .transpose(0, 2, 4, 1, 3, 5)
            .reshape(B, P, N, Cin))

    # Hoisted column-boundary masks (conv1 phases and conv2 both have width Wo).
    col = jnp.arange(N, dtype=jnp.int32) % Wo
    masks = (jnp.stack([col != 0, col != Wo - 1])
             .astype(jnp.bfloat16).reshape(2, N, 1))

    inputs = [x_ph, masks, s1, b1, w1, s2, b2, w2]
    in_specs = [
        pl.BlockSpec((bblk, P, N, Cin), lambda b: (b, 0, 0, 0)),  # per-step tile
        pl.BlockSpec((2, N, 1), lambda b: (0, 0, 0)),             # VMEM-resident
        pl.BlockSpec((1, Cin), lambda b: (0, 0)),
        pl.BlockSpec((1, Cin), lambda b: (0, 0)),
        pl.BlockSpec((9 * Cin, Cout), lambda b: (0, 0)),
        pl.BlockSpec((1, Cout), lambda b: (0, 0)),
        pl.BlockSpec((1, Cout), lambda b: (0, 0)),
        pl.BlockSpec((9 * Cout, Cout), lambda b: (0, 0)),
    ]
    if not equal_in_out:
        ws = jnp.transpose(params["shortcut_w"][:, :, 0, 0], (1, 0))  # (Cin,Cout)
        inputs.append(ws.astype(jnp.bfloat16))
        in_specs.append(pl.BlockSpec((Cin, Cout), lambda b: (0, 0)))

    kernel = _make_kernel(stride, Wo, N, equal_in_out, activate_before_residual)

    flops = B * N * (2 * 9 * Cin * Cout + 2 * 9 * Cout * Cout)
    if not equal_in_out:
        flops += B * N * 2 * Cin * Cout
    bytes_accessed = (2 * x_ph.size + 4 * B * N * Cout
                      + 2 * (w1.size + w2.size + masks.size)
                      + 4 * (s1.size + b1.size + s2.size + b2.size))
    if not equal_in_out:
        bytes_accessed += 2 * Cin * Cout

    out_flat = pl.pallas_call(
        kernel,
        out_shape=jax.ShapeDtypeStruct((B, N, Cout), jnp.float32),
        grid=grid,
        in_specs=in_specs,
        out_specs=pl.BlockSpec((bblk, N, Cout), lambda b: (b, 0, 0)),
        compiler_params=pltpu.CompilerParams(
            dimension_semantics=("parallel",),          # megacore on v7x
            vmem_limit_bytes=32 * 1024 * 1024),
        cost_estimate=pl.CostEstimate(flops=int(flops), transcendentals=0,
                                      bytes_accessed=int(bytes_accessed)),
    )(*inputs)
    return out_flat.reshape(B, Ho, Wo, Cout)


def basic_block_reference(x, params, *, stride, activate_before_residual=False):
    """Pure-JAX f32 reference for the BasicBlock forward pass."""
    Cin = x.shape[-1]
    Cout = params["conv1_w"].shape[0]
    equal_in_out = (Cin == Cout)

    def bn(v, p):
        scale = p["gamma"] / jnp.sqrt(p["var"] + BN_EPS)
        return v * scale + (p["beta"] - p["mean"] * scale)

    def conv(v, w_oihw, s, pad):
        w_hwio = jnp.transpose(w_oihw, (2, 3, 1, 0))
        return lax.conv_general_dilated(
            v, w_hwio, window_strides=(s, s),
            padding=[(pad, pad), (pad, pad)],
            dimension_numbers=("NHWC", "HWIO", "NHWC"))

    if (not equal_in_out) and activate_before_residual:
        xa = _leaky_relu(bn(x, params["bn1"]))
        conv1_in, resid = xa, xa
    elif equal_in_out:
        conv1_in, resid = _leaky_relu(bn(x, params["bn1"])), x
    else:
        conv1_in, resid = x, x

    out = _leaky_relu(bn(conv(conv1_in, params["conv1_w"], stride, 1),
                         params["bn2"]))
    out = conv(out, params["conv2_w"], 1, 1)
    short = resid if equal_in_out else conv(resid, params["shortcut_w"],
                                            stride, 0)
    return short + out


if __name__ == "__main__":
    key = jax.random.PRNGKey(0)

    def make_params(k, cin, cout):
        ks = jax.random.split(k, 11)

        def bn_p(k0, k1, k2, k3, c):
            return {"gamma": 1.0 + 0.1 * jax.random.normal(k0, (c,), jnp.float32),
                    "beta": 0.1 * jax.random.normal(k1, (c,), jnp.float32),
                    "mean": 0.1 * jax.random.normal(k2, (c,), jnp.float32),
                    "var": jax.random.uniform(k3, (c,), jnp.float32, 0.5, 1.5)}

        p = {"bn1": bn_p(ks[0], ks[1], ks[2], ks[3], cin),
             "bn2": bn_p(ks[4], ks[5], ks[6], ks[7], cout),
             "conv1_w": jax.random.normal(ks[8], (cout, cin, 3, 3), jnp.float32)
                        * (2.0 / (9.0 * cout)) ** 0.5,
             "conv2_w": jax.random.normal(ks[9], (cout, cout, 3, 3), jnp.float32)
                        * (2.0 / (9.0 * cout)) ** 0.5}
        if cin != cout:
            p["shortcut_w"] = (jax.random.normal(ks[10], (cout, cin, 1, 1),
                                                 jnp.float32)
                               * (1.0 / cin) ** 0.5)
        return p

    B, H, W = 2, 16, 16
    configs = [
        # (Cin, Cout, stride, activate_before_residual)
        (32, 32, 1, False),   # equal-in/out residual block
        (16, 32, 1, False),   # channel-change block, stride 1 (WRN group 1)
        (16, 32, 2, True),    # downsampling block, pre-activated residual
        (16, 32, 2, False),   # downsampling block, raw-x residual (module quirk)
    ]
    for cin, cout, stride, abr in configs:
        key, kx, kp = jax.random.split(key, 3)
        x = jax.random.normal(kx, (B, H, W, cin), jnp.float32)
        params = make_params(kp, cin, cout)

        fwd = jax.jit(functools.partial(basic_block_forward, stride=stride,
                                        activate_before_residual=abr))
        out = jax.block_until_ready(fwd(x, params))
        ref = basic_block_reference(x, params, stride=stride,
                                    activate_before_residual=abr)
        err = float(jnp.max(jnp.abs(out - ref)))
        scale = float(jnp.max(jnp.abs(ref)))
        # bf16 inputs / MXU operands with f32 accumulation -> bf16 tolerance.
        assert err <= 5e-2 * scale + 1e-2, (
            f"mismatch: cin={cin} cout={cout} stride={stride} abr={abr} "
            f"err={err} scale={scale}")

    print("KERNEL_OK")
</pallas_src>

<mosaic_0001>
module attributes {stable_mosaic.version = 11 : i64} {
  func.func @kernel(%arg0: i32, %arg1: memref<1x1x256x32xbf16, #tpu.memory_space<vmem>>, %arg2: memref<2x256x1xbf16, #tpu.memory_space<vmem>>, %arg3: memref<1x32xf32, #tpu.memory_space<vmem>>, %arg4: memref<1x32xf32, #tpu.memory_space<vmem>>, %arg5: memref<288x32xbf16, #tpu.memory_space<vmem>>, %arg6: memref<1x32xf32, #tpu.memory_space<vmem>>, %arg7: memref<1x32xf32, #tpu.memory_space<vmem>>, %arg8: memref<288x32xbf16, #tpu.memory_space<vmem>>, %arg9: memref<1x256x32xf32, #tpu.memory_space<vmem>>) attributes {dimension_semantics = [#tpu.dimension_semantics<parallel>], iteration_bounds = array<i64: 2>, scalar_prefetch = 0 : i64, scratch_operands = 0 : i64, tpu.core_type = #tpu.core_type<tc>, window_params = [{transform_indices = @transform_0, window_bounds = array<i64: 1, 1, 256, 32>}, {pipeline_mode = #tpu.pipeline_mode<synchronous>, transform_indices = @transform_1, window_bounds = array<i64: 2, 256, 1>}, {pipeline_mode = #tpu.pipeline_mode<synchronous>, transform_indices = @transform_2, window_bounds = array<i64: 1, 32>}, {pipeline_mode = #tpu.pipeline_mode<synchronous>, transform_indices = @transform_3, window_bounds = array<i64: 1, 32>}, {pipeline_mode = #tpu.pipeline_mode<synchronous>, transform_indices = @transform_4, window_bounds = array<i64: 288, 32>}, {pipeline_mode = #tpu.pipeline_mode<synchronous>, transform_indices = @transform_5, window_bounds = array<i64: 1, 32>}, {pipeline_mode = #tpu.pipeline_mode<synchronous>, transform_indices = @transform_6, window_bounds = array<i64: 1, 32>}, {pipeline_mode = #tpu.pipeline_mode<synchronous>, transform_indices = @transform_7, window_bounds = array<i64: 288, 32>}, {transform_indices = @transform_8, window_bounds = array<i64: 1, 256, 32>}]} {
    %c0 = arith.constant 0 : index
    %c0_0 = arith.constant 0 : index
    %c0_1 = arith.constant 0 : index
    %0 = vector.load %arg2[%c0, %c0_0, %c0_1] : memref<2x256x1xbf16, #tpu.memory_space<vmem>>, vector<1x256x1xbf16>
    %1 = vector.shape_cast %0 : vector<1x256x1xbf16> to vector<256x1xbf16>
    %c1 = arith.constant 1 : index
    %c0_2 = arith.constant 0 : index
    %c0_3 = arith.constant 0 : index
    %2 = vector.load %arg2[%c1, %c0_2, %c0_3] : memref<2x256x1xbf16, #tpu.memory_space<vmem>>, vector<1x256x1xbf16>
    %3 = vector.shape_cast %2 : vector<1x256x1xbf16> to vector<256x1xbf16>
    %c0_4 = arith.constant 0 : index
    %c0_5 = arith.constant 0 : index
    %c0_6 = arith.constant 0 : index
    %c0_7 = arith.constant 0 : index
    %4 = vector.load %arg1[%c0_4, %c0_5, %c0_6, %c0_7] : memref<1x1x256x32xbf16, #tpu.memory_space<vmem>>, vector<1x1x256x32xbf16>
    %5 = arith.extf %4 : vector<1x1x256x32xbf16> to vector<1x1x256x32xf32>
    %c0_8 = arith.constant 0 : index
    %c0_9 = arith.constant 0 : index
    %6 = vector.load %arg3[%c0_8, %c0_9] : memref<1x32xf32, #tpu.memory_space<vmem>>, vector<1x32xf32>
    %7 = vector.shape_cast %6 : vector<1x32xf32> to vector<1x1x1x32xf32>
    %8 = vector.broadcast %7 : vector<1x1x1x32xf32> to vector<1x1x256x32xf32>
    %9 = arith.mulf %5, %8 : vector<1x1x256x32xf32>
    %c0_10 = arith.constant 0 : index
    %c0_11 = arith.constant 0 : index
    %10 = vector.load %arg4[%c0_10, %c0_11] : memref<1x32xf32, #tpu.memory_space<vmem>>, vector<1x32xf32>
    %11 = vector.shape_cast %10 : vector<1x32xf32> to vector<1x1x1x32xf32>
    %12 = vector.broadcast %11 : vector<1x1x1x32xf32> to vector<1x1x256x32xf32>
    %13 = arith.addf %9, %12 : vector<1x1x256x32xf32>
    %cst = arith.constant 0.000000e+00 : f32
    %14 = vector.broadcast %cst : f32 to vector<1x1x256x32xf32>
    %15 = arith.cmpf ogt, %13, %14 : vector<1x1x256x32xf32>
    %cst_12 = arith.constant 1.000000e-01 : f32
    %16 = vector.broadcast %cst_12 : f32 to vector<1x1x256x32xf32>
    %17 = arith.mulf %16, %13 : vector<1x1x256x32xf32>
    %18 = arith.select %15, %13, %17 : vector<1x1x256x32xi1>, vector<1x1x256x32xf32>
    %19 = arith.truncf %18 : vector<1x1x256x32xf32> to vector<1x1x256x32xbf16>
    %20 = vector.shape_cast %4 : vector<1x1x256x32xbf16> to vector<1x256x32xbf16>
    %21 = arith.extf %20 : vector<1x256x32xbf16> to vector<1x256x32xf32>
    %22 = vector.shape_cast %19 : vector<1x1x256x32xbf16> to vector<1x256x32xbf16>
    %cst_13 = arith.constant 0.000000e+00 : bf16
    %23 = vector.broadcast %cst_13 : bf16 to vector<1x17x32xbf16>
    %24 = tpu.concatenate %23, %22, %23 in 1 : vector<1x17x32xbf16>, vector<1x256x32xbf16>, vector<1x17x32xbf16> -> vector<1x290x32xbf16>
    %25 = vector.extract_strided_slice %24 {offsets = [0, 0, 0], sizes = [1, 256, 32], strides = [1, 1, 1]} : vector<1x290x32xbf16> to vector<1x256x32xbf16>
    %26 = vector.shape_cast %1 : vector<256x1xbf16> to vector<1x256x1xbf16>
    %27 = vector.broadcast %26 : vector<1x256x1xbf16> to vector<1x256x32xbf16>
    %28 = arith.mulf %25, %27 : vector<1x256x32xbf16>
    %29 = vector.extract_strided_slice %24 {offsets = [0, 1, 0], sizes = [1, 256, 32], strides = [1, 1, 1]} : vector<1x290x32xbf16> to vector<1x256x32xbf16>
    %30 = vector.extract_strided_slice %24 {offsets = [0, 2, 0], sizes = [1, 256, 32], strides = [1, 1, 1]} : vector<1x290x32xbf16> to vector<1x256x32xbf16>
    %31 = vector.shape_cast %3 : vector<256x1xbf16> to vector<1x256x1xbf16>
    %32 = vector.broadcast %31 : vector<1x256x1xbf16> to vector<1x256x32xbf16>
    %33 = arith.mulf %30, %32 : vector<1x256x32xbf16>
    %34 = vector.extract_strided_slice %24 {offsets = [0, 16, 0], sizes = [1, 256, 32], strides = [1, 1, 1]} : vector<1x290x32xbf16> to vector<1x256x32xbf16>
    %35 = vector.shape_cast %1 : vector<256x1xbf16> to vector<1x256x1xbf16>
    %36 = vector.broadcast %35 : vector<1x256x1xbf16> to vector<1x256x32xbf16>
    %37 = arith.mulf %34, %36 : vector<1x256x32xbf16>
    %38 = vector.extract_strided_slice %24 {offsets = [0, 17, 0], sizes = [1, 256, 32], strides = [1, 1, 1]} : vector<1x290x32xbf16> to vector<1x256x32xbf16>
    %39 = vector.extract_strided_slice %24 {offsets = [0, 18, 0], sizes = [1, 256, 32], strides = [1, 1, 1]} : vector<1x290x32xbf16> to vector<1x256x32xbf16>
    %40 = vector.shape_cast %3 : vector<256x1xbf16> to vector<1x256x1xbf16>
    %41 = vector.broadcast %40 : vector<1x256x1xbf16> to vector<1x256x32xbf16>
    %42 = arith.mulf %39, %41 : vector<1x256x32xbf16>
    %43 = vector.extract_strided_slice %24 {offsets = [0, 32, 0], sizes = [1, 256, 32], strides = [1, 1, 1]} : vector<1x290x32xbf16> to vector<1x256x32xbf16>
    %44 = vector.shape_cast %1 : vector<256x1xbf16> to vector<1x256x1xbf16>
    %45 = vector.broadcast %44 : vector<1x256x1xbf16> to vector<1x256x32xbf16>
    %46 = arith.mulf %43, %45 : vector<1x256x32xbf16>
    %47 = vector.extract_strided_slice %24 {offsets = [0, 33, 0], sizes = [1, 256, 32], strides = [1, 1, 1]} : vector<1x290x32xbf16> to vector<1x256x32xbf16>
    %48 = vector.extract_strided_slice %24 {offsets = [0, 34, 0], sizes = [1, 256, 32], strides = [1, 1, 1]} : vector<1x290x32xbf16> to vector<1x256x32xbf16>
    %49 = vector.shape_cast %3 : vector<256x1xbf16> to vector<1x256x1xbf16>
    %50 = vector.broadcast %49 : vector<1x256x1xbf16> to vector<1x256x32xbf16>
    %51 = arith.mulf %48, %50 : vector<1x256x32xbf16>
    %52 = tpu.concatenate %28, %29, %33, %37, %38, %42, %46, %47, %51 in 2 : vector<1x256x32xbf16>, vector<1x256x32xbf16>, vector<1x256x32xbf16>, vector<1x256x32xbf16>, vector<1x256x32xbf16>, vector<1x256x32xbf16>, vector<1x256x32xbf16>, vector<1x256x32xbf16>, vector<1x256x32xbf16> -> vector<1x256x288xbf16>
    %53 = vector.shape_cast %52 : vector<1x256x288xbf16> to vector<256x288xbf16>
    %c0_14 = arith.constant 0 : index
    %c0_15 = arith.constant 0 : index
    %54 = vector.load %arg5[%c0_14, %c0_15] : memref<288x32xbf16, #tpu.memory_space<vmem>>, vector<288x32xbf16>
    %cst_16 = arith.constant dense<0.000000e+00> : vector<256x32xf32>
    %55 = tpu.matmul %53, %54, %cst_16 {dimension_numbers = #tpu.dot_dimension_numbers<[1], [0], [0], [1], [0, 0, 1, 1], [], []>} : vector<256x288xbf16>, vector<288x32xbf16>, vector<256x32xf32> -> vector<256x32xf32>
    %56 = vector.shape_cast %55 : vector<256x32xf32> to vector<1x256x32xf32>
    %c0_17 = arith.constant 0 : index
    %c0_18 = arith.constant 0 : index
    %57 = vector.load %arg6[%c0_17, %c0_18] : memref<1x32xf32, #tpu.memory_space<vmem>>, vector<1x32xf32>
    %58 = vector.shape_cast %57 : vector<1x32xf32> to vector<1x1x32xf32>
    %59 = vector.broadcast %58 : vector<1x1x32xf32> to vector<1x256x32xf32>
    %60 = arith.mulf %56, %59 : vector<1x256x32xf32>
    %c0_19 = arith.constant 0 : index
    %c0_20 = arith.constant 0 : index
    %61 = vector.load %arg7[%c0_19, %c0_20] : memref<1x32xf32, #tpu.memory_space<vmem>>, vector<1x32xf32>
    %62 = vector.shape_cast %61 : vector<1x32xf32> to vector<1x1x32xf32>
    %63 = vector.broadcast %62 : vector<1x1x32xf32> to vector<1x256x32xf32>
    %64 = arith.addf %60, %63 : vector<1x256x32xf32>
    %cst_21 = arith.constant 0.000000e+00 : f32
    %65 = vector.broadcast %cst_21 : f32 to vector<1x256x32xf32>
    %66 = arith.cmpf ogt, %64, %65 : vector<1x256x32xf32>
    %cst_22 = arith.constant 1.000000e-01 : f32
    %67 = vector.broadcast %cst_22 : f32 to vector<1x256x32xf32>
    %68 = arith.mulf %67, %64 : vector<1x256x32xf32>
    %69 = arith.select %66, %64, %68 : vector<1x256x32xi1>, vector<1x256x32xf32>
    %70 = arith.truncf %69 : vector<1x256x32xf32> to vector<1x256x32xbf16>
    %cst_23 = arith.constant 0.000000e+00 : bf16
    %71 = vector.broadcast %cst_23 : bf16 to vector<1x17x32xbf16>
    %72 = tpu.concatenate %71, %70, %71 in 1 : vector<1x17x32xbf16>, vector<1x256x32xbf16>, vector<1x17x32xbf16> -> vector<1x290x32xbf16>
    %73 = vector.extract_strided_slice %72 {offsets = [0, 0, 0], sizes = [1, 256, 32], strides = [1, 1, 1]} : vector<1x290x32xbf16> to vector<1x256x32xbf16>
    %74 = vector.shape_cast %1 : vector<256x1xbf16> to vector<1x256x1xbf16>
    %75 = vector.broadcast %74 : vector<1x256x1xbf16> to vector<1x256x32xbf16>
    %76 = arith.mulf %73, %75 : vector<1x256x32xbf16>
    %77 = vector.extract_strided_slice %72 {offsets = [0, 1, 0], sizes = [1, 256, 32], strides = [1, 1, 1]} : vector<1x290x32xbf16> to vector<1x256x32xbf16>
    %78 = vector.extract_strided_slice %72 {offsets = [0, 2, 0], sizes = [1, 256, 32], strides = [1, 1, 1]} : vector<1x290x32xbf16> to vector<1x256x32xbf16>
    %79 = vector.shape_cast %3 : vector<256x1xbf16> to vector<1x256x1xbf16>
    %80 = vector.broadcast %79 : vector<1x256x1xbf16> to vector<1x256x32xbf16>
    %81 = arith.mulf %78, %80 : vector<1x256x32xbf16>
    %82 = vector.extract_strided_slice %72 {offsets = [0, 16, 0], sizes = [1, 256, 32], strides = [1, 1, 1]} : vector<1x290x32xbf16> to vector<1x256x32xbf16>
    %83 = vector.shape_cast %1 : vector<256x1xbf16> to vector<1x256x1xbf16>
    %84 = vector.broadcast %83 : vector<1x256x1xbf16> to vector<1x256x32xbf16>
    %85 = arith.mulf %82, %84 : vector<1x256x32xbf16>
    %86 = vector.extract_strided_slice %72 {offsets = [0, 17, 0], sizes = [1, 256, 32], strides = [1, 1, 1]} : vector<1x290x32xbf16> to vector<1x256x32xbf16>
    %87 = vector.extract_strided_slice %72 {offsets = [0, 18, 0], sizes = [1, 256, 32], strides = [1, 1, 1]} : vector<1x290x32xbf16> to vector<1x256x32xbf16>
    %88 = vector.shape_cast %3 : vector<256x1xbf16> to vector<1x256x1xbf16>
    %89 = vector.broadcast %88 : vector<1x256x1xbf16> to vector<1x256x32xbf16>
    %90 = arith.mulf %87, %89 : vector<1x256x32xbf16>
    %91 = vector.extract_strided_slice %72 {offsets = [0, 32, 0], sizes = [1, 256, 32], strides = [1, 1, 1]} : vector<1x290x32xbf16> to vector<1x256x32xbf16>
    %92 = vector.shape_cast %1 : vector<256x1xbf16> to vector<1x256x1xbf16>
    %93 = vector.broadcast %92 : vector<1x256x1xbf16> to vector<1x256x32xbf16>
    %94 = arith.mulf %91, %93 : vector<1x256x32xbf16>
    %95 = vector.extract_strided_slice %72 {offsets = [0, 33, 0], sizes = [1, 256, 32], strides = [1, 1, 1]} : vector<1x290x32xbf16> to vector<1x256x32xbf16>
    %96 = vector.extract_strided_slice %72 {offsets = [0, 34, 0], sizes = [1, 256, 32], strides = [1, 1, 1]} : vector<1x290x32xbf16> to vector<1x256x32xbf16>
    %97 = vector.shape_cast %3 : vector<256x1xbf16> to vector<1x256x1xbf16>
    %98 = vector.broadcast %97 : vector<1x256x1xbf16> to vector<1x256x32xbf16>
    %99 = arith.mulf %96, %98 : vector<1x256x32xbf16>
    %100 = tpu.concatenate %76, %77, %81, %85, %86, %90, %94, %95, %99 in 2 : vector<1x256x32xbf16>, vector<1x256x32xbf16>, vector<1x256x32xbf16>, vector<1x256x32xbf16>, vector<1x256x32xbf16>, vector<1x256x32xbf16>, vector<1x256x32xbf16>, vector<1x256x32xbf16>, vector<1x256x32xbf16> -> vector<1x256x288xbf16>
    %101 = vector.shape_cast %100 : vector<1x256x288xbf16> to vector<256x288xbf16>
    %c0_24 = arith.constant 0 : index
    %c0_25 = arith.constant 0 : index
    %102 = vector.load %arg8[%c0_24, %c0_25] : memref<288x32xbf16, #tpu.memory_space<vmem>>, vector<288x32xbf16>
    %cst_26 = arith.constant dense<0.000000e+00> : vector<256x32xf32>
    %103 = tpu.matmul %101, %102, %cst_26 {dimension_numbers = #tpu.dot_dimension_numbers<[1], [0], [0], [1], [0, 0, 1, 1], [], []>} : vector<256x288xbf16>, vector<288x32xbf16>, vector<256x32xf32> -> vector<256x32xf32>
    %104 = vector.shape_cast %103 : vector<256x32xf32> to vector<1x256x32xf32>
    %105 = arith.addf %21, %104 : vector<1x256x32xf32>
    %c0_27 = arith.constant 0 : index
    %c0_28 = arith.constant 0 : index
    %c0_29 = arith.constant 0 : index
    %106 = vector.load %arg9[%c0_27, %c0_28, %c0_29] : memref<1x256x32xf32, #tpu.memory_space<vmem>>, vector<1x256x32xf32>
    tpu.vector_store %arg9[%c0_27, %c0_28, %c0_29], %105 {strides = array<i32>} : memref<1x256x32xf32, #tpu.memory_space<vmem>>, vector<1x256x32xf32>,
    return
  }
  func.func @transform_0(%arg0: i32) -> (i32, i32, i32, i32) {
    %c0_i32 = arith.constant 0 : i32
    %c0_i32_0 = arith.constant 0 : i32
    %c0_i32_1 = arith.constant 0 : i32
    %c0_i32_2 = arith.constant 0 : i32
    return %arg0, %c0_i32, %c0_i32_0, %c0_i32_1 : i32, i32, i32, i32
  }
  func.func @transform_1(%arg0: i32) -> (i32, i32, i32) {
    %c0_i32 = arith.constant 0 : i32
    %c0_i32_0 = arith.constant 0 : i32
    %c0_i32_1 = arith.constant 0 : i32
    %c0_i32_2 = arith.constant 0 : i32
    return %c0_i32, %c0_i32_0, %c0_i32_1 : i32, i32, i32
  }
  func.func @transform_2(%arg0: i32) -> (i32, i32) {
    %c0_i32 = arith.constant 0 : i32
    %c0_i32_0 = arith.constant 0 : i32
    %c0_i32_1 = arith.constant 0 : i32
    return %c0_i32, %c0_i32_0 : i32, i32
  }
  func.func @transform_3(%arg0: i32) -> (i32, i32) {
    %c0_i32 = arith.constant 0 : i32
    %c0_i32_0 = arith.constant 0 : i32
    %c0_i32_1 = arith.constant 0 : i32
    return %c0_i32, %c0_i32_0 : i32, i32
  }
  func.func @transform_4(%arg0: i32) -> (i32, i32) {
    %c0_i32 = arith.constant 0 : i32
    %c0_i32_0 = arith.constant 0 : i32
    %c0_i32_1 = arith.constant 0 : i32
    return %c0_i32, %c0_i32_0 : i32, i32
  }
  func.func @transform_5(%arg0: i32) -> (i32, i32) {
    %c0_i32 = arith.constant 0 : i32
    %c0_i32_0 = arith.constant 0 : i32
    %c0_i32_1 = arith.constant 0 : i32
    return %c0_i32, %c0_i32_0 : i32, i32
  }
  func.func @transform_6(%arg0: i32) -> (i32, i32) {
    %c0_i32 = arith.constant 0 : i32
    %c0_i32_0 = arith.constant 0 : i32
    %c0_i32_1 = arith.constant 0 : i32
    return %c0_i32, %c0_i32_0 : i32, i32
  }
  func.func @transform_7(%arg0: i32) -> (i32, i32) {
    %c0_i32 = arith.constant 0 : i32
    %c0_i32_0 = arith.constant 0 : i32
    %c0_i32_1 = arith.constant 0 : i32
    return %c0_i32, %c0_i32_0 : i32, i32
  }
  func.func @transform_8(%arg0: i32) -> (i32, i32, i32) {
    %c0_i32 = arith.constant 0 : i32
    %c0_i32_0 = arith.constant 0 : i32
    %c0_i32_1 = arith.constant 0 : i32
    return %arg0, %c0_i32, %c0_i32_0 : i32, i32, i32
  }
}

</mosaic_0001>

<bundles_post_ra>
// kernel: basic_block_forward.1
= control target key start
LH: loop header
LB: loop body
LE: loop exit
PB: predicated region body
PF: predicated region fallthrough
CT: control target
= control target key end

     0   :  { %13 = vsyncpa [#allocation3], 0  ;;  %s8691_s0 = inlined_call_operand.vmem [shape: bf16[2,1,256,32], index: 0, kind: input, shape index: {}]   ;;  %s8692_s1 = inlined_call_operand.vmem [shape: bf16[2,256,1], index: 1, kind: input, shape index: {}]   ;;  %s8693_s2 = inlined_call_operand.vmem [shape: f32[1,32], index: 2, kind: input, shape index: {}]   ;;  %s8694_s3 = inlined_call_operand.vmem [shape: f32[1,32], index: 3, kind: input, shape index: {}]   ;;  %s8695_s4 = inlined_call_operand.vmem [shape: bf16[288,32], index: 4, kind: input, shape index: {}]   ;;  %s8696_s5 = inlined_call_operand.vmem [shape: f32[1,32], index: 5, kind: input, shape index: {}]   ;;  %s8697_s6 = inlined_call_operand.vmem [shape: f32[1,32], index: 6, kind: input, shape index: {}]   ;;  %s8698_s7 = inlined_call_operand.vmem [shape: bf16[288,32], index: 7, kind: input, shape index: {}]   ;;  %s8699_s8 = inlined_call_operand.hbm [shape: f32[2,256,32], index: 8, kind: output, shape index: {}]  }
   0x1   :  { %15 = vsyncpa [#allocation3 + $0x1], 0  ;;  %s5777_s27 = smov 0   ;;  %s5779_s28 = smov 0  }
   0x2   :  { %s5781_s29 = smov 0   ;;  %s5783_s30 = smov 0  }
   0x3 LB: > { %s5798_s9 = sadd.s32 4294967295, %s5722_s30   ;;  %s5005_s10 = sadd.s32 4294967294, %s5722_s30   ;;  %s5722_s30 = sphi %s5783_s30, %s9015_s30   ;;  %s5718_s29 = sphi %s5781_s29, %s9014_s29   ;;  %s5714_s28 = sphi %s5779_s28, %s9013_s28   ;;  %s5710_s27 = sphi %s5777_s27, %s9012_s27  }
   0x4   : > { %s5802_s11 = sadd.s32 1, %s5722_s30   ;;  %s201_s12 = sadd.s32 1, %s5718_s29 }
   0x5   : > { %s198_s13 = ssub.s32 %s5722_s30, %s5802_s11  ;;  %p211_p0 = scmp.ne.s32.totalorder %s5718_s29, %s5714_s28 }
   0x6   : > { %p199_p1 = scmp.eq.s32.totalorder %s198_s13, 0  ;;  %p212_p2 = scmp.eq.s32.totalorder %s5798_s9, 1 }
   0x7   : > { %p217_p3 = scmp.ne.s32.totalorder %s5714_s28, %s5710_s27  ;;  %p218_p4 = scmp.eq.s32.totalorder %s5005_s10, 1 }
   0x8   : > { %s5813_s14 = scalar_select %p199_p1, %s5718_s29, %s201_s12  }
   0x9   : > { %p5815_p5 = por %p212_p2, %p211_p0  ;;  %p5819_p6 = por %p218_p4, %p217_p3 }
   0xa   : > { %p5008_p7 = scmp.ge.s32.totalorder %s5722_s30, 1  ;;  %p265_p8 = scmp.lt.s32.totalorder %s5722_s30, 3 }
   0xc   : > { %p266_p9 = pnand %p5008_p7, %p265_p8 }
   0xe   : > { %269 = sbr.rel (%p266_p9) target bundleno = 1136 (0x470), region = 52 }
  0x15   : > { %v5014_v0 = vld [vmem:[%s8692_s1 + $0x88] sm:$0xf]  ;;  %v5012_v1 = vld [vmem:[%s8692_s1 + $0x80] sm:$0xf]  ;;  %v5724_v2 = vmov 0   ;;  %p299_p10 = scmp.lt.s32.totalorder %s5798_s9, 1 }
  0x16   : > { %5617 = vset.pattern.permute.xlu1 %v5724_v2  ;;  %5616 = vset.pattern.permute.xlu0 %v5724_v2  ;;  %v5015_v3 = vld [vmem:[%s8692_s1 + $0x8c] sm:$0xf]  ;;  %v5013_v4 = vld [vmem:[%s8692_s1 + $0x84] sm:$0xf]  ;;  %v305_v6 = vld [vmem:[%s8692_s1] sm:$0xf] }
  0x17   : > { %1295 = vperm.xlu1 %5617, %v5014_v0   ;;  %1271 = vperm.xlu0 %5616, %v5012_v1   ;;  %v306_v5 = vld [vmem:[%s8692_s1 + $0x4] sm:$0xf]  ;;  %v5017_v7 = vld [vmem:[%s8692_s1 + $0x94] sm:$0xf]  ;;  %v5016_v8 = vld [vmem:[%s8692_s1 + $0x90] sm:$0xf] }
  0x18   : > { %v308_v9 = vld [vmem:[%s8692_s1 + $0xc] sm:$0xf]  ;;  %v307_v10 = vld [vmem:[%s8692_s1 + $0x8] sm:$0xf]  ;;  %s300_s24 = scalar_select %p299_p10, %s5798_s9, 1  ;;  %v5618_v11 = vld [vmem:[%s8695_s4 + $0x80] sm:$0xff]  }
  0x19   : > { %v5019_v12 = vld [vmem:[%s8692_s1 + $0x9c] sm:$0xf]  ;;  %v5018_v13 = vld [vmem:[%s8692_s1 + $0x98] sm:$0xf]  ;;  %5494 = vmatprep.subr.bf16.mxu1 %v5618_v11  ;;  %v310_v14 = vld [vmem:[%s8692_s1 + $0x14] sm:$0xf] }
  0x1a   : > { %s5153_s18 = sshll.u32 %s300_s24, 7  ;;  %5495 = vmatpush3.bf16.msra.mxu1 %v5618_v11  ;;  %v309_v15 = vld [vmem:[%s8692_s1 + $0x10] sm:$0xf]  ;;  %v5619_v16 = vld [vmem:[%s8695_s4 + $0x88] sm:$0xff]   ;;  %v5021_v18 = vld [vmem:[%s8692_s1 + $0xa4] sm:$0xf] }
  0x1b   : > { %1307 = vperm.xlu1 %5617, %v5015_v3   ;;  %1283 = vperm.xlu0 %5616, %v5013_v4   ;;  %s5877_s26 = scalar_lea.vmem %s8691_s0, %s5153_s18  ;;  %v5020_v19 = vld [vmem:[%s8692_s1 + $0xa0] sm:$0xf]  ;;  %v312_v24 = vld [vmem:[%s8692_s1 + $0x1c] sm:$0xf]  ;;  %v311_v25 = vld [vmem:[%s8692_s1 + $0x18] sm:$0xf] }
  0x1c   : > { %5496 = vmatprep.subr.bf16.mxu1 %v5619_v16  ;;  %v5883_v17 = vld [vmem:[%s5877_s26] sm:$0xff]   ;;  %v5892_v20 = vld [vmem:[%s5877_s26 + $0x8] sm:$0xff]   ;;  %v5924_v32 = vld [vmem:[%s5877_s26 + $0x10] sm:$0xff]   ;;  %vm624_vm6 = vsmask.f32 256  ;;  %vm769_vm7 = vcmask 1040384  }
  0x1d   : > { %8838 = vst [vmem:[#allocation5_spill] sm:$0xff] %v5883_v17  ;;  %8839 = vst [vmem:[#allocation6_spill] sm:$0xff] %v5892_v20  ;;  %v8719_v21 = vunpack.c.l.bf16 %v5883_v17  ;;  %v8718_v22 = vunpack.c.h.bf16 %v5883_v17  ;;  %v5899_v23 = vld [vmem:[%s8693_s2] ss:$0 sm:$0xff]  ;;  %v8717_v26 = vunpack.c.l.bf16 %v5892_v20  ;;  %v8715_v27 = vunpack.c.h.bf16 %v5892_v20  ;;  %v5023_v28 = vld [vmem:[%s8692_s1 + $0xac] sm:$0xf] }
  0x1e   : > { %5497 = vmatpush3.bf16.msra.mxu1 %v5619_v16  ;;  %v5921_v31 = vld [vmem:[%s8694_s3] ss:$0 sm:$0xff]  ;;  %8840 = vst [vmem:[#allocation7_spill] sm:$0xff] %v5924_v32  ;;  %v5022_v33 = vld [vmem:[%s8692_s1 + $0xa8] sm:$0xf]  ;;  %v8714_v36 = vunpack.c.l.bf16 %v5924_v32  ;;  %v8713_v39 = vunpack.c.h.bf16 %v5924_v32  ;;  %v5960_v49 = vld [vmem:[%s5877_s26 + $0x18] sm:$0xff]  }
  0x1f   : > { %787 = vperm.xlu1 %5617, %v306_v5   ;;  %775 = vperm.xlu0 %5616, %v305_v6   ;;  %v441_v29 = vmul.f32 %v8719_v21, %v5899_v23  ;;  %v442_v30 = vmul.f32 %v8718_v22, %v5899_v23  ;;  %v443_v34 = vmul.f32 %v8717_v26, %v5899_v23  ;;  %v314_v40 = vld [vmem:[%s8692_s1 + $0x24] sm:$0xf]  ;;  %v313_v41 = vld [vmem:[%s8692_s1 + $0x20] sm:$0xf]  ;;  %v5025_v45 = vld [vmem:[%s8692_s1 + $0xb4] sm:$0xf]  ;;  %v8712_v55 = vunpack.c.l.bf16 %v5960_v49 }
  0x20   : > { %v444_v35 = vmul.f32 %v8715_v27, %v5899_v23  ;;  %v445_v44 = vmul.f32 %v8714_v36, %v5899_v23  ;;  %v5024_v46 = vld [vmem:[%s8692_s1 + $0xb0] sm:$0xf]  ;;  %v446_v48 = vmul.f32 %v8713_v39, %v5899_v23  ;;  %8841 = vst [vmem:[#allocation8_spill] sm:$0xff] %v5960_v49  ;;  %v316_v56 = vld [vmem:[%s8692_s1 + $0x2c] sm:$0xf]  ;;  %v8710_v60 = vunpack.c.h.bf16 %v5960_v49  ;;  %vm6018_vm10 = vmand %vm769_vm7, %vm624_vm6  ;;  %s5725_s10 = smov 32  }
  0x21   : > { %v480_v37 = vadd.f32 %v5921_v31, %v441_v29  ;;  %v481_v38 = vadd.f32 %v5921_v31, %v442_v30  ;;  %v482_v42 = vadd.f32 %v5921_v31, %v443_v34  ;;  %v315_v57 = vld [vmem:[%s8692_s1 + $0x28] sm:$0xf]  ;;  %v447_v3 = vmul.f32 %v8712_v55, %v5899_v23  ;;  %v5027_v4 = vld [vmem:[%s8692_s1 + $0xbc] sm:$0xf]  ;;  %v5026_v5 = vld [vmem:[%s8692_s1 + $0xb8] sm:$0xf] }
  0x22   : > { %v483_v43 = vadd.f32 %v5921_v31, %v444_v35  ;;  %v484_v52 = vadd.f32 %v5921_v31, %v445_v44  ;;  %v485_v53 = vadd.f32 %v5921_v31, %v446_v48  ;;  %v448_v6 = vmul.f32 %v8710_v60, %v5899_v23  ;;  %s5726_s13 = smov 96   ;;  %s5728_s21 = smov 64   ;;  %v6372_v26 = vld [vmem:[%s5877_s26 + $0x50] sm:$0xff]  }
  0x23   : > { %1331 = vperm.xlu1 %5617, %v5017_v7   ;;  %1319 = vperm.xlu0 %5616, %v5016_v8   ;;  %vm512_vm0 = vcmp.gt.f32.partialorder %v480_v37, 0.0  ;;  %vm513_vm1 = vcmp.gt.f32.partialorder %v481_v38, 0.0  ;;  %v544_v47 = vmul.f32 0.1, %v480_v37  ;;  %v545_v50 = vmul.f32 0.1, %v481_v38 }
  0x24   : > { %vm514_vm2 = vcmp.gt.f32.partialorder %v482_v42, 0.0  ;;  %vm515_vm3 = vcmp.gt.f32.partialorder %v483_v43, 0.0  ;;  %v546_v51 = vmul.f32 0.1, %v482_v42  ;;  %v547_v54 = vmul.f32 0.1, %v483_v43 }
  0x25   : > { %v576_v58 = vsel %vm512_vm0, %v480_v37, %v544_v47  ;;  %v577_v59 = vsel %vm513_vm1, %v481_v38, %v545_v50  ;;  %v548_v61 = vmul.f32 0.1, %v484_v52  ;;  %v549_v62 = vmul.f32 0.1, %v485_v53  ;;  %v318_v8 = vld [vmem:[%s8692_s1 + $0x34] sm:$0xf] }
  0x26   : > { %v578_v63 = vsel %vm514_vm2, %v482_v42, %v546_v51  ;;  %v579_v0 = vsel %vm515_vm3, %v483_v43, %v547_v54  ;;  %v608_v1 = vpack.c.bf16 %v577_v59, %v576_v58  ;;  %vm516_vm4 = vcmp.gt.f32.partialorder %v484_v52, 0.0  ;;  %8862 = vst [vmem:[#allocation27_spill] sm:$0xff] %v6372_v26  ;;  %s5154_s18 = sshll.u32 %s5798_s9, 12  ;;  %s5729_s12 = smov [#allocation2]  }
  0x27   : > { %811 = vperm.xlu1 %5617, %v308_v9   ;;  %799 = vperm.xlu0 %5616, %v307_v10   ;;  %vm517_vm5 = vcmp.gt.f32.partialorder %v485_v53, 0.0  ;;  %v609_v7 = vpack.c.bf16 %v579_v0, %v578_v63  ;;  %v317_v9 = vld [vmem:[%s8692_s1 + $0x30] sm:$0xf]  ;;  %v580_v10 = vsel %vm516_vm4, %v484_v52, %v548_v61  ;;  %v8843_v47 = vmov 0  ;;  %v321_v63 = vld [vmem:[%s8692_s1 + $0x40] sm:$0xf]  ;;  %s8636_s9 = scalar_lea.hbm %s8699_s8, %s5154_s18 }
  0x28   : > { %v581_v11 = vsel %vm517_vm5, %v485_v53, %v549_v62  ;;  %v629_v29 = vshll.u32 %v608_v1, 16  ;;  %v8844_v47 = vsel %vm6018_vm10, 4294967295, %v8843_v47  ;;  %v5030_v53 = vld [vmem:[%s8692_s1 + $0xc8] sm:$0xf]  ;;  %v322_v62 = vld [vmem:[%s8692_s1 + $0x44] sm:$0xf] }
  0x29   : > { %v633_v16 = vshrl.u32 %v609_v7, 16  ;;  %v636_v30 = vshll.u32 %v609_v7, 16  ;;  %8845 = vst [vmem:[#allocation10_spill] sm:$0xff] %v8844_v47  ;;  %v6052_v7 = vrot.slane %v5724_v2, 1  ;;  %vm1864_vm13 = vsmask.f32 7424 }
  0x2a   : > { %vm2046_vm2 = vcmask 1046528   ;;  %vm2384_vm3 = vcmask 261120   ;;  %s5664_s24 = sshll.u32 %s5729_s12, 4  ;;  %s5665_s24 = int_to_ptr.vmem [resolvable:$false] %s5664_s24 }
  0x2b   : > { %1355 = vperm.xlu1 %5617, %v5019_v12   ;;  %1343 = vperm.xlu0 %5616, %v5018_v13   ;;  %v626_v12 = vshrl.u32 %v608_v1, 16  ;;  %v486_v13 = vadd.f32 %v5921_v31, %v447_v3  ;;  %v635_v34 = vrot.slane %v633_v16, 7  ;;  %8846 = vst [vmem:[#allocation11_spill] sm:$0xff] %v6052_v7  ;;  %s5666_s17 = scalar_lea.vmem %s5665_s24, 8192 }
  0x2d   : > { %vm518_vm8 = vcmp.gt.f32.partialorder %v486_v13, 0.0  ;;  %v638_v43 = vor.u32 %v636_v30, %v635_v34 }
  0x2f   : > { %835 = vperm.xlu1 %5617, %v310_v14   ;;  %823 = vperm.xlu0 %5616, %v309_v15   ;;  %v487_v14 = vadd.f32 %v5921_v31, %v448_v6  ;;  %v610_v15 = vpack.c.bf16 %v581_v11, %v580_v10 }
  0x31   : > { %v641_v35 = vshrl.u32 %v610_v15, 16  ;;  %vm519_vm9 = vcmp.gt.f32.partialorder %v487_v14, 0.0 }
  0x33   : > { %1379 = vperm.xlu1 %5617, %v5021_v18   ;;  %1367 = vperm.xlu0 %5616, %v5020_v19   ;;  %v5029_v18 = vld [vmem:[%s8692_s1 + $0xc4] sm:$0xf]  ;;  %v5028_v19 = vld [vmem:[%s8692_s1 + $0xc0] sm:$0xf]  ;;  %v643_v44 = vrot.slane %v641_v35, 7 }
  0x37   : > { %859 = vperm.xlu1 %5617, %v312_v24   ;;  %847 = vperm.xlu0 %5616, %v311_v25   ;;  %v550_v24 = vmul.f32 0.1, %v486_v13  ;;  %v6003_v25 = vld [vmem:[%s5877_s26 + $0x20] sm:$0xff]  }
  0x38   : > { %8842 = vst [vmem:[#allocation9_spill] sm:$0xff] %v6003_v25  ;;  %v8709_v37 = vunpack.c.l.bf16 %v6003_v25  ;;  %v8708_v38 = vunpack.c.h.bf16 %v6003_v25 }
  0x39   : > { %v582_v48 = vsel %vm518_vm8, %v486_v13, %v550_v24 }
  0x3a   : > { %v449_v51 = vmul.f32 %v8709_v37, %v5899_v23  ;;  %v450_v52 = vmul.f32 %v8708_v38, %v5899_v23 }
  0x3b   : > { %1403 = vperm.xlu1 %5617, %v5023_v28   ;;  %1391 = vperm.xlu0 %5616, %v5022_v33   ;;  %v628_v28 = vrot.slane %v626_v12, 7  ;;  %v551_v33 = vmul.f32 0.1, %v487_v14 }
  0x3c   : > { %v488_v59 = vadd.f32 %v5921_v31, %v449_v51  ;;  %v489_v61 = vadd.f32 %v5921_v31, %v450_v52  ;;  %v326_v51 = vld [vmem:[%s8692_s1 + $0x54] sm:$0xf] }
  0x3d   : > { %v631_v42 = vor.u32 %v629_v29, %v628_v28  ;;  %v583_v50 = vsel %vm519_vm9, %v487_v14, %v551_v33 }
  0x3e   : > { %v611_v58 = vpack.c.bf16 %v583_v50, %v582_v48  ;;  %v553_v6 = vmul.f32 0.1, %v489_v61  ;;  %vm520_vm11 = vcmp.gt.f32.partialorder %v488_v59, 0.0  ;;  %vm521_vm12 = vcmp.gt.f32.partialorder %v489_v61, 0.0 }
  0x3f   : > { %883 = vperm.xlu1 %5617, %v314_v40   ;;  %871 = vperm.xlu0 %5616, %v313_v41   ;;  %v320_v40 = vld [vmem:[%s8692_s1 + $0x3c] sm:$0xf]  ;;  %v319_v41 = vld [vmem:[%s8692_s1 + $0x38] sm:$0xf]  ;;  %v6033_v54 = vsel %vm6018_vm10, 0, %v631_v42 }
  0x40   : > { %v1873_v0 = vshll.u32 %v6033_v54, 16  ;;  %v652_v14 = vshll.u32 %v611_v58, 16  ;;  %v585_v16 = vsel %vm521_vm12, %v489_v61, %v553_v6  ;;  %v1877_v35 = vshrl.u32 %v6033_v54, 16  ;;  %v5035_v42 = vld [vmem:[%s8692_s1 + $0xdc] sm:$0xf] }
  0x41   : > { %v325_v61 = vld [vmem:[%s8692_s1 + $0x50] sm:$0xf] }
  0x42   : > { %v1875_v10 = vrot.slane %v1873_v0, 1  ;;  %v5036_v0 = vld [vmem:[%s8692_s1 + $0xe0] sm:$0xf] }
  0x43   : > { %1427 = vperm.xlu1 %5617, %v5025_v45   ;;  %1415 = vperm.xlu0 %5616, %v5024_v46   ;;  %v644_v45 = vshll.u32 %v610_v15, 16  ;;  %v5031_v46 = vld [vmem:[%s8692_s1 + $0xcc] sm:$0xf] }
  0x47   : > { %907 = vperm.xlu1 %5617, %v316_v56   ;;  %895 = vperm.xlu0 %5616, %v315_v57   ;;  %v6036_v56 = vsel %vm624_vm6, %v628_v28, %v638_v43  ;;  %v646_v57 = vor.u32 %v644_v45, %v643_v44  ;;  %v5034_v43 = vld [vmem:[%s8692_s1 + $0xd8] sm:$0xf]  ;;  %v1879_v45 = vor.u32 %v1877_v35, %v1875_v10 }
  0x48   : > { %v1881_v1 = vshll.u32 %v6036_v56, 16  ;;  %v1885_v12 = vshrl.u32 %v6036_v56, 16 }
  0x49   : > { %v6049_v3 = vsel %vm624_vm6, %v635_v34, %v646_v57  ;;  %v323_v34 = vld [vmem:[%s8692_s1 + $0x48] sm:$0xf] }
  0x4a   : > { %v1883_v11 = vrot.slane %v1881_v1, 1  ;;  %v1889_v13 = vshll.u32 %v6049_v3, 16 }
  0x4b   : > { %1451 = vperm.xlu1 %5617, %v5027_v4   ;;  %1439 = vperm.xlu0 %5616, %v5026_v5   ;;  %v649_v4 = vshrl.u32 %v611_v58, 16  ;;  %v552_v5 = vmul.f32 0.1, %v488_v59 }
  0x4c   : > { %v1887_v24 = vor.u32 %v1885_v12, %v1883_v11  ;;  %v1891_v28 = vrot.slane %v1889_v13, 1  ;;  %v6094_v52 = vsel %vm1864_vm13, %v1879_v45, %v1883_v11  ;;  %v6135_v11 = vld [vmem:[%s5877_s26 + $0x28] sm:$0xff]   ;;  %v781_v45 = vlaneseq }
  0x4d   : > { %v651_v2 = vrot.slane %v649_v4, 7  ;;  %v584_v15 = vsel %vm520_vm11, %v488_v59, %v552_v5  ;;  %v328_v5 = vld [vmem:[%s8692_s1 + $0x5c] sm:$0xf]  ;;  %8850 = vst [vmem:[#allocation15_spill] sm:$0xff] %v6135_v11  ;;  %v5039_v12 = vld [vmem:[%s8692_s1 + $0xec] sm:$0xf] }
  0x4e   : > { %v612_v30 = vpack.c.bf16 %v585_v16, %v584_v15  ;;  %v6069_v33 = vsel %vm1864_vm13, %v1887_v24, %v1891_v28  ;;  %v5038_v13 = vld [vmem:[%s8692_s1 + $0xe8] sm:$0xf]  ;;  %v6146_v15 = vld [vmem:[%s5877_s26 + $0x30] sm:$0xff]  }
  0x4f   : > { %931 = vperm.xlu1 %5617, %v318_v8   ;;  %919 = vperm.xlu0 %5616, %v317_v9   ;;  %v5033_v8 = vld [vmem:[%s8692_s1 + $0xd4] sm:$0xf]  ;;  %v5032_v9 = vld [vmem:[%s8692_s1 + $0xd0] sm:$0xf]  ;;  %v654_v29 = vor.u32 %v652_v14, %v651_v2  ;;  %v8704_v14 = vunpack.c.h.bf16 %v6135_v11  ;;  %8851 = vst [vmem:[#allocation16_spill] sm:$0xff] %v6146_v15  ;;  %v8702_v24 = vunpack.c.h.bf16 %v6146_v15 }
  0x50   : > { %v660_v50 = vshll.u32 %v612_v30, 16 }
  0x53   : > { %1475 = vperm.xlu1 %5617, %v5029_v18   ;;  %1463 = vperm.xlu0 %5616, %v5028_v19   ;;  %v324_v18 = vld [vmem:[%s8692_s1 + $0x4c] sm:$0xf]  ;;  %v1876_v19 = vsel %vm1864_vm13, %v6052_v7, %v1875_v10  ;;  %v327_v10 = vld [vmem:[%s8692_s1 + $0x58] sm:$0xf] }
  0x57   : > { %955 = vperm.xlu1 %5617, %v320_v40   ;;  %943 = vperm.xlu0 %5616, %v319_v41   ;;  %v6076_v40 = vsel %vm624_vm6, %v643_v44, %v654_v29  ;;  %v657_v41 = vshrl.u32 %v612_v30, 16  ;;  %v5621_v29 = vld [vmem:[%s8695_s4] sm:$0xff]  }
  0x58   : > { %8847 = vst [vmem:[#allocation12_spill] sm:$0xff] %v6076_v40  ;;  %v1897_v44 = vshll.u32 %v6076_v40, 16  ;;  %v1901_v1 = vshrl.u32 %v6076_v40, 16 }
  0x59   : > { %v6088_v48 = vrot.slane %v657_v41, 7  ;;  %v454_v41 = vmul.f32 %v8702_v24, %v5899_v23 }
  0x5a   : > { %v1899_v57 = vrot.slane %v1897_v44, 1 }
  0x5b   : > { %1499 = vperm.xlu1 %5617, %v5031_v46   ;;  %1487 = vperm.xlu0 %5616, %v5030_v53   ;;  %v1893_v46 = vshrl.u32 %v6049_v3, 16  ;;  %v662_v58 = vor.u32 %v660_v50, %v6088_v48 }
  0x5c   : > { %v1903_v6 = vor.u32 %v1901_v1, %v1899_v57 }
  0x5d   : > { %v1895_v53 = vor.u32 %v1893_v46, %v1891_v28  ;;  %v5620_v28 = vld [vmem:[%s8695_s4 + $0x40] sm:$0xff]   ;;  %v6173_v46 = vld [vmem:[%s5877_s26 + $0x38] sm:$0xff]  }
  0x5e   : > { %5234 = vmatprep.subr.bf16.mxu0 %v5620_v28  ;;  %8852 = vst [vmem:[#allocation17_spill] sm:$0xff] %v6173_v46  ;;  %v8700_v1 = vunpack.c.h.bf16 %v6173_v46  ;;  %v5625_v28 = vld [vmem:[%s8695_s4 + $0x10] sm:$0xff]  }
  0x5f   : > { %979 = vperm.xlu1 %5617, %v322_v62   ;;  %967 = vperm.xlu0 %5616, %v321_v63   ;;  %v6100_v59 = vsel %vm1864_vm13, %v1895_v53, %v1899_v57  ;;  %v6106_v62 = vsel %vm624_vm6, %v651_v2, %v662_v58  ;;  %v5037_v63 = vld [vmem:[%s8692_s1 + $0xe4] sm:$0xf]  ;;  %v8705_v2 = vunpack.c.l.bf16 %v6135_v11  ;;  %v493_v53 = vadd.f32 %v5921_v31, %v454_v41 }
  0x60   : > { %8848 = vst [vmem:[#allocation13_spill] sm:$0xff] %v6106_v62  ;;  %v1905_v4 = vshll.u32 %v6106_v62, 16  ;;  %5235 = vmatpush3.bf16.msra.mxu0 %v5621_v29  ;;  %v782_v58 = vshrl.u32 %v781_v45, 7  ;;  %v456_v45 = vmul.f32 %v8700_v1, %v5899_v23 }
  0x61   : > { %v451_v16 = vmul.f32 %v8705_v2, %v5899_v23  ;;  %vm525_vm1 = vcmp.gt.f32.partialorder %v493_v53, 0.0 }
  0x63   : > { %1523 = vperm.xlu1 %5617, %v5033_v8   ;;  %1511 = vperm.xlu0 %5616, %v5032_v9   ;;  %v6121_v8 = vrot.slane %v1905_v4, 1  ;;  %v490_v30 = vadd.f32 %v5921_v31, %v451_v16 }
  0x65   : > { %v6127_v9 = vsel %vm1864_vm13, %v1903_v6, %v6121_v8  ;;  %v554_v44 = vmul.f32 0.1, %v490_v30  ;;  %vm522_vm14 = vcmp.gt.f32.partialorder %v490_v30, 0.0 }
  0x66   : > { %8849 = vst [vmem:[#allocation14_spill] sm:$0xff] %v6127_v9 }
  0x67   : > { %1003 = vperm.xlu0 %5616, %v324_v18   ;;  %1997 = vrot.lane.b32.xlu1 %v1876_v19, %s5725_s10  ;;  %v452_v18 = vmul.f32 %v8704_v14, %v5899_v23  ;;  %v8703_v19 = vunpack.c.l.bf16 %v6146_v15  ;;  %v586_v6 = vsel %vm522_vm14, %v490_v30, %v554_v44  ;;  %v5627_v44 = vld [vmem:[%s8695_s4 + $0x18] sm:$0xff]  }
  0x69   : > { %v453_v35 = vmul.f32 %v8703_v19, %v5899_v23 }
  0x6b   : > { %2302 = vrot.lane.b32.xlu0 %v6069_v33, %s5726_s13  ;;  %991 = vperm.xlu1 %5617, %v323_v34   ;;  %v491_v34 = vadd.f32 %v5921_v31, %v452_v18  ;;  %v5624_v18 = vld [vmem:[%s8695_s4 + $0x50] sm:$0xff]  }
  0x6d   : > { %v555_v50 = vmul.f32 0.1, %v491_v34  ;;  %vm523_vm15 = vcmp.gt.f32.partialorder %v491_v34, 0.0 }
  0x6f   : > { %1547 = vperm.xlu0 %5616, %v5035_v42   ;;  %1535 = vperm.xlu1 %5617, %v5034_v43   ;;  %v5727_v42 = vmov 839922192  }
  0x70   : > { %v779_v43 = vunpack.c.l.s4 %v5727_v42 }
  0x72   : > { %v780_v57 = vunpack.c.0.s8 %v779_v43 }
  0x73   : > { %1027 = vperm.xlu0 %5616, %v326_v51   ;;  %1999 = vrot.lane.b32.xlu1 %v6094_v52, %s5725_s10  ;;  %v492_v51 = vadd.f32 %v5921_v31, %v453_v35 }
  0x74   : > { %v6185_v16 = vsub.s32 %v780_v57, %v782_v58 }
  0x75   : > { %vm524_vm0 = vcmp.gt.f32.partialorder %v492_v51, 0.0 }
  0x77   : > { %2304 = vrot.lane.b32.xlu0 %v6100_v59, %s5726_s13  ;;  %1015 = vperm.xlu1 %5617, %v325_v61   ;;  %v5622_v61 = vld [vmem:[%s8695_s4 + $0x48] sm:$0xff]  }
  0x78   : > { %5236 = vmatprep.subr.bf16.mxu0 %v5622_v61 }
  0x7b   : > { %1571 = vperm.xlu0 %5616, %v5037_v63   ;;  %1559 = vperm.xlu1 %5617, %v5036_v0   ;;  %v5623_v63 = vld [vmem:[%s8695_s4 + $0x8] sm:$0xff]   ;;  %v8701_v0 = vunpack.c.l.bf16 %v6173_v46 }
  0x7c   : > { %5237 = vmatpush3.bf16.msra.mxu0 %v5623_v63 }
  0x7d   : > { %v455_v29 = vmul.f32 %v8701_v0, %v5899_v23  ;;  %5238 = vmatprep.subr.bf16.mxu0 %v5624_v18 }
  0x7f   : > { %1051 = vperm.xlu0 %5616, %v328_v5   ;;  %2001 = vrot.lane.b32.xlu1 %v6069_v33, %s5725_s10 }
  0x80   : > { %5239 = vmatpush3.bf16.msra.mxu0 %v5625_v28 }
  0x83   : > { %2306 = vrot.lane.b32.xlu0 %v6127_v9, %s5726_s13  ;;  %1039 = vperm.xlu1 %5617, %v327_v10   ;;  %v587_v10 = vsel %vm523_vm15, %v491_v34, %v555_v50  ;;  %v5626_v34 = vld [vmem:[%s8695_s4 + $0x58] sm:$0xff]  }
  0x84   : > { %v6196_v30 = vpack.c.bf16 %v587_v10, %v586_v6  ;;  %5240 = vmatprep.subr.bf16.mxu0 %v5626_v34  ;;  %v6216_v10 = vld [vmem:[%s5877_s26 + $0x40] sm:$0xff]  }
  0x85   : > { %8853 = vst [vmem:[#allocation18_spill] sm:$0xff] %v6216_v10  ;;  %5241 = vmatpush3.bf16.msra.mxu0 %v5627_v44 }
  0x86   : > { %v665_v6 = vshrl.u32 %v6196_v30, 16 }
  0x87   : > { %1595 = vperm.xlu0 %5616, %v5039_v12   ;;  %1583 = vperm.xlu1 %5617, %v5038_v13   ;;  %v556_v12 = vmul.f32 0.1, %v492_v51  ;;  %v557_v13 = vmul.f32 0.1, %v493_v53 }
  0x89   : > { %v588_v42 = vsel %vm524_vm0, %v492_v51, %v556_v12  ;;  %v589_v43 = vsel %vm525_vm1, %v493_v53, %v557_v13  ;;  %v494_v51 = vadd.f32 %v5921_v31, %v455_v29 }
  0x8b   : > { %2003 = vrot.lane.b32.xlu1 %v6100_v59, %s5725_s10  ;;  %vm526_vm4 = vcmp.gt.f32.partialorder %v494_v51, 0.0 }
  0x96   : > { %v1296_v4 = vpop.permute.xlu1 %1295  ;;  %v1272_v5 = vpop.permute.xlu0 %1271 }
  0x97   : > { %v1304_v50 = vrot.slane %v1296_v4, %v6185_v16  ;;  %v1280_v57 = vrot.slane %v1272_v5, %v6185_v16  ;;  %v6218_v4 = vpack.c.bf16 %v589_v43, %v588_v42  ;;  %v495_v5 = vadd.f32 %v5921_v31, %v456_v45 }
  0x98   : > { %v668_v42 = vshll.u32 %v6196_v30, 16  ;;  %v8706_v43 = vunpack.c.l.bf16 %v6216_v10 }
  0x99   : > { %vm527_vm5 = vcmp.gt.f32.partialorder %v495_v5, 0.0 }
  0x9a   : > { %v1308_v35 = vpop.permute.xlu1 %1307  ;;  %v1284_v41 = vpop.permute.xlu0 %1283 }
  0x9b   : > { %v1316_v58 = vrot.slane %v1308_v35, %v6185_v16  ;;  %v1292_v61 = vrot.slane %v1284_v41, %v6185_v16  ;;  %v5628_v35 = vld [vmem:[%s8695_s4 + $0x60] sm:$0xff]  }
  0x9c   : > { %v5629_v41 = vld [vmem:[%s8695_s4 + $0x20] sm:$0xff]   ;;  %5242 = vmatprep.subr.bf16.mxu0 %v5628_v35 }
  0x9d   : > { %v6212_v53 = vcombine.low %v1304_v50, %v1316_v58  ;;  %v5062_v63 = vcombine.low %v1280_v57, %v1292_v61  ;;  %v6242_v57 = vrot.slane %v665_v6, 7  ;;  %v5630_v58 = vld [vmem:[%s8695_s4 + $0x68] sm:$0xff]   ;;  %5243 = vmatpush3.bf16.msra.mxu0 %v5629_v41  ;;  %v457_v41 = vmul.f32 %v8706_v43, %v5899_v23 }
  0x9e   : > { %v788_v12 = vpop.permute.xlu1 %787  ;;  %v776_v13 = vpop.permute.xlu0 %775  ;;  %v5631_v6 = vld [vmem:[%s8695_s4 + $0x28] sm:$0xff]   ;;  %5244 = vmatprep.subr.bf16.mxu0 %v5630_v58 }
  0x9f   : > { %v1734_v18 = vrot.slane %v6212_v53, 7  ;;  %v6222_v28 = vrot.slane %v5062_v63, 7  ;;  %v796_v29 = vrot.slane %v788_v12, %v6185_v16  ;;  %v784_v34 = vrot.slane %v776_v13, %v6185_v16 }
  0xa0   : > { %v673_v63 = vshrl.u32 %v6218_v4, 16  ;;  %v558_v12 = vmul.f32 0.1, %v494_v51  ;;  %v559_v13 = vmul.f32 0.1, %v495_v5  ;;  %v670_v14 = vor.u32 %v668_v42, %v6242_v57 }
  0xa1   : > { %8854 = vst [vmem:[#allocation19_spill] sm:$0xff] %v6222_v28  ;;  %v6234_v45 = vcombine.low %v784_v34, %v796_v29  ;;  %v6238_v44 = vsel %vm769_vm7, %v6222_v28, %v1734_v18  ;;  %v1847_v50 = vmul.bf16 %v6222_v28, %v6036_v56  ;;  %5245 = vmatpush3.bf16.msra.mxu0 %v5631_v6 }
  0xa2   : > { %8855 = vst [vmem:[#allocation20_spill] sm:$0xff] %v6238_v44  ;;  %v1332_v30 = vpop.permute.xlu1 %1331  ;;  %v1320_v61 = vpop.permute.xlu0 %1319  ;;  %v1848_v53 = vmul.bf16 %v6238_v44, %v6049_v3  ;;  %v6270_v2 = vrot.slane %v673_v63, 7  ;;  %v591_v43 = vsel %vm527_vm5, %v495_v5, %v559_v13  ;;  %v1815_v55 = vmul.bf16 %v6238_v44, %v6036_v56 }
  0xa3   : > { %v1340_v29 = vrot.slane %v1332_v30, %v6185_v16  ;;  %v1328_v34 = vrot.slane %v1320_v61, %v6185_v16  ;;  %v1831_v35 = vmul.bf16 %v6234_v45, %v6036_v56  ;;  %v1798_v1 = vmul.bf16 %v6234_v45, %v6033_v54 }
  0xa4   : > { %v2351_v0 = vrot.slane %v1847_v50, 1  ;;  %v2352_v24 = vrot.slane %v1848_v53, 1  ;;  %v676_v30 = vshll.u32 %v6218_v4, 16  ;;  %v8707_v61 = vunpack.c.h.bf16 %v6216_v10 }
  0xa5   : > { %v6262_v19 = vcombine.low %v1328_v34, %v1340_v29  ;;  %2266 = vrot.lane.b32.xlu0 %v1831_v35, %s5728_s21  ;;  %2128 = vrot.lane.b32.xlu1 %v1798_v1, %s5726_s13  ;;  %v590_v29 = vsel %vm526_vm4, %v494_v51, %v558_v12  ;;  %v6274_v34 = vld [vmem:[%s5877_s26 + $0x48] sm:$0xff]   ;;  %v5633_v51 = vld [vmem:[%s8695_s4 + $0x30] sm:$0xff]  }
  0xa6   : > { %v812_v58 = vpop.permute.xlu1 %811  ;;  %v800_v50 = vpop.permute.xlu0 %799  ;;  %v2353_v53 = vsel %vm2046_vm2, %v2351_v0, %v2352_v24  ;;  %8856 = vst [vmem:[#allocation21_spill] sm:$0xff] %v6274_v34  ;;  %v5632_v0 = vld [vmem:[%s8695_s4 + $0x70] sm:$0xff]   ;;  %v458_v5 = vmul.f32 %v8707_v61, %v5899_v23  ;;  %v8711_v13 = vunpack.c.l.bf16 %v6274_v34 }
  0xa7   : > { %v1736_v35 = vrot.slane %v6262_v19, 7  ;;  %v820_v1 = vrot.slane %v812_v58, %v6185_v16  ;;  %v808_v4 = vrot.slane %v800_v50, %v6185_v16  ;;  %5498 = vmatprep.mubr.msk.bf16.mxu1 %vm2384_vm3, %v2353_v53  ;;  %v6289_v19 = vadd.f32 %v5921_v31, %v457_v41  ;;  %5246 = vmatprep.subr.bf16.mxu0 %v5632_v0 }
  0xa8   : > { %v6304_v41 = vsel %vm624_vm6, %v6088_v48, %v670_v14  ;;  %v6307_v53 = vpack.c.bf16 %v591_v43, %v590_v29  ;;  %5247 = vmatpush3.bf16.msra.mxu0 %v5633_v51  ;;  %v8716_v48 = vunpack.c.h.bf16 %v6274_v34  ;;  %v5634_v14 = vld [vmem:[%s8695_s4 + $0x78] sm:$0xff]   ;;  %v497_v29 = vadd.f32 %v5921_v31, %v458_v5 }
  0xa9   : > { %v6292_v63 = vsel %vm769_vm7, %v1734_v18, %v1736_v35  ;;  %v6294_v12 = vcombine.low %v808_v4, %v820_v1  ;;  %8858 = vst [vmem:[#allocation23_spill] sm:$0xff] %v6304_v41  ;;  %v678_v18 = vor.u32 %v676_v30, %v6270_v2  ;;  %vm528_vm8 = vcmp.gt.f32.partialorder %v6289_v19, 0.0  ;;  %v5635_v43 = vld [vmem:[%s8695_s4 + $0x38] sm:$0xff]   ;;  %5248 = vmatprep.subr.bf16.mxu0 %v5634_v14 }
  0xaa   : > { %8857 = vst [vmem:[#allocation22_spill] sm:$0xff] %v6292_v63  ;;  %v1356_v6 = vpop.permute.xlu1 %1355  ;;  %v1344_v58 = vpop.permute.xlu0 %1343  ;;  %v1849_v50 = vmul.bf16 %v6292_v63, %v6076_v40  ;;  %v560_v51 = vmul.f32 0.1, %v6289_v19  ;;  %v460_v14 = vmul.f32 %v8716_v48, %v5899_v23  ;;  %vm529_vm9 = vcmp.gt.f32.partialorder %v497_v29, 0.0 }
  0xab   : > { %v1364_v1 = vrot.slane %v1356_v6, %v6185_v16  ;;  %v1352_v4 = vrot.slane %v1344_v58, %v6185_v16  ;;  %v1832_v0 = vmul.bf16 %v6294_v12, %v6049_v3  ;;  %v1799_v61 = vmul.bf16 %v6294_v12, %v6036_v56 }
  0xac   : > { %v2354_v38 = vrot.slane %v1849_v50, 1  ;;  %v459_v6 = vmul.f32 %v8711_v13, %v5899_v23  ;;  %5249 = vmatpush3.bf16.msra.mxu0 %v5635_v43  ;;  %v1816_v36 = vmul.bf16 %v6292_v63, %v6049_v3  ;;  %v1783_v27 = vmul.bf16 %v6292_v63, %v6036_v56 }
  0xad   : > { %v6324_v30 = vcombine.low %v1352_v4, %v1364_v1  ;;  %2268 = vrot.lane.b32.xlu0 %v1832_v0, %s5728_s21  ;;  %2130 = vrot.lane.b32.xlu1 %v1799_v61, %s5726_s13  ;;  %v1814_v1 = vmul.bf16 %v6222_v28, %v6033_v54  ;;  %v6338_v4 = vsel %vm624_vm6, %v6242_v57, %v678_v18  ;;  %v681_v61 = vshrl.u32 %v6307_v53, 16 }
  0xae   : > { %v836_v58 = vpop.permute.xlu1 %835  ;;  %v824_v50 = vpop.permute.xlu0 %823  ;;  %v2355_v60 = vsel %vm2046_vm2, %v2352_v24, %v2354_v38  ;;  %8859 = vst [vmem:[#allocation24_spill] sm:$0xff] %v6338_v4  ;;  %v684_v24 = vshll.u32 %v6307_v53, 16  ;;  %v1781_v57 = vmul.bf16 0, %v6222_v28  ;;  %v1782_v18 = vmul.bf16 %v6238_v44, %v6033_v54 }
  0xaf   : > { %v1738_v5 = vrot.slane %v6324_v30, 7  ;;  %v844_v0 = vrot.slane %v836_v58, %v6185_v16  ;;  %v832_v13 = vrot.slane %v824_v50, %v6185_v16  ;;  %5499 = vmatmul.mubr.msk.bf16.vlgmr.msra.gmra.mrb[0].mxu1 %vm2384_vm3, %v2355_v60  ;;  %v561_v53 = vmul.f32 0.1, %v497_v29 }
  0xb0   : > { %v2185_v39 = vrot.slane %v1814_v1, 1  ;;  %v2186_v1 = vrot.slane %v1815_v55, 1  ;;  %v6374_v21 = vrot.slane %v1781_v57, 1  ;;  %v2048_v37 = vrot.slane %v1782_v18, 1 }
  0xb1   : > { %v6355_v30 = vsel %vm769_vm7, %v1736_v35, %v1738_v5  ;;  %v6357_v60 = vcombine.low %v832_v13, %v844_v0  ;;  %v498_v34 = vadd.f32 %v5921_v31, %v459_v6  ;;  %v8730_v18 = vunpack.c.l.bf16 %v6372_v26 }
  0xb2   : > { %8860 = vst [vmem:[#allocation25_spill] sm:$0xff] %v6355_v30  ;;  %v1380_v43 = vpop.permute.xlu1 %1379  ;;  %v1368_v58 = vpop.permute.xlu0 %1367  ;;  %v1850_v50 = vmul.bf16 %v6355_v30, %v6106_v62  ;;  %8863 = vst [vmem:[#allocation28_spill] sm:$0xff] %v6374_v21  ;;  %v2187_v6 = vsel %vm2046_vm2, %v2185_v39, %v2186_v1 }
  0xb3   : > { %8861 = vst [vmem:[#allocation26_spill] sm:$0xff] %v6357_v60  ;;  %v1388_v48 = vrot.slane %v1380_v43, %v6185_v16  ;;  %v1376_v35 = vrot.slane %v1368_v58, %v6185_v16  ;;  %v1833_v13 = vmul.bf16 %v6357_v60, %v6076_v40  ;;  %v1800_v0 = vmul.bf16 %v6357_v60, %v6049_v3 }
  0xb4   : > { %v2356_v22 = vrot.slane %v1850_v50, 1  ;;  %v6380_v43 = vrot.slane %v681_v61, 7  ;;  %v592_v58 = vsel %vm528_vm8, %v6289_v19, %v560_v51  ;;  %v8734_v50 = vunpack.c.h.bf16 %v6372_v26 }
  0xb5   : > { %v6376_v42 = vcombine.low %v1376_v35, %v1388_v48  ;;  %2270 = vrot.lane.b32.xlu0 %v1833_v13, %s5728_s21  ;;  %2132 = vrot.lane.b32.xlu1 %v1800_v0, %s5726_s13  ;;  %v593_v48 = vsel %vm529_vm9, %v497_v29, %v561_v53  ;;  %v2188_v35 = vrot.slane %v1816_v36, 1  ;;  %v2050_v19 = vrot.slane %v1783_v27, 1 }
  0xb6   : > { %v6386_v10 = vpop.permute.xlu1 %859  ;;  %v6388_v55 = vpop.permute.xlu0 %847  ;;  %v2357_v57 = vsel %vm2046_vm2, %v2354_v38, %v2356_v22  ;;  %v499_v51 = vadd.f32 %v5921_v31, %v460_v14  ;;  %v2049_v38 = vsel %vm2046_vm2, %v6374_v21, %v2048_v37  ;;  %v1817_v29 = vmul.bf16 %v6355_v30, %v6076_v40 }
  0xb7   : > { %v1740_v61 = vrot.slane %v6376_v42, 7  ;;  %5502 = vmatprep.mubr.msk.bf16.mxu1 %vm2384_vm3, %v2357_v57  ;;  %v1784_v53 = vmul.bf16 %v6355_v30, %v6049_v3  ;;  %v6410_v27 = vor.u32 %v684_v24, %v6380_v43  ;;  %v6412_v36 = vpack.c.bf16 %v593_v48, %v592_v58 }
  0xb8   : > { %vm530_vm11 = vcmp.gt.f32.partialorder %v498_v34, 0.0  ;;  %v562_v0 = vmul.f32 0.1, %v498_v34  ;;  %v462_v57 = vmul.f32 %v8734_v50, %v5899_v23  ;;  %v2189_v48 = vsel %vm2046_vm2, %v2186_v1, %v2188_v35 }
  0xb9   : > { %v6405_v42 = vsel %vm769_vm7, %v1738_v5, %v1740_v61  ;;  %2218 = vrot.lane.b32.xlu0 %v2187_v6, %s5725_s10  ;;  %2080 = vrot.lane.b32.xlu1 %v2049_v38, %s5728_s21  ;;  %v461_v5 = vmul.f32 %v8730_v18, %v5899_v23  ;;  %v6423_v6 = vld [vmem:[%s5877_s26 + $0x58] sm:$0xff]   ;;  %v2051_v38 = vsel %vm2046_vm2, %v2048_v37, %v2050_v19  ;;  %v2190_v15 = vrot.slane %v1817_v29, 1 }
  0xba   : > { %8864 = vst [vmem:[#allocation29_spill] sm:$0xff] %v6405_v42  ;;  %v1404_v39 = vpop.permute.xlu1 %1403  ;;  %v1392_v14 = vpop.permute.xlu0 %1391  ;;  %v1851_v13 = vmul.bf16 %v6405_v42, %v6304_v41  ;;  %8865 = vst [vmem:[#allocation30_spill] sm:$0xff] %v6423_v6  ;;  %v6429_v11 = vrot.slane %v1784_v53, 1  ;;  %v1818_v18 = vmul.bf16 %v6405_v42, %v6106_v62  ;;  %vm531_vm12 = vcmp.gt.f32.partialorder %v499_v51, 0.0 }
  0xbb   : > { %v1412_v24 = vrot.slane %v1404_v39, %v6185_v16  ;;  %v1400_v58 = vrot.slane %v1392_v14, %v6185_v16  ;;  %v563_v23 = vmul.f32 0.1, %v499_v51  ;;  %v8733_v39 = vunpack.c.l.bf16 %v6423_v6 }
  0xbc   : > { %v2358_v46 = vrot.slane %v1851_v13, 1  ;;  %v594_v53 = vsel %vm530_vm11, %v498_v34, %v562_v0  ;;  %v500_v14 = vadd.f32 %v5921_v31, %v461_v5  ;;  %v501_v13 = vadd.f32 %v5921_v31, %v462_v57  ;;  %v329_v5 = vld [vmem:[%s8692_s1 + $0x60] sm:$0xf] }
  0xbd   : > { %v6433_v25 = vcombine.low %v1400_v58, %v1412_v24  ;;  %2220 = vrot.lane.b32.xlu0 %v2189_v48, %s5725_s10  ;;  %2082 = vrot.lane.b32.xlu1 %v2051_v38, %s5728_s21  ;;  %v868_v24 = vrot.slane %v6386_v10, %v6185_v16  ;;  %v856_v58 = vrot.slane %v6388_v55, %v6185_v16  ;;  %v6456_v0 = vrot.slane %v1818_v18, 1 }
  0xbe   : > { %v6438_v1 = vpop.permute.xlu1 %883  ;;  %v6440_v37 = vpop.permute.xlu0 %871  ;;  %v2359_v29 = vsel %vm2046_vm2, %v2356_v22, %v2358_v46  ;;  %v2191_v22 = vsel %vm2046_vm2, %v2188_v35, %v2190_v15  ;;  %v2053_v34 = vsel %vm2046_vm2, %v2050_v19, %v6429_v11  ;;  %v1785_v31 = vmul.bf16 %v6405_v42, %v6076_v40  ;;  %v6470_v35 = vld [vmem:[%s8693_s2] ss:$0 sm:$0xff] }
  0xbf   : > { %v1742_v48 = vrot.slane %v6433_v25, 7  ;;  %5503 = vmatmul.mubr.msk.bf16.gmra.mrb[4].mxu1 %vm2384_vm3, %v2359_v29  ;;  %v689_v25 = vshrl.u32 %v6412_v36, 16  ;;  %v595_v55 = vsel %vm531_vm12, %v499_v51, %v563_v23  ;;  %v463_v18 = vmul.f32 %v6470_v35, %v8733_v39 }
  0xc0   : > { %vm532_vm14 = vcmp.gt.f32.partialorder %v500_v14, 0.0  ;;  %vm533_vm15 = vcmp.gt.f32.partialorder %v501_v13, 0.0  ;;  %v564_v51 = vmul.f32 0.1, %v500_v14  ;;  %v6480_v23 = vcombine.low %v856_v58, %v868_v24 }
  0xc1   : > { %v6461_v10 = vsel %vm769_vm7, %v1740_v61, %v1742_v48  ;;  %2222 = vrot.lane.b32.xlu0 %v2191_v22, %s5725_s10  ;;  %2084 = vrot.lane.b32.xlu1 %v2053_v34, %s5728_s21  ;;  %v565_v34 = vmul.f32 0.1, %v501_v13  ;;  %v2193_v39 = vsel %vm2046_vm2, %v2190_v15, %v6456_v0  ;;  %v6486_v38 = vrot.slane %v1785_v31, 1 }
  0xc2   : > { %8866 = vst [vmem:[#allocation31_spill] sm:$0xff] %v6461_v10  ;;  %v1428_v19 = vpop.permute.xlu1 %1427  ;;  %v1416_v61 = vpop.permute.xlu0 %1415  ;;  %v1852_v57 = vmul.bf16 %v6461_v10, %v6338_v4  ;;  %v8867_v26 = vunpack.c.h.bf16 %v6423_v6  ;;  %v6495_v24 = vsel %vm624_vm6, %v6270_v2, %v6410_v27  ;;  %v8868_v58 = vshrl.u32 %v6106_v62, 16 }
  0xc3   : > { %v1436_v29 = vrot.slane %v1428_v19, %v6185_v16  ;;  %v1424_v22 = vrot.slane %v1416_v61, %v6185_v16  ;;  %v8869_v31 = vshll.u32 %v6304_v41, 16  ;;  %v617_v2 = vpack.c.bf16 %v595_v55, %v594_v53  ;;  %v5040_v55 = vld [vmem:[%s8692_s1 + $0xf0] sm:$0xf] }
  0xc4   : > { %v2360_v50 = vrot.slane %v1852_v57, 1  ;;  %v464_v49 = vmul.f32 %v6470_v35, %v8867_v26  ;;  %v1911_v15 = vor.u32 %v8868_v58, %v6121_v8  ;;  %v692_v57 = vshll.u32 %v6412_v36, 16  ;;  %v6523_v36 = vld [vmem:[%s8694_s3] ss:$0 sm:$0xff] }
  0xc5   : > { %v5068_v32 = vcombine.low %v1424_v22, %v1436_v29  ;;  %2224 = vrot.lane.b32.xlu0 %v2193_v39, %s5725_s10  ;;  %1063 = vperm.xlu1 %5617, %v329_v5   ;;  %v6502_v19 = vrot.slane %v8869_v31, 1  ;;  %v6509_v5 = vrot.slane %v689_v25, 7  ;;  %v1834_v8 = vmul.bf16 %v6480_v23, %v6106_v62 }
  0xc6   : > { %v6504_v61 = vpop.permute.xlu1 %907  ;;  %v6506_v26 = vpop.permute.xlu0 %895  ;;  %v2361_v39 = vsel %vm2046_vm2, %v2358_v46, %v2360_v50  ;;  %v596_v29 = vsel %vm532_vm14, %v500_v14, %v564_v51  ;;  %v597_v22 = vsel %vm533_vm15, %v501_v13, %v565_v34  ;;  %v2055_v46 = vsel %vm2046_vm2, %v6429_v11, %v6486_v38  ;;  %v330_v11 = vld [vmem:[%s8692_s1 + $0x64] sm:$0xf] }
  0xc7   : > { %v1744_v27 = vrot.slane %v5068_v32, 7  ;;  %5506 = vmatprep.mubr.msk.bf16.mxu1 %vm2384_vm3, %v2361_v39  ;;  %v502_v32 = vadd.f32 %v6523_v36, %v463_v18  ;;  %v503_v53 = vadd.f32 %v6523_v36, %v464_v49  ;;  %v697_v18 = vshrl.u32 %v617_v2, 16  ;;  %v6543_v51 = vld [vmem:[%s5877_s26 + $0x60] sm:$0xff]  }
  0xc8   : > { %8871 = vst [vmem:[#allocation33_spill] sm:$0xff] %v6543_v51  ;;  %v6549_v31 = vsel %vm1864_vm13, %v1911_v15, %v6502_v19  ;;  %v694_v39 = vor.u32 %v692_v57, %v6509_v5  ;;  %v700_v57 = vshll.u32 %v617_v2, 16  ;;  %vm2433_vm14 = vcmask 523264  }
  0xc9   : > { %v6528_v25 = vsel %vm769_vm7, %v1742_v48, %v1744_v27  ;;  %2272 = vrot.lane.b32.xlu0 %v1834_v8, %s5728_s21  ;;  %2086 = vrot.lane.b32.xlu1 %v2055_v46, %s5728_s21  ;;  %v6540_v48 = vpack.c.bf16 %v597_v22, %v596_v29  ;;  %8872 = vst [vmem:[#allocation34_spill] sm:$0xff] %v6549_v31  ;;  %vm534_vm0 = vcmp.gt.f32.partialorder %v502_v32, 0.0  ;;  %v566_v46 = vmul.f32 0.1, %v502_v32 }
  0xca   : > { %8870 = vst [vmem:[#allocation32_spill] sm:$0xff] %v6528_v25  ;;  %v1452_v14 = vpop.permute.xlu1 %1451  ;;  %v1440_v13 = vpop.permute.xlu0 %1439  ;;  %v1853_v49 = vmul.bf16 %v6528_v25, %v6495_v24  ;;  %v567_v6 = vmul.f32 0.1, %v503_v53  ;;  %vm535_vm1 = vcmp.gt.f32.partialorder %v503_v53, 0.0  ;;  %v8750_v29 = vunpack.c.l.bf16 %v6543_v51 }
  0xcb   : > { %v1460_v34 = vrot.slane %v1452_v14, %v6185_v16  ;;  %v1448_v58 = vrot.slane %v1440_v13, %v6185_v16  ;;  %v8749_v22 = vunpack.c.h.bf16 %v6543_v51  ;;  %v6559_v17 = vrot.slane %v697_v18, 7 }
  0xcc   : > { %v2362_v8 = vrot.slane %v1853_v49, 1  ;;  %v705_v49 = vshrl.u32 %v6540_v48, 16  ;;  %v599_v18 = vsel %vm535_vm1, %v503_v53, %v567_v6  ;;  %v5041_v6 = vld [vmem:[%s8692_s1 + $0xf4] sm:$0xf]  ;;  %vm2466_vm15 = vcmask 785408  }
  0xcd   : > { %v5069_v20 = vcombine.low %v1448_v58, %v1460_v34  ;;  %1075 = vperm.xlu0 %5616, %v330_v11   ;;  %1607 = vperm.xlu1 %5617, %v5040_v55   ;;  %v1801_v11 = vmul.bf16 %v6480_v23, %v6076_v40  ;;  %v6567_v55 = vsel %vm624_vm6, %v6380_v43, %v694_v39 }
  0xce   : > { %v6554_v14 = vpop.permute.xlu1 %931  ;;  %v6556_v13 = vpop.permute.xlu0 %919  ;;  %v2363_v15 = vsel %vm2046_vm2, %v2360_v50, %v2362_v8  ;;  %v1819_v34 = vmul.bf16 %v6461_v10, %v6304_v41  ;;  %v598_v50 = vsel %vm534_vm0, %v502_v32, %v566_v46  ;;  %v466_v43 = vmul.f32 %v6470_v35, %v8749_v22 }
  0xcf   : > { %v1746_v42 = vrot.slane %v5069_v20, 7  ;;  %5507 = vmatmul.mubr.msk.bf16.gmra.mrb[8].mxu1 %vm2384_vm3, %v2363_v15  ;;  %v465_v20 = vmul.f32 %v6470_v35, %v8750_v29  ;;  %v702_v32 = vor.u32 %v700_v57, %v6559_v17  ;;  %v6590_v53 = vrot.slane %v705_v49, 7 }
  0xd0   : > { %v708_v46 = vshll.u32 %v6540_v48, 16  ;;  %v892_v15 = vrot.slane %v6438_v1, %v6185_v16  ;;  %v6599_v30 = vrot.slane %v1819_v34, 1  ;;  %v1786_v57 = vmul.bf16 %v6461_v10, %v6106_v62 }
  0xd1   : > { %v6573_v2 = vsel %vm769_vm7, %v1744_v27, %v1746_v42  ;;  %2308 = vrot.lane.b32.xlu0 %v6549_v31, %s5726_s13  ;;  %2134 = vrot.lane.b32.xlu1 %v1801_v11, %s5726_s13  ;;  %v880_v11 = vrot.slane %v6440_v37, %v6185_v16  ;;  %v619_v49 = vpack.c.bf16 %v599_v18, %v598_v50  ;;  %v1917_v18 = vshrl.u32 %v6304_v41, 16 }
  0xd2   : > { %8873 = vst [vmem:[#allocation35_spill] sm:$0xff] %v6573_v2  ;;  %v1476_v58 = vpop.permute.xlu1 %1475  ;;  %v1464_v39 = vpop.permute.xlu0 %1463  ;;  %v1854_v27 = vmul.bf16 %v6573_v2, %v6567_v55  ;;  %v504_v1 = vadd.f32 %v6523_v36, %v465_v20  ;;  %v505_v37 = vadd.f32 %v6523_v36, %v466_v43  ;;  %v6624_v20 = vld [vmem:[%s5877_s26 + $0x68] sm:$0xff]   ;;  %v6629_v43 = vrot.slane %v1786_v57, 1 }
  0xd3   : > { %v1484_v22 = vrot.slane %v1476_v58, %v6185_v16  ;;  %v1472_v29 = vrot.slane %v1464_v39, %v6185_v16  ;;  %v331_v39 = vld [vmem:[%s8692_s1 + $0x68] sm:$0xf]  ;;  %v6615_v50 = vcombine.low %v880_v11, %v892_v15  ;;  %8876 = vst [vmem:[#allocation38_spill] sm:$0xff] %v6624_v20  ;;  %v1919_v28 = vor.u32 %v1917_v18, %v6502_v19  ;;  %v332_v19 = vld [vmem:[%s8692_s1 + $0x6c] sm:$0xf] }
  0xd4   : > { %v2364_v51 = vrot.slane %v1854_v27, 1  ;;  %v569_v15 = vmul.f32 0.1, %v505_v37  ;;  %vm536_vm4 = vcmp.gt.f32.partialorder %v504_v1, 0.0  ;;  %vm537_vm5 = vcmp.gt.f32.partialorder %v505_v37, 0.0 }
  0xd5   : > { %v5070_v63 = vcombine.low %v1472_v29, %v1484_v22  ;;  %1619 = vperm.xlu0 %5616, %v5041_v6   ;;  %2005 = vrot.lane.b32.xlu1 %v6127_v9, %s5725_s10  ;;  %8874 = vst [vmem:[#allocation36_spill] sm:$0xff] %v6615_v50  ;;  %v6620_v22 = vsel %vm624_vm6, %v6509_v5, %v702_v32  ;;  %v1921_v6 = vshll.u32 %v6338_v4, 16  ;;  %v713_v5 = vshrl.u32 %v619_v49, 16  ;;  %v5042_v18 = vld [vmem:[%s8692_s1 + $0xf8] sm:$0xf] }
  0xd6   : > { %v6607_v48 = vpop.permute.xlu1 %955  ;;  %v6609_v58 = vpop.permute.xlu0 %943  ;;  %v2365_v34 = vsel %vm2046_vm2, %v2362_v8, %v2364_v51  ;;  %8875 = vst [vmem:[#allocation37_spill] sm:$0xff] %v6620_v22  ;;  %v2195_v8 = vsel %vm2046_vm2, %v6456_v0, %v6599_v30  ;;  %v568_v32 = vmul.f32 0.1, %v504_v1 }
  0xd7   : > { %v1748_v29 = vrot.slane %v5070_v63, 7  ;;  %5510 = vmatprep.mubr.msk.bf16.mxu1 %vm2384_vm3, %v2365_v34  ;;  %v710_v63 = vor.u32 %v708_v46, %v6590_v53  ;;  %v6649_v44 = vrot.slane %v1921_v6, 1  ;;  %v601_v6 = vsel %vm537_vm5, %v505_v37, %v569_v15 }
  0xd8   : > { %v600_v10 = vsel %vm536_vm4, %v504_v1, %v568_v32 }
  0xd9   : > { %v6634_v27 = vsel %vm769_vm7, %v1746_v42, %v1748_v29  ;;  %2226 = vrot.lane.b32.xlu0 %v2195_v8, %s5725_s10  ;;  %1087 = vperm.xlu1 %5617, %v331_v39   ;;  %v1835_v39 = vmul.bf16 %v6615_v50, %v6304_v41  ;;  %v2057_v8 = vsel %vm2046_vm2, %v6486_v38, %v6629_v43 }
  0xda   : > { %8877 = vst [vmem:[#allocation39_spill] sm:$0xff] %v6634_v27  ;;  %v1500_v11 = vpop.permute.xlu1 %1499  ;;  %v1488_v34 = vpop.permute.xlu0 %1487  ;;  %v1855_v0 = vmul.bf16 %v6634_v27, %v6620_v22  ;;  %v620_v15 = vpack.c.bf16 %v601_v6, %v600_v10  ;;  %v1802_v10 = vmul.bf16 %v6615_v50, %v6106_v62 }
  0xdb   : > { %v1508_v46 = vrot.slane %v1500_v11, %v6185_v16  ;;  %v1496_v42 = vrot.slane %v1488_v34, %v6185_v16  ;;  %v6653_v11 = vrot.slane %v713_v5, 7  ;;  %v716_v34 = vshll.u32 %v619_v49, 16 }
  0xdc   : > { %v2366_v21 = vrot.slane %v1855_v0, 1  ;;  %v8878_v49 = vunpack.c.l.bf16 %v6624_v20  ;;  %v8879_v5 = vunpack.c.h.bf16 %v6624_v20  ;;  %v1787_v20 = vmul.bf16 %v6528_v25, %v6304_v41 }
  0xdd   : > { %v5071_v57 = vcombine.low %v1496_v42, %v1508_v46  ;;  %2274 = vrot.lane.b32.xlu0 %v1835_v39, %s5728_s21  ;;  %2088 = vrot.lane.b32.xlu1 %v2057_v8, %s5728_s21  ;;  %v718_v37 = vor.u32 %v716_v34, %v6653_v11  ;;  %v6696_v34 = vld [vmem:[%s5877_s26 + $0x70] sm:$0xff]  }
  0xde   : > { %v6656_v7 = vpop.permute.xlu1 %979  ;;  %v6658_v47 = vpop.permute.xlu0 %967  ;;  %v2367_v38 = vsel %vm2046_vm2, %v2364_v51, %v2366_v21  ;;  %v467_v1 = vmul.f32 %v6470_v35, %v8878_v49  ;;  %v468_v32 = vmul.f32 %v6470_v35, %v8879_v5  ;;  %v6677_v51 = vsel %vm624_vm6, %v6559_v17, %v710_v63  ;;  %8882 = vst [vmem:[#allocation42_spill] sm:$0xff] %v6696_v34 }
  0xdf   : > { %v1750_v0 = vrot.slane %v5071_v57, 7  ;;  %5511 = vmatmul.mubr.msk.bf16.gmra.mrb[12].mxu1 %vm2384_vm3, %v2367_v38  ;;  %v6685_v57 = vsel %vm1864_vm13, %v1919_v28, %v6649_v44  ;;  %v1820_v28 = vmul.bf16 %v6528_v25, %v6338_v4  ;;  %v6707_v6 = vsel %vm624_vm6, %v6590_v53, %v718_v37 }
  0xe0   : > { %8881 = vst [vmem:[#allocation41_spill] sm:$0xff] %v6685_v57  ;;  %v506_v17 = vadd.f32 %v6523_v36, %v467_v1  ;;  %v507_v63 = vadd.f32 %v6523_v36, %v468_v32  ;;  %v721_v49 = vshrl.u32 %v620_v15, 16  ;;  %v904_v53 = vrot.slane %v6506_v26, %v6185_v16 }
  0xe1   : > { %v6680_v46 = vsel %vm769_vm7, %v1748_v29, %v1750_v0  ;;  %1099 = vperm.xlu0 %5616, %v332_v19   ;;  %1631 = vperm.xlu1 %5617, %v5042_v18   ;;  %v724_v26 = vshll.u32 %v620_v15, 16  ;;  %v8886_v15 = vunpack.c.h.bf16 %v6696_v34  ;;  %v6756_v9 = vrot.slane %v1787_v20, 1 }
  0xe2   : > { %8880 = vst [vmem:[#allocation40_spill] sm:$0xff] %v6680_v46  ;;  %v1524_v42 = vpop.permute.xlu1 %1523  ;;  %v1512_v39 = vpop.permute.xlu0 %1511  ;;  %v1856_v8 = vmul.bf16 %v6680_v46, %v6677_v51  ;;  %vm538_vm8 = vcmp.gt.f32.partialorder %v506_v17, 0.0  ;;  %vm539_vm9 = vcmp.gt.f32.partialorder %v507_v63, 0.0 }
  0xe3   : > { %v1532_v29 = vrot.slane %v1524_v42, %v6185_v16  ;;  %v1520_v38 = vrot.slane %v1512_v39, %v6185_v16  ;;  %v5043_v42 = vld [vmem:[%s8692_s1 + $0xfc] sm:$0xf]  ;;  %v570_v39 = vmul.f32 0.1, %v506_v17 }
  0xe4   : > { %v2368_v19 = vrot.slane %v1856_v8, 1  ;;  %v571_v8 = vmul.f32 0.1, %v507_v63 }
  0xe5   : > { %v6700_v18 = vcombine.low %v1520_v38, %v1532_v29  ;;  %2310 = vrot.lane.b32.xlu0 %v6685_v57, %s5726_s13  ;;  %2136 = vrot.lane.b32.xlu1 %v1802_v10, %s5726_s13  ;;  %v916_v38 = vrot.slane %v6504_v61, %v6185_v16  ;;  %v6725_v10 = vrot.slane %v1820_v28, 1  ;;  %v6734_v61 = vrot.slane %v721_v49, 7  ;;  %v333_v28 = vld [vmem:[%s8692_s1 + $0x70] sm:$0xf] }
  0xe6   : > { %v6709_v1 = vpop.permute.xlu0 %1003  ;;  %v6711_v5 = vpop.permute.xlu1 %1997  ;;  %v2369_v32 = vsel %vm2046_vm2, %v2366_v21, %v2368_v19  ;;  %v602_v49 = vsel %vm538_vm8, %v506_v17, %v570_v39  ;;  %v603_v62 = vsel %vm539_vm9, %v507_v63, %v571_v8  ;;  %v1929_v8 = vshll.u32 %v6495_v24, 16 }
  0xe7   : > { %v1752_v37 = vrot.slane %v6700_v18, 7  ;;  %5514 = vmatprep.mubr.msk.bf16.mxu1 %vm2384_vm3, %v2369_v32  ;;  %v6748_v25 = vcombine.low %v904_v53, %v916_v38  ;;  %v2197_v50 = vsel %vm2046_vm2, %v6599_v30, %v6725_v10  ;;  %v726_v38 = vor.u32 %v724_v26, %v6734_v61 }
  0xe8   : > { %v621_v53 = vpack.c.bf16 %v603_v62, %v602_v49 }
  0xe9   : > { %v6730_v29 = vsel %vm769_vm7, %v1750_v0, %v1752_v37  ;;  %1643 = vperm.xlu0 %5616, %v5043_v42   ;;  %2007 = vrot.lane.b32.xlu1 %v6549_v31, %s5725_s10  ;;  %v8884_v0 = vunpack.c.l.bf16 %v6696_v34  ;;  %8885 = vst [vmem:[#allocation44_spill] sm:$0xff] %v6748_v25  ;;  %v470_v31 = vmul.f32 %v6470_v35, %v8886_v15 }
  0xea   : > { %8883 = vst [vmem:[#allocation43_spill] sm:$0xff] %v6730_v29  ;;  %v6736_v18 = vpop.permute.xlu0 %2302  ;;  %v6738_v32 = vpop.permute.xlu1 %991  ;;  %v1857_v21 = vmul.bf16 %v6730_v29, %v6707_v6 }
  0xeb   : > { %v469_v42 = vmul.f32 %v6470_v35, %v8884_v0  ;;  %v1925_v0 = vshrl.u32 %v6338_v4, 16 }
  0xec   : > { %v2370_v40 = vrot.slane %v1857_v21, 1  ;;  %v509_v21 = vadd.f32 %v6523_v36, %v470_v31  ;;  %v1931_v31 = vrot.slane %v1929_v8, 1 }
  0xed   : > { %2228 = vrot.lane.b32.xlu0 %v2197_v50, %s5725_s10  ;;  %1111 = vperm.xlu1 %5617, %v333_v28   ;;  %v508_v15 = vadd.f32 %v6523_v36, %v469_v42  ;;  %v1836_v50 = vmul.bf16 %v6748_v25, %v6338_v4  ;;  %v334_v42 = vld [vmem:[%s8692_s1 + $0x74] sm:$0xf]  ;;  %v1927_v49 = vor.u32 %v1925_v0, %v6649_v44 }
  0xee   : > { %v1548_v17 = vpop.permute.xlu0 %1547  ;;  %v1536_v63 = vpop.permute.xlu1 %1535  ;;  %v2371_v39 = vsel %vm2046_vm2, %v2368_v19, %v2370_v40  ;;  %v2059_v19 = vsel %vm2046_vm2, %v6629_v43, %v6756_v9  ;;  %v729_v43 = vshrl.u32 %v621_v53, 16  ;;  %vm541_vm12 = vcmp.gt.f32.partialorder %v509_v21, 0.0 }
  0xef   : > { %v1556_v30 = vrot.slane %v1548_v17, %v6185_v16  ;;  %v1544_v20 = vrot.slane %v1536_v63, %v6185_v16  ;;  %5515 = vmatmul.mubr.msk.bf16.gmra.mrb[16].mxu1 %vm2384_vm3, %v2371_v39  ;;  %v6785_v17 = vsel %vm624_vm6, %v6653_v11, %v726_v38  ;;  %v1803_v39 = vmul.bf16 %v6748_v25, %v6304_v41 }
  0xf0   : > { %vm540_vm11 = vcmp.gt.f32.partialorder %v508_v15, 0.0  ;;  %v6800_v0 = vsel %vm1864_vm13, %v1927_v49, %v1931_v31  ;;  %v6804_v8 = vrot.slane %v729_v43, 7  ;;  %v1788_v49 = vmul.bf16 %v6573_v2, %v6338_v4 }
  0xf1   : > { %v5073_v26 = vcombine.low %v1544_v20, %v1556_v30  ;;  %2276 = vrot.lane.b32.xlu0 %v1836_v50, %s5728_s21  ;;  %2090 = vrot.lane.b32.xlu1 %v2059_v19, %s5728_s21  ;;  %v572_v30 = vmul.f32 0.1, %v508_v15  ;;  %v573_v20 = vmul.f32 0.1, %v509_v21  ;;  %v1821_v50 = vmul.bf16 %v6573_v2, %v6495_v24 }
  0xf2   : > { %v6775_v62 = vpop.permute.xlu0 %1027  ;;  %v6777_v28 = vpop.permute.xlu1 %1999 }
  0xf3   : > { %v1754_v63 = vrot.slane %v5073_v26, 7  ;;  %v732_v26 = vshll.u32 %v621_v53, 16  ;;  %v605_v34 = vsel %vm541_vm12, %v509_v21, %v573_v20  ;;  %v6810_v25 = vrot.slane %v1821_v50, 1 }
  0xf5   : > { %v6792_v19 = vsel %vm769_vm7, %v1752_v37, %v1754_v63  ;;  %1123 = vperm.xlu0 %5616, %v334_v42   ;;  %2138 = vrot.lane.b32.xlu1 %v1803_v39, %s5726_s13  ;;  %v940_v37 = vrot.slane %v6554_v14, %v6185_v16  ;;  %v928_v42 = vrot.slane %v6556_v13, %v6185_v16  ;;  %v335_v13 = vld [vmem:[%s8692_s1 + $0x78] sm:$0xf] }
  0xf6   : > { %8887 = vst [vmem:[#allocation45_spill] sm:$0xff] %v6792_v19  ;;  %v6795_v44 = vpop.permute.xlu0 %2304  ;;  %v6797_v11 = vpop.permute.xlu1 %1015  ;;  %v1858_v38 = vmul.bf16 %v6792_v19, %v6785_v17  ;;  %v604_v39 = vsel %vm540_vm11, %v508_v15, %v572_v30  ;;  %v734_v50 = vor.u32 %v732_v26, %v6804_v8 }
  0xf7   : > { %v622_v15 = vpack.c.bf16 %v605_v34, %v604_v39  ;;  %v6822_v21 = vcombine.low %v928_v42, %v940_v37  ;;  %v1933_v34 = vshrl.u32 %v6495_v24, 16  ;;  %v1937_v39 = vshll.u32 %v6567_v55, 16 }
  0xf8   : > { %v2372_v41 = vrot.slane %v1858_v38, 1  ;;  %v2199_v38 = vsel %vm2046_vm2, %v6725_v10, %v6810_v25  ;;  %v6842_v10 = vsel %vm624_vm6, %v6734_v61, %v734_v50  ;;  %v336_v61 = vld [vmem:[%s8692_s1 + $0x7c] sm:$0xf] }
  0xf9   : > { %2312 = vrot.lane.b32.xlu0 %v6800_v0, %s5726_s13  ;;  %2009 = vrot.lane.b32.xlu1 %v6685_v57, %s5725_s10  ;;  %8888 = vst [vmem:[#allocation46_spill] sm:$0xff] %v6822_v21  ;;  %v1837_v26 = vmul.bf16 %v6822_v21, %v6495_v24 }
  0xfa   : > { %v1572_v53 = vpop.permute.xlu0 %1571  ;;  %v1560_v43 = vpop.permute.xlu1 %1559  ;;  %v2373_v14 = vsel %vm2046_vm2, %v2370_v40, %v2372_v41  ;;  %v2060_v40 = vrot.slane %v1788_v49, 1 }
  0xfb   : > { %v1580_v30 = vrot.slane %v1572_v53, %v6185_v16  ;;  %v1568_v20 = vrot.slane %v1560_v43, %v6185_v16  ;;  %5518 = vmatprep.mubr.msk.bf16.mxu1 %vm2384_vm3, %v2373_v14  ;;  %v737_v53 = vshrl.u32 %v622_v15, 16 }
  0xfc   : > { %v2061_v49 = vsel %vm2046_vm2, %v6756_v9, %v2060_v40  ;;  %v1939_v9 = vrot.slane %v1937_v39, 1 }
  0xfd   : > { %v5074_v2 = vcombine.low %v1568_v20, %v1580_v30  ;;  %2230 = vrot.lane.b32.xlu0 %v2199_v38, %s5725_s10  ;;  %1135 = vperm.xlu1 %5617, %v335_v13   ;;  %v1935_v13 = vor.u32 %v1933_v34, %v1931_v31  ;;  %v6860_v50 = vrot.slane %v737_v53, 7  ;;  %v1804_v38 = vmul.bf16 %v6822_v21, %v6338_v4 }
  0xfe   : > { %v6833_v37 = vpop.permute.xlu0 %1051  ;;  %v6835_v42 = vpop.permute.xlu1 %2001  ;;  %v1822_v31 = vmul.bf16 %v6634_v27, %v6567_v55  ;;  %v1789_v34 = vmul.bf16 %v6634_v27, %v6495_v24  ;;  %v952_v4 = vrot.slane %v6609_v58, %v6185_v16  ;;  %v1945_v58 = vshll.u32 %v6620_v22, 16 }
  0xff   : > { %v1756_v43 = vrot.slane %v5074_v2, 7  ;;  %v6871_v53 = vsel %vm1864_vm13, %v1935_v13, %v1939_v9 }
 0x100   : > { %v2062_v21 = vrot.slane %v1789_v34, 1 }
 0x101   : > { %v6847_v14 = vsel %vm769_vm7, %v1754_v63, %v1756_v43  ;;  %2278 = vrot.lane.b32.xlu0 %v1837_v26, %s5728_s21  ;;  %2092 = vrot.lane.b32.xlu1 %v2061_v49, %s5728_s21  ;;  %v740_v63 = vshll.u32 %v622_v15, 16 }
 0x102   : > { %v6851_v30 = vpop.permute.xlu0 %2306  ;;  %v6853_v2 = vpop.permute.xlu1 %1039  ;;  %v1859_v20 = vmul.bf16 %v6847_v14, %v6842_v10 }
 0x103   : > { %v742_v15 = vor.u32 %v740_v63, %v6860_v50 }
 0x104   : > { %v2374_v26 = vrot.slane %v1859_v20, 1  ;;  %v964_v20 = vrot.slane %v6607_v48, %v6185_v16  ;;  %v1941_v48 = vshrl.u32 %v6567_v55, 16 }
 0x105   : > { %1147 = vperm.xlu0 %5616, %v336_v61   ;;  %2140 = vrot.lane.b32.xlu1 %v1804_v38, %s5726_s13  ;;  %v2200_v38 = vrot.slane %v1822_v31, 1  ;;  %v6894_v63 = vsel %vm624_vm6, %v6804_v8, %v742_v15  ;;  %v2063_v31 = vsel %vm2046_vm2, %v2060_v40, %v2062_v21  ;;  %v1947_v8 = vrot.slane %v1945_v58, 1 }
 0x106   : > { %v1596_v49 = vpop.permute.xlu0 %1595  ;;  %v1584_v57 = vpop.permute.xlu1 %1583  ;;  %v2375_v39 = vsel %vm2046_vm2, %v2372_v41, %v2374_v26  ;;  %v6889_v13 = vcombine.low %v952_v4, %v964_v20  ;;  %v1790_v15 = vmul.bf16 %v6680_v46, %v6567_v55 }
 0x107   : > { %v1604_v27 = vrot.slane %v1596_v49, %v6185_v16  ;;  %v1592_v61 = vrot.slane %v1584_v57, %v6185_v16  ;;  %5519 = vmatmul.mubr.msk.bf16.gmra.mrb[20].mxu1 %vm2384_vm3, %v2375_v39  ;;  %v1943_v49 = vor.u32 %v1941_v48, %v1939_v9  ;;  %v976_v48 = vrot.slane %v6658_v47, %v6185_v16 }
 0x108   : > { %v1838_v39 = vmul.bf16 %v6889_v13, %v6567_v55 }
 0x109   : > { %v6881_v41 = vcombine.low %v1592_v61, %v1604_v27  ;;  %2314 = vrot.lane.b32.xlu0 %v6871_v53, %s5726_s13  ;;  %2011 = vrot.lane.b32.xlu1 %v6800_v0, %s5725_s10  ;;  %v2201_v27 = vsel %vm2046_vm2, %v6810_v25, %v2200_v38  ;;  %v1805_v25 = vmul.bf16 %v6889_v13, %v6495_v24 }
 0x10a   : > { %v6923_v20 = vsel %vm1864_vm13, %v1943_v49, %v1947_v8  ;;  %v988_v61 = vrot.slane %v6656_v7, %v6185_v16 }
 0x10b   : > { %v8791_v57 = vrot.slane %v6881_v41, 7 }
 0x10d   : > { %v6902_v34 = vsel %vm769_vm7, %v1756_v43, %v8791_v57  ;;  %2232 = vrot.lane.b32.xlu0 %v2201_v27, %s5725_s10  ;;  %2094 = vrot.lane.b32.xlu1 %v2063_v31, %s5728_s21  ;;  %v1823_v43 = vmul.bf16 %v6680_v46, %v6620_v22  ;;  %v2064_v27 = vrot.slane %v1790_v15, 1  ;;  %v1953_v31 = vshll.u32 %v6677_v51, 16 }
 0x10e   : > { %8889 = vst [vmem:[#allocation47_spill] sm:$0xff] %v6902_v34  ;;  %v1860_v4 = vmul.bf16 %v6902_v34, %v6894_v63 }
 0x10f   : > { %v2202_v58 = vrot.slane %v1823_v43, 1  ;;  %v2065_v47 = vsel %vm2046_vm2, %v2062_v21, %v2064_v27  ;;  %v1791_v21 = vmul.bf16 %v6730_v29, %v6620_v22 }
 0x110   : > { %v6912_v40 = vrot.slane %v1860_v4, 1  ;;  %v6936_v4 = vcombine.low %v976_v48, %v988_v61 }
 0x111   : > { %2280 = vrot.lane.b32.xlu0 %v1838_v39, %s5728_s21  ;;  %2142 = vrot.lane.b32.xlu1 %v1805_v25, %s5726_s13  ;;  %v2203_v7 = vsel %vm2046_vm2, %v2200_v38, %v2202_v58  ;;  %v1955_v39 = vrot.slane %v1953_v31, 1  ;;  %v6942_v25 = vpop.permute.xlu1 %2003  ;;  %v2066_v31 = vrot.slane %v1791_v21, 1 }
 0x112   : > { %v2377_v9 = vsel %vm2046_vm2, %v2374_v26, %v6912_v40  ;;  %v1949_v26 = vshrl.u32 %v6620_v22, 16  ;;  %8890 = vst [vmem:[#allocation48_spill] sm:$0xff] %v6936_v4  ;;  %v1839_v43 = vmul.bf16 %v6936_v4, %v6620_v22  ;;  %v1806_v15 = vmul.bf16 %v6936_v4, %v6567_v55 }
 0x113   : > { %5522 = vmatprep.mubr.msk.bf16.mxu1 %vm2384_vm3, %v2377_v9  ;;  %v1824_v9 = vmul.bf16 %v6730_v29, %v6677_v51  ;;  %v2067_v21 = vsel %vm2046_vm2, %v2064_v27, %v2066_v31  ;;  %v1792_v27 = vmul.bf16 %v6792_v19, %v6677_v51 }
 0x114   : > { %v1951_v49 = vor.u32 %v1949_v26, %v1947_v8  ;;  %v1000_v8 = vrot.slane %v6738_v32, %v6185_v16 }
 0x115   : > { %2316 = vrot.lane.b32.xlu0 %v6923_v20, %s5726_s13  ;;  %2013 = vrot.lane.b32.xlu1 %v6871_v53, %s5725_s10  ;;  %v2204_v26 = vrot.slane %v1824_v9, 1 }
 0x116   : > { %v6955_v38 = vsel %vm1864_vm13, %v1951_v49, %v1955_v39  ;;  %v1961_v49 = vshll.u32 %v6707_v6, 16 }
 0x117   : > { %v2267_v61 = vpop.permute.xlu0 %2266  ;;  %v2129_v48 = vpop.permute.xlu1 %2128  ;;  %v2205_v9 = vsel %vm2046_vm2, %v2202_v58, %v2204_v26  ;;  %v1825_v58 = vmul.bf16 %v6792_v19, %v6707_v6 }
 0x118   : > { %v1963_v57 = vrot.slane %v1961_v49, 1  ;;  %v1024_v49 = vrot.slane %v6797_v11, %v6185_v16 }
 0x119   : > { %2234 = vrot.lane.b32.xlu0 %v2203_v7, %s5725_s10  ;;  %2096 = vrot.lane.b32.xlu1 %v2065_v47, %s5728_s21  ;;  %v1012_v7 = vrot.slane %v6709_v1, %v6185_v16  ;;  %v1957_v47 = vshrl.u32 %v6677_v51, 16 }
 0x11b   : > { %v1959_v1 = vor.u32 %v1957_v47, %v1955_v39 }
 0x11d   : > { %2282 = vrot.lane.b32.xlu0 %v1839_v43, %s5728_s21  ;;  %2144 = vrot.lane.b32.xlu1 %v1806_v15, %s5726_s13  ;;  %v6967_v43 = vcombine.low %v1000_v8, %v1012_v7  ;;  %v6989_v39 = vsel %vm1864_vm13, %v1959_v1, %v1963_v57  ;;  %v1036_v1 = vrot.slane %v6775_v62, %v6185_v16 }
 0x11f   : > { %8891 = vst [vmem:[#allocation49_spill] sm:$0xff] %v6967_v43  ;;  %v2269_v32 = vpop.permute.xlu0 %2268  ;;  %v6969_v15 = vpop.permute.xlu1 %2130  ;;  %v1840_v8 = vmul.bf16 %v6967_v43, %v6677_v51  ;;  %v1807_v7 = vmul.bf16 %v6967_v43, %v6620_v22  ;;  %v2206_v22 = vrot.slane %v1825_v58, 1  ;;  %v2068_v43 = vrot.slane %v1792_v27, 1 }
 0x120   : > { %v7011_v58 = vcombine.low %v1024_v49, %v1036_v1 }
 0x121   : > { %2318 = vrot.lane.b32.xlu0 %v6955_v38, %s5726_s13  ;;  %2015 = vrot.lane.b32.xlu1 %v6923_v20, %s5725_s10 }
 0x122   : > { %v1808_v1 = vmul.bf16 %v7011_v58, %v6677_v51 }
 0x125   : > { %2236 = vrot.lane.b32.xlu0 %v2205_v9, %s5725_s10  ;;  %2098 = vrot.lane.b32.xlu1 %v2067_v21, %s5728_s21  ;;  %v8803_v9 = vmul.bf16 0, %v6234_v45 }
 0x127   : > { %v2271_v29 = vpop.permute.xlu0 %2270  ;;  %v6975_v46 = vpop.permute.xlu1 %2132  ;;  %v2387_v47 = vsel %vm2384_vm3, %v8803_v9, %v6711_v5 }
 0x129   : > { %2284 = vrot.lane.b32.xlu0 %v1840_v8, %s5728_s21  ;;  %2146 = vrot.lane.b32.xlu1 %v1807_v7, %s5726_s13 }
 0x12b   : > { %v2219_v21 = vpop.permute.xlu0 %2218  ;;  %v2081_v19 = vpop.permute.xlu1 %2080 }
 0x12c   : > { %v2517_v8 = vsel %vm2384_vm3, %v6094_v52, %v2219_v21  ;;  %v2435_v7 = vsel %vm2433_vm14, %v2387_v47, %v2081_v19  ;;  %v1965_v52 = vshrl.u32 %v6707_v6, 16  ;;  %v1969_v19 = vshll.u32 %v6785_v17, 16 }
 0x12d   : > { %2320 = vrot.lane.b32.xlu0 %v6989_v39, %s5726_s13  ;;  %2017 = vrot.lane.b32.xlu1 %v6955_v38, %s5725_s10  ;;  %v2564_v5 = vsel %vm2433_vm14, %v2517_v8, %v2267_v61  ;;  %v2468_v62 = vsel %vm2466_vm15, %v2435_v7, %v2129_v48  ;;  %v2207_v21 = vsel %vm2046_vm2, %v2204_v26, %v2206_v22  ;;  %v7019_v8 = vld [vmem:[%s5877_s26 + $0x78] sm:$0xff]  }
 0x12e   : > { %v2596_v11 = vsel %vm2466_vm15, %v2564_v5, %v6736_v18  ;;  %v2069_v61 = vsel %vm2046_vm2, %v2066_v31, %v2068_v43  ;;  %8892 = vst [vmem:[#allocation50_spill] sm:$0xff] %v7019_v8  ;;  %v1254_v18 = vmul.bf16 %v6294_v12, %v6033_v54  ;;  %v1967_v49 = vor.u32 %v1965_v52, %v1963_v57 }
 0x12f   : > { %2867 = vmatprep.mubr.bf16.mxu0 %v2596_v11  ;;  %v2221_v27 = vpop.permute.xlu0 %2220  ;;  %v2083_v5 = vpop.permute.xlu1 %2082  ;;  %v1971_v7 = vrot.slane %v1969_v19, 1  ;;  %v1841_v54 = vmul.bf16 %v7011_v58, %v6707_v6  ;;  %v8802_v11 = vunpack.c.l.bf16 %v7019_v8  ;;  %v1826_v57 = vmul.bf16 %v6847_v14, %v6785_v17 }
 0x130   : > { %v2520_v47 = vsel %vm2384_vm3, %v6069_v33, %v2221_v27  ;;  %2868 = vmatmul.mubr.bf16.vlgmr.msra.gmra.mrb[0].mxu0 %v2468_v62  ;;  %v2390_v26 = vsel %vm2384_vm3, %v1254_v18, %v6777_v28  ;;  %v1793_v28 = vmul.bf16 %v6847_v14, %v6707_v6  ;;  %v8801_v52 = vunpack.c.h.bf16 %v7019_v8 }
 0x131   : > { %2238 = vrot.lane.b32.xlu0 %v2207_v21, %s5725_s10  ;;  %2100 = vrot.lane.b32.xlu1 %v2069_v61, %s5728_s21  ;;  %v2566_v48 = vsel %vm2433_vm14, %v2520_v47, %v2269_v32  ;;  %v2437_v32 = vsel %vm2433_vm14, %v2390_v26, %v2083_v5  ;;  %v7046_v19 = vsel %vm1864_vm13, %v1967_v49, %v1971_v7  ;;  %v2208_v21 = vrot.slane %v1826_v57, 1 }
 0x132   : > { %v2599_v33 = vsel %vm2466_vm15, %v2566_v48, %v6795_v44  ;;  %v2471_v62 = vsel %vm2466_vm15, %v2437_v32, %v6969_v15  ;;  %v1255_v47 = vmul.bf16 %v6357_v60, %v6036_v56  ;;  %v2070_v61 = vrot.slane %v1793_v28, 1 }
 0x133   : > { %v2223_v31 = vpop.permute.xlu0 %2222  ;;  %2875 = vmatprep.mubr.bf16.mxu0 %v2599_v33  ;;  %v471_v18 = vmul.f32 %v6470_v35, %v8802_v11  ;;  %v1060_v5 = vrot.slane %v6833_v37, %v6185_v16  ;;  %v1973_v15 = vshrl.u32 %v6785_v17, 16  ;;  %v1977_v48 = vshll.u32 %v6842_v10, 16 }
 0x134   : > { %v2523_v44 = vsel %vm2384_vm3, %v6100_v59, %v2223_v31  ;;  %v1048_v59 = vrot.slane %v6853_v2, %v6185_v16  ;;  %v472_v2 = vmul.f32 %v6470_v35, %v8801_v52  ;;  %v2393_v37 = vsel %vm2384_vm3, %v1255_v47, %v6835_v42 }
 0x135   : > { %2286 = vrot.lane.b32.xlu0 %v1841_v54, %s5728_s21  ;;  %2148 = vrot.lane.b32.xlu1 %v1808_v1, %s5726_s13  ;;  %v2568_v27 = vsel %vm2433_vm14, %v2523_v44, %v2271_v29  ;;  %v2085_v29 = vpop.permute.xlu1 %2084  ;;  %v2209_v26 = vsel %vm2046_vm2, %v2206_v22, %v2208_v21  ;;  %v510_v35 = vadd.f32 %v6523_v36, %v471_v18  ;;  %v1979_v1 = vrot.slane %v1977_v48, 1 }
 0x136   : > { %v2602_v56 = vsel %vm2466_vm15, %v2568_v27, %v6851_v30  ;;  %v7073_v33 = vcombine.low %v1048_v59, %v1060_v5  ;;  %v2439_v49 = vsel %vm2433_vm14, %v2393_v37, %v2085_v29  ;;  %v2071_v30 = vsel %vm2046_vm2, %v2068_v43, %v2070_v61 }
 0x137   : > { %v511_v31 = vadd.f32 %v6523_v36, %v472_v2  ;;  %v1975_v54 = vor.u32 %v1973_v15, %v1971_v7  ;;  %v2474_v42 = vsel %vm2466_vm15, %v2439_v49, %v6975_v46  ;;  %v1827_v43 = vmul.bf16 %v6902_v34, %v6842_v10  ;;  %v2225_v46 = vpop.permute.xlu0 %2224 }
 0x138   : > { %2876 = vmatmul.mubr.bf16.gmra.mrb[4].mxu0 %v2471_v62  ;;  %v1842_v32 = vmul.bf16 %v7073_v33, %v6785_v17  ;;  %v1809_v22 = vmul.bf16 %v7073_v33, %v6707_v6  ;;  %v1794_v44 = vmul.bf16 %v6902_v34, %v6785_v17  ;;  %v574_v36 = vmul.f32 0.1, %v510_v35 }
 0x139   : > { %2322 = vrot.lane.b32.xlu0 %v7046_v19, %s5726_s13  ;;  %2019 = vrot.lane.b32.xlu1 %v6989_v39, %s5725_s10  ;;  %v575_v7 = vmul.f32 0.1, %v511_v31  ;;  %v7095_v57 = vsel %vm1864_vm13, %v1975_v54, %v1979_v1  ;;  %vm542_vm0 = vcmp.gt.f32.partialorder %v510_v35, 0.0  ;;  %vm543_vm1 = vcmp.gt.f32.partialorder %v511_v31, 0.0  ;;  %v8893_v54 = vld [vmem:[#allocation14_spill] sm:$0xff] }
 0x13a   : > { %2883 = vmatprep.mubr.bf16.mxu0 %v2602_v56  ;;  %v7097_v27 = vrot.slane %v1827_v43, 1  ;;  %v7099_v59 = vrot.slane %v1794_v44, 1  ;;  %v606_v62 = vsel %vm542_vm0, %v510_v35, %v574_v36  ;;  %v1981_v15 = vshrl.u32 %v6842_v10, 16 }
 0x13b   : > { %v607_v47 = vsel %vm543_vm1, %v511_v31, %v575_v7  ;;  %v2273_v18 = vpop.permute.xlu0 %2272  ;;  %v1985_v49 = vshll.u32 %v6894_v63, 16 }
 0x13c   : > { %v2211_v29 = vsel %vm2046_vm2, %v2208_v21, %v7097_v27  ;;  %v2073_v56 = vsel %vm2046_vm2, %v2070_v61, %v7099_v59  ;;  %v623_v2 = vpack.c.bf16 %v607_v47, %v606_v62  ;;  %v1983_v61 = vor.u32 %v1981_v15, %v1979_v1 }
 0x13d   : > { %2240 = vrot.lane.b32.xlu0 %v2209_v26, %s5725_s10  ;;  %2102 = vrot.lane.b32.xlu1 %v2071_v30, %s5728_s21  ;;  %v1256_v30 = vmul.bf16 %v6480_v23, %v6049_v3  ;;  %v1987_v7 = vrot.slane %v1985_v49, 1 }
 0x13e   : > { %v745_v26 = vshrl.u32 %v623_v2, 16 }
 0x13f   : > { %v2396_v31 = vsel %vm2384_vm3, %v1256_v30, %v6942_v25 }
 0x140   : > { %2884 = vmatmul.mubr.bf16.gmra.mrb[8].mxu0 %v2474_v42  ;;  %v2526_v42 = vsel %vm2384_vm3, %v8893_v54, %v2225_v46 }
 0x141   : > { %2288 = vrot.lane.b32.xlu0 %v1842_v32, %s5728_s21  ;;  %2150 = vrot.lane.b32.xlu1 %v1809_v22, %s5726_s13  ;;  %v748_v22 = vshll.u32 %v623_v2, 16  ;;  %v2570_v43 = vsel %vm2433_vm14, %v2526_v42, %v2273_v18 }
 0x144   : > { %v1064_v28 = vpop.permute.xlu1 %1063 }
 0x145   : > { %2324 = vrot.lane.b32.xlu0 %v7095_v57, %s5726_s13  ;;  %2021 = vrot.lane.b32.xlu1 %v7046_v19, %s5725_s10  ;;  %v1072_v21 = vrot.slane %v1064_v28, %v6185_v16  ;;  %v7125_v28 = vrot.slane %v745_v26, 7 }
 0x147   : > { %v750_v2 = vor.u32 %v748_v22, %v7125_v28 }
 0x148   : > { %v2087_v5 = vpop.permute.xlu1 %2086 }
 0x149   : > { %2242 = vrot.lane.b32.xlu0 %v2211_v29, %s5725_s10  ;;  %2104 = vrot.lane.b32.xlu1 %v2073_v56, %s5728_s21  ;;  %v2441_v44 = vsel %vm2433_vm14, %v2396_v31, %v2087_v5  ;;  %v7136_v5 = vsel %vm1864_vm13, %v1983_v61, %v1987_v7  ;;  %v7147_v30 = vsel %vm624_vm6, %v6860_v50, %v750_v2 }
 0x14c   : > { %v1076_v48 = vpop.permute.xlu0 %1075  ;;  %v1608_v37 = vpop.permute.xlu1 %1607 }
 0x14d   : > { %v1084_v35 = vrot.slane %v1076_v48, %v6185_v16  ;;  %v1616_v29 = vrot.slane %v1608_v37, %v6185_v16  ;;  %v8895_v37 = vrot.slane %v6881_v41, 7 }
 0x14f   : > { %v7121_v32 = vcombine.low %v1072_v21, %v1084_v35 }
 0x150   : > { %v2309_v36 = vpop.permute.xlu0 %2308  ;;  %v2135_v3 = vpop.permute.xlu1 %2134 }
 0x151   : > { %8894 = vst [vmem:[#allocation14_spill] sm:$0xff] %v7121_v32  ;;  %v2605_v1 = vsel %vm2466_vm15, %v2570_v43, %v2309_v36  ;;  %v1843_v25 = vmul.bf16 %v7121_v32, %v6842_v10  ;;  %v1810_v46 = vmul.bf16 %v7121_v32, %v6785_v17  ;;  %v2477_v62 = vsel %vm2466_vm15, %v2441_v44, %v2135_v3 }
 0x152   : > { %2891 = vmatprep.mubr.bf16.mxu0 %v2605_v1  ;;  %v1989_v44 = vshrl.u32 %v6894_v63, 16 }
 0x153   : > { %2290 = vrot.lane.b32.xlu0 %v1843_v25, %s5728_s21  ;;  %2152 = vrot.lane.b32.xlu1 %v1810_v46, %s5726_s13  ;;  %v1993_v46 = vshll.u32 %v7147_v30, 16 }
 0x154   : > { %2892 = vmatmul.mubr.bf16.gmra.mrb[12].mxu0 %v2477_v62  ;;  %v1620_v47 = vpop.permute.xlu0 %1619  ;;  %v2006_v18 = vpop.permute.xlu1 %2005  ;;  %v8897_v62 = vld [vmem:[#allocation12_spill] sm:$0xff] }
 0x155   : > { %v1628_v56 = vrot.slane %v1620_v47, %v6185_v16  ;;  %v8898_v47 = vld [vmem:[#allocation36_spill] sm:$0xff] }
 0x157   : > { %v5076_v15 = vcombine.low %v1616_v29, %v1628_v56  ;;  %2326 = vrot.lane.b32.xlu0 %v7136_v5, %s5726_s13  ;;  %2023 = vrot.lane.b32.xlu1 %v7095_v57, %s5725_s10  ;;  %v1257_v29 = vmul.bf16 %v8898_v47, %v8897_v62 }
 0x158   : > { %v2227_v48 = vpop.permute.xlu0 %2226  ;;  %v1088_v49 = vpop.permute.xlu1 %1087 }
 0x159   : > { %v1760_v26 = vrot.slane %v5076_v15, 7  ;;  %v1096_v56 = vrot.slane %v1088_v49, %v6185_v16 }
 0x15b   : > { %v7152_v21 = vsel %vm769_vm7, %v8895_v37, %v1760_v26 }
 0x15c   : > { %8896 = vst [vmem:[#allocation51_spill] sm:$0xff] %v7152_v21  ;;  %v2275_v35 = vpop.permute.xlu0 %2274  ;;  %v2089_v61 = vpop.permute.xlu1 %2088  ;;  %v1861_v31 = vmul.bf16 %v7152_v21, %v7147_v30  ;;  %v1828_v54 = vmul.bf16 %v7152_v21, %v6894_v63  ;;  %v1795_v42 = vmul.bf16 %v7152_v21, %v6842_v10 }
 0x15e   : > { %v2378_v22 = vrot.slane %v1861_v31, 1  ;;  %v2212_v43 = vrot.slane %v1828_v54, 1  ;;  %v2074_v50 = vrot.slane %v1795_v42, 1  ;;  %v1991_v42 = vor.u32 %v1989_v44, %v1987_v7 }
 0x160   : > { %v1100_v41 = vpop.permute.xlu0 %1099  ;;  %v1632_v36 = vpop.permute.xlu1 %1631  ;;  %v2379_v3 = vsel %vm2046_vm2, %v6912_v40, %v2378_v22  ;;  %v2213_v1 = vsel %vm2046_vm2, %v7097_v27, %v2212_v43  ;;  %v2075_v25 = vsel %vm2046_vm2, %v7099_v59, %v2074_v50  ;;  %v2399_v40 = vsel %vm2384_vm3, %v1257_v29, %v2006_v18  ;;  %v8899_v27 = vld [vmem:[#allocation34_spill] sm:$0xff] }
 0x161   : > { %v1108_v2 = vrot.slane %v1100_v41, %v6185_v16  ;;  %5523 = vmatmul.mubr.msk.bf16.gmra.mrb[24].mxu1 %vm2384_vm3, %v2379_v3  ;;  %2244 = vrot.lane.b32.xlu0 %v2213_v1, %s5725_s10  ;;  %v2529_v59 = vsel %vm2384_vm3, %v8899_v27, %v2227_v48  ;;  %v2443_v31 = vsel %vm2433_vm14, %v2399_v40, %v2089_v61  ;;  %v1995_v41 = vrot.slane %v1993_v46, 1 }
 0x162   : > { %2106 = vrot.lane.b32.xlu1 %v2075_v25, %s5728_s21  ;;  %v2572_v37 = vsel %vm2433_vm14, %v2529_v59, %v2275_v35  ;;  %v1640_v44 = vrot.slane %v1632_v36, %v6185_v16  ;;  %v7204_v40 = vsel %vm6018_vm10, %v7125_v28, 0 }
 0x163   : > { %v7178_v15 = vcombine.low %v1096_v56, %v1108_v2  ;;  %v7191_v7 = vsel %vm1864_vm13, %v1991_v42, %v1995_v41 }
 0x164   : > { %v2311_v49 = vpop.permute.xlu0 %2310  ;;  %v2137_v54 = vpop.permute.xlu1 %2136 }
 0x165   : > { %8900 = vst [vmem:[#allocation12_spill] sm:$0xff] %v7178_v15  ;;  %v2608_v3 = vsel %vm2466_vm15, %v2572_v37, %v2311_v49  ;;  %v1844_v1 = vmul.bf16 %v7178_v15, %v6894_v63  ;;  %v1811_v18 = vmul.bf16 %v7178_v15, %v6842_v10  ;;  %v2480_v48 = vsel %vm2466_vm15, %v2443_v31, %v2137_v54 }
 0x166   : > { %2899 = vmatprep.mubr.bf16.mxu0 %v2608_v3 }
 0x167   : > { %2292 = vrot.lane.b32.xlu0 %v1844_v1, %s5728_s21  ;;  %2154 = vrot.lane.b32.xlu1 %v1811_v18, %s5726_s13  ;;  %v2164_v18 = vshll.u32 %v7204_v40, 16 }
 0x168   : > { %2900 = vmatmul.mubr.bf16.gmra.mrb[16].mxu0 %v2480_v48  ;;  %v1644_v35 = vpop.permute.xlu0 %1643  ;;  %v2008_v61 = vpop.permute.xlu1 %2007 }
 0x169   : > { %v1652_v25 = vrot.slane %v1644_v35, %v6185_v16 }
 0x16b   : > { %v5077_v46 = vcombine.low %v1640_v44, %v1652_v25  ;;  %2328 = vrot.lane.b32.xlu0 %v7191_v7, %s5726_s13  ;;  %2025 = vrot.lane.b32.xlu1 %v7136_v5, %s5725_s10 }
 0x16c   : > { %v2229_v62 = vpop.permute.xlu0 %2228  ;;  %v1112_v29 = vpop.permute.xlu1 %1111 }
 0x16d   : > { %v7199_v56 = vrot.slane %v5077_v46, 7 }
 0x16f   : > { %8901 = vst [vmem:[#allocation36_spill] sm:$0xff] %v7199_v56  ;;  %v7208_v36 = vsel %vm769_vm7, %v1760_v26, %v7199_v56  ;;  %v1863_v27 = vmul.bf16 0, %v7199_v56  ;;  %v2160_v26 = vshrl.u32 %v7147_v30, 16 }
 0x170   : > { %8903 = vst [vmem:[#allocation34_spill] sm:$0xff] %v7208_v36  ;;  %v2277_v59 = vpop.permute.xlu0 %2276  ;;  %v2091_v37 = vpop.permute.xlu1 %2090  ;;  %v1862_v31 = vmul.bf16 %v7208_v36, %v7204_v40  ;;  %v1829_v49 = vmul.bf16 %v7208_v36, %v7147_v30  ;;  %v1796_v54 = vmul.bf16 %v7208_v36, %v6894_v63 }
 0x171   : > { %v7217_v42 = vrot.slane %v1863_v27, 1  ;;  %v1120_v27 = vrot.slane %v1112_v29, %v6185_v16  ;;  %v2162_v9 = vor.u32 %v2160_v26, %v1995_v41  ;;  %v1797_v41 = vmul.bf16 %v7199_v56, %v7147_v30 }
 0x172   : > { %v2380_v28 = vrot.slane %v1862_v31, 1  ;;  %v2214_v3 = vrot.slane %v1829_v49, 1  ;;  %v2076_v1 = vrot.slane %v1796_v54, 1  ;;  %v8906_v49 = vld [vmem:[#allocation44_spill] sm:$0xff]  ;;  %v8907_v54 = vld [vmem:[#allocation41_spill] sm:$0xff] }
 0x173   : > { %8904 = vst [vmem:[#allocation52_spill] sm:$0xff] %v7217_v42 }
 0x174   : > { %v1124_v48 = vpop.permute.xlu0 %1123  ;;  %v2139_v35 = vpop.permute.xlu1 %2138  ;;  %v2381_v44 = vsel %vm2046_vm2, %v2378_v22, %v2380_v28  ;;  %v2215_v25 = vsel %vm2046_vm2, %v2212_v43, %v2214_v3  ;;  %v2077_v46 = vsel %vm2046_vm2, %v2074_v50, %v2076_v1  ;;  %v2383_v52 = vsel %vm2046_vm2, %v2380_v28, %v7217_v42  ;;  %v8905_v22 = vld [vmem:[#allocation13_spill] sm:$0xff] }
 0x175   : > { %v1132_v31 = vrot.slane %v1124_v48, %v6185_v16  ;;  %5526 = vmatprep.mubr.msk.bf16.mxu1 %vm2384_vm3, %v2381_v44  ;;  %2246 = vrot.lane.b32.xlu0 %v2215_v25, %s5725_s10  ;;  %v1258_v43 = vmul.bf16 %v8906_v49, %v8905_v22  ;;  %v2532_v50 = vsel %vm2384_vm3, %v8907_v54, %v2229_v62  ;;  %v2166_v44 = vrot.slane %v2164_v18, 1 }
 0x176   : > { %2108 = vrot.lane.b32.xlu1 %v2077_v46, %s5728_s21  ;;  %5527 = vmatmul.mubr.msk.bf16.gmra.mrb[28].mxu1 %vm2384_vm3, %v2383_v52  ;;  %v2574_v29 = vsel %vm2433_vm14, %v2532_v50, %v2277_v59  ;;  %v1830_v59 = vmul.bf16 %v7199_v56, %v7204_v40 }
 0x177   : > { %v7236_v11 = vcombine.low %v1120_v27, %v1132_v31  ;;  %v2402_v25 = vsel %vm2384_vm3, %v1258_v43, %v2008_v61  ;;  %v7254_v27 = vsel %vm1864_vm13, %v2162_v9, %v2166_v44  ;;  %v2078_v31 = vrot.slane %v1797_v41, 1 }
 0x178   : > { %v2313_v28 = vpop.permute.xlu0 %2312  ;;  %v2010_v48 = vpop.permute.xlu1 %2009  ;;  %v2445_v62 = vsel %vm2433_vm14, %v2402_v25, %v2091_v37  ;;  %v2216_v37 = vrot.slane %v1830_v59, 1 }
 0x179   : > { %8908 = vst [vmem:[#allocation13_spill] sm:$0xff] %v7236_v11  ;;  %v2611_v46 = vsel %vm2466_vm15, %v2574_v29, %v2313_v28  ;;  %v1845_v52 = vmul.bf16 %v7236_v11, %v7147_v30  ;;  %v1812_v22 = vmul.bf16 %v7236_v11, %v6894_v63  ;;  %v2483_v61 = vsel %vm2466_vm15, %v2445_v62, %v2139_v35 }
 0x17a   : > { %2907 = vmatprep.mubr.bf16.mxu0 %v2611_v46  ;;  %v2217_v35 = vsel %vm2046_vm2, %v2214_v3, %v2216_v37  ;;  %v2079_v29 = vsel %vm2046_vm2, %v2076_v1, %v2078_v31  ;;  %v2298_v46 = vshrl.u32 %v7204_v40, 16  ;;  %v8909_v3 = vld [vmem:[#allocation23_spill] sm:$0xff]  ;;  %v8910_v1 = vld [vmem:[#allocation46_spill] sm:$0xff] }
 0x17b   : > { %2294 = vrot.lane.b32.xlu0 %v1845_v52, %s5728_s21  ;;  %2156 = vrot.lane.b32.xlu1 %v1812_v22, %s5726_s13  ;;  %v1259_v41 = vmul.bf16 %v8910_v1, %v8909_v3 }
 0x17c   : > { %2908 = vmatmul.mubr.bf16.gmra.mrb[20].mxu0 %v2483_v61  ;;  %v2231_v26 = vpop.permute.xlu0 %2230  ;;  %v1136_v18 = vpop.permute.xlu1 %1135 }
 0x17d   : > { %v1144_v52 = vrot.slane %v1136_v18, %v6185_v16  ;;  %v2535_v61 = vsel %vm2384_vm3, %v6800_v0, %v2231_v26  ;;  %v2405_v8 = vsel %vm2384_vm3, %v1259_v41, %v2010_v48 }
 0x17f   : > { %2330 = vrot.lane.b32.xlu0 %v7254_v27, %s5726_s13  ;;  %2027 = vrot.lane.b32.xlu1 %v7191_v7, %s5725_s10 }
 0x180   : > { %v2279_v43 = vpop.permute.xlu0 %2278  ;;  %v2093_v54 = vpop.permute.xlu1 %2092 }
 0x181   : > { %v2576_v31 = vsel %vm2433_vm14, %v2535_v61, %v2279_v43  ;;  %v2447_v42 = vsel %vm2433_vm14, %v2405_v8, %v2093_v54 }
 0x182   : > { %v7260_v50 = vpop.f32.mrb[0].mxu1 }
 0x183   : > { %v7264_v28 = vpop.f32.mrb[1].mxu1  ;;  %2248 = vrot.lane.b32.xlu0 %v2217_v35, %s5725_s10  ;;  %2110 = vrot.lane.b32.xlu1 %v2079_v29, %s5728_s21  ;;  %v2300_v29 = vor.u32 %v2298_v46, %v2166_v44  ;;  %v8912_v44 = vld [vmem:[#allocation11_spill] sm:$0xff] }
 0x184   : > { %v7268_v9 = vpop.f32.mrb[2].mxu1  ;;  %v1148_v25 = vpop.permute.xlu0 %1147 }
 0x185   : > { %v1156_v22 = vrot.slane %v1148_v25, %v6185_v16  ;;  %v2141_v62 = vpop.permute.xlu1 %2140  ;;  %v7273_v59 = vpop.f32.mrb[3].mxu1  ;;  %v2301_v26 = vsel %vm1864_vm13, %v2300_v29, %v8912_v44 }
 0x186   : > { %v2486_v0 = vsel %vm2466_vm15, %v2447_v42, %v2141_v62 }
 0x187   : > { %v7279_v37 = vcombine.low %v1144_v52, %v1156_v22 }
 0x188   : > { %v2315_v35 = vpop.permute.xlu0 %2314 }
 0x189   : > { %8911 = vst [vmem:[#allocation41_spill] sm:$0xff] %v7279_v37  ;;  %v2012_v18 = vpop.permute.xlu1 %2011  ;;  %v2614_v16 = vsel %vm2466_vm15, %v2576_v31, %v2315_v35  ;;  %v1846_v25 = vmul.bf16 %v7279_v37, %v7204_v40  ;;  %v1813_v3 = vmul.bf16 %v7279_v37, %v7147_v30  ;;  %v8913_v30 = vld [vmem:[#allocation24_spill] sm:$0xff] }
 0x18a   : > { %2915 = vmatprep.mubr.bf16.mxu0 %v2614_v16  ;;  %v1260_v8 = vmul.bf16 %v6889_v13, %v8913_v30 }
 0x18b   : > { %2296 = vrot.lane.b32.xlu0 %v1846_v25, %s5728_s21  ;;  %2158 = vrot.lane.b32.xlu1 %v1813_v3, %s5726_s13 }
 0x18c   : > { %2916 = vmatmul.mubr.bf16.gmra.mrb[24].mxu0 %v2486_v0  ;;  %v2233_v48 = vpop.permute.xlu0 %2232  ;;  %v2408_v42 = vsel %vm2384_vm3, %v1260_v8, %v2012_v18 }
 0x18d   : > { %v2095_v43 = vpop.permute.xlu1 %2094  ;;  %v2538_v52 = vsel %vm2384_vm3, %v6871_v53, %v2233_v48  ;;  %v1261_v48 = vmul.bf16 %v6936_v4, %v6495_v24 }
 0x18e   : > { %v2449_v31 = vsel %vm2433_vm14, %v2408_v42, %v2095_v43 }
 0x18f   : > { %2332 = vrot.lane.b32.xlu0 %v2301_v26, %s5726_s13 }
 0x190   : > { %v2281_v40 = vpop.permute.xlu0 %2280 }
 0x191   : > { %v2143_v46 = vpop.permute.xlu1 %2142  ;;  %v2578_v62 = vsel %vm2433_vm14, %v2538_v52, %v2281_v40 }
 0x192   : > { %v7297_v54 = vpop.f32.mrb[4].mxu1  ;;  %v2489_v25 = vsel %vm2466_vm15, %v2449_v31, %v2143_v46 }
 0x193   : > { %v7301_v22 = vpop.f32.mrb[5].mxu1 }
 0x194   : > { %v7305_v41 = vpop.f32.mrb[6].mxu1  ;;  %v2317_v61 = vpop.permute.xlu0 %2316 }
 0x195   : > { %v2014_v35 = vpop.permute.xlu1 %2013  ;;  %v7308_v29 = vpop.f32.mrb[7].mxu1  ;;  %v2617_v16 = vsel %vm2466_vm15, %v2578_v62, %v2317_v61 }
 0x196   : > { %2923 = vmatprep.mubr.bf16.mxu0 %v2617_v16  ;;  %v2411_v43 = vsel %vm2384_vm3, %v1261_v48, %v2014_v35 }
 0x197   : > { %2924 = vmatmul.mubr.bf16.gmra.mrb[28].mxu0 %v2489_v25 }
 0x198   : > { %v2235_v53 = vpop.permute.xlu0 %2234 }
 0x199   : > { %v2097_v3 = vpop.permute.xlu1 %2096  ;;  %v2541_v26 = vsel %vm2384_vm3, %v6923_v20, %v2235_v53  ;;  %v8914_v53 = vld [vmem:[#allocation49_spill] sm:$0xff] }
 0x19a   : > { %v2451_v8 = vsel %vm2433_vm14, %v2411_v43, %v2097_v3  ;;  %v1262_v3 = vmul.bf16 %v8914_v53, %v6567_v55 }
 0x19c   : > { %v2283_v0 = vpop.permute.xlu0 %2282 }
 0x19d   : > { %v2145_v18 = vpop.permute.xlu1 %2144  ;;  %v2580_v40 = vsel %vm2433_vm14, %v2541_v26, %v2283_v0 }
 0x19e   : > { %v2492_v62 = vsel %vm2466_vm15, %v2451_v8, %v2145_v18 }
 0x1a0   : > { %v2319_v30 = vpop.permute.xlu0 %2318 }
 0x1a1   : > { %v2016_v52 = vpop.permute.xlu1 %2015  ;;  %v2620_v46 = vsel %vm2466_vm15, %v2580_v40, %v2319_v30 }
 0x1a2   : > { %2931 = vmatprep.mubr.bf16.mxu0 %v2620_v46  ;;  %v7320_v42 = vpop.f32.mrb[8].mxu1  ;;  %v2414_v48 = vsel %vm2384_vm3, %v1262_v3, %v2016_v52 }
 0x1a3   : > { %2932 = vmatmul.mubr.bf16.gmra.mrb[32].mxu0 %v2492_v62  ;;  %v7323_v24 = vpop.f32.mrb[9].mxu1 }
 0x1a4   : > { %v7325_v61 = vpop.f32.mrb[10].mxu1  ;;  %v2237_v20 = vpop.permute.xlu0 %2236 }
 0x1a5   : > { %v2099_v31 = vpop.permute.xlu1 %2098  ;;  %v7327_v35 = vpop.f32.mrb[11].mxu1  ;;  %v2544_v0 = vsel %vm2384_vm3, %v6955_v38, %v2237_v20 }
 0x1a6   : > { %v2453_v43 = vsel %vm2433_vm14, %v2414_v48, %v2099_v31  ;;  %v8915_v31 = vld [vmem:[#allocation37_spill] sm:$0xff] }
 0x1a7   : > { %v1263_v3 = vmul.bf16 %v7011_v58, %v8915_v31  ;;  %v7358_v31 = vld [vmem:[%s8698_s7 + $0x80] sm:$0xff]  }
 0x1a8   : > { %v2285_v16 = vpop.permute.xlu0 %2284  ;;  %5530 = vmatprep.subr.bf16.mxu0 %v7358_v31 }
 0x1a9   : > { %v2147_v25 = vpop.permute.xlu1 %2146  ;;  %v2582_v18 = vsel %vm2433_vm14, %v2544_v0, %v2285_v16  ;;  %5531 = vmatpush3.bf16.msra.mxu0 %v7358_v31 }
 0x1aa   : > { %v2495_v8 = vsel %vm2466_vm15, %v2453_v43, %v2147_v25 }
 0x1ac   : > { %v2321_v26 = vpop.permute.xlu0 %2320 }
 0x1ad   : > { %v2018_v40 = vpop.permute.xlu1 %2017  ;;  %v2623_v30 = vsel %vm2466_vm15, %v2582_v18, %v2321_v26 }
 0x1ae   : > { %2939 = vmatprep.mubr.bf16.mxu0 %v2623_v30  ;;  %v2417_v25 = vsel %vm2384_vm3, %v1263_v3, %v2018_v40 }
 0x1af   : > { %2940 = vmatmul.mubr.bf16.gmra.mrb[36].mxu0 %v2495_v8 }
 0x1b0   : > { %v2239_v46 = vpop.permute.xlu0 %2238 }
 0x1b1   : > { %v2101_v62 = vpop.permute.xlu1 %2100  ;;  %v2547_v0 = vsel %vm2384_vm3, %v6989_v39, %v2239_v46  ;;  %v5637_v46 = vld [vmem:[%s8698_s7 + $0x88] sm:$0xff]  }
 0x1b2   : > { %v7338_v55 = vpop.f32.mrb[12].mxu1  ;;  %v2455_v26 = vsel %vm2433_vm14, %v2417_v25, %v2101_v62  ;;  %5532 = vmatprep.subr.bf16.mxu0 %v5637_v46 }
 0x1b3   : > { %v7340_v56 = vpop.f32.mrb[13].mxu1  ;;  %5533 = vmatpush3.bf16.msra.mxu0 %v5637_v46 }
 0x1b4   : > { %v7342_v38 = vpop.f32.mrb[14].mxu1  ;;  %v2287_v52 = vpop.permute.xlu0 %2286 }
 0x1b5   : > { %v2149_v20 = vpop.permute.xlu1 %2148  ;;  %v7344_v16 = vpop.f32.mrb[15].mxu1  ;;  %v2584_v48 = vsel %vm2433_vm14, %v2547_v0, %v2287_v52  ;;  %v1264_v52 = vmul.bf16 %v7073_v33, %v6677_v51 }
 0x1b6   : > { %v2498_v8 = vsel %vm2466_vm15, %v2455_v26, %v2149_v20 }
 0x1b8   : > { %v2323_v18 = vpop.permute.xlu0 %2322 }
 0x1b9   : > { %v2020_v43 = vpop.permute.xlu1 %2019  ;;  %v2626_v30 = vsel %vm2466_vm15, %v2584_v48, %v2323_v18 }
 0x1ba   : > { %2947 = vmatprep.mubr.bf16.mxu0 %v2626_v30  ;;  %v2420_v25 = vsel %vm2384_vm3, %v1264_v52, %v2020_v43 }
 0x1bb   : > { %2948 = vmatmul.mubr.bf16.gmra.mrb[40].mxu0 %v2498_v8 }
 0x1bc   : > { %v2241_v36 = vpop.permute.xlu0 %2240 }
 0x1bd   : > { %v2103_v39 = vpop.permute.xlu1 %2102  ;;  %v2550_v3 = vsel %vm2384_vm3, %v7046_v19, %v2241_v36 }
 0x1be   : > { %v2457_v30 = vsel %vm2433_vm14, %v2420_v25, %v2103_v39 }
 0x1c0   : > { %v2289_v40 = vpop.permute.xlu0 %2288 }
 0x1c1   : > { %v2151_v62 = vpop.permute.xlu1 %2150  ;;  %v2586_v48 = vsel %vm2433_vm14, %v2550_v3, %v2289_v40  ;;  %v1265_v40 = vmul.bf16 %v7121_v32, %v6707_v6 }
 0x1c2   : > { %v7367_v20 = vpop.f32.mrb[16].mxu1  ;;  %v2501_v19 = vsel %vm2466_vm15, %v2457_v30, %v2151_v62 }
 0x1c3   : > { %v7371_v0 = vpop.f32.mrb[17].mxu1 }
 0x1c4   : > { %v7375_v18 = vpop.f32.mrb[18].mxu1  ;;  %v2325_v26 = vpop.permute.xlu0 %2324 }
 0x1c5   : > { %v2022_v8 = vpop.permute.xlu1 %2021  ;;  %v7378_v51 = vpop.f32.mrb[19].mxu1  ;;  %v2629_v21 = vsel %vm2466_vm15, %v2586_v48, %v2325_v26 }
 0x1c6   : > { %2955 = vmatprep.mubr.bf16.mxu0 %v2629_v21  ;;  %v2423_v39 = vsel %vm2384_vm3, %v1265_v40, %v2022_v8 }
 0x1c7   : > { %2956 = vmatmul.mubr.bf16.gmra.mrb[44].mxu0 %v2501_v19 }
 0x1c8   : > { %v2243_v36 = vpop.permute.xlu0 %2242 }
 0x1c9   : > { %v2105_v46 = vpop.permute.xlu1 %2104  ;;  %v2553_v52 = vsel %vm2384_vm3, %v7095_v57, %v2243_v36  ;;  %v1266_v57 = vmul.bf16 %v7178_v15, %v6785_v17 }
 0x1ca   : > { %v2459_v21 = vsel %vm2433_vm14, %v2423_v39, %v2105_v46 }
 0x1cc   : > { %v2291_v34 = vpop.permute.xlu0 %2290 }
 0x1cd   : > { %v2153_v43 = vpop.permute.xlu1 %2152  ;;  %v2588_v3 = vsel %vm2433_vm14, %v2553_v52, %v2291_v34 }
 0x1ce   : > { %v2504_v26 = vsel %vm2466_vm15, %v2459_v21, %v2153_v43 }
 0x1d0   : > { %v2327_v25 = vpop.permute.xlu0 %2326 }
 0x1d1   : > { %v2024_v48 = vpop.permute.xlu1 %2023  ;;  %v2632_v62 = vsel %vm2466_vm15, %v2588_v3, %v2327_v25 }
 0x1d2   : > { %2963 = vmatprep.mubr.bf16.mxu0 %v2632_v62  ;;  %v2426_v40 = vsel %vm2384_vm3, %v1266_v57, %v2024_v48  ;;  %v1267_v48 = vmul.bf16 %v7236_v11, %v6842_v10 }
 0x1d3   : > { %2964 = vmatmul.mubr.bf16.gmra.mrb[48].mxu0 %v2504_v26 }
 0x1d4   : > { %v2245_v30 = vpop.permute.xlu0 %2244 }
 0x1d5   : > { %v2107_v19 = vpop.permute.xlu1 %2106  ;;  %v2556_v34 = vsel %vm2384_vm3, %v7136_v5, %v2245_v30 }
 0x1d6   : > { %v2461_v3 = vsel %vm2433_vm14, %v2426_v40, %v2107_v19 }
 0x1d9   : > { %v2293_v6 = vpop.permute.xlu0 %2292  ;;  %v2155_v36 = vpop.permute.xlu1 %2154 }
 0x1da   : > { %v7391_v32 = vpop.f32.mrb[20].mxu1  ;;  %v2590_v43 = vsel %vm2433_vm14, %v2556_v34, %v2293_v6  ;;  %v2507_v17 = vsel %vm2466_vm15, %v2461_v3, %v2155_v36 }
 0x1db   : > { %v7395_v8 = vpop.f32.mrb[21].mxu1 }
 0x1dc   : > { %v7399_v46 = vpop.f32.mrb[22].mxu1 }
 0x1dd   : > { %v7403_v52 = vpop.f32.mrb[23].mxu1  ;;  %v2329_v39 = vpop.permute.xlu0 %2328 }
 0x1de   : > { %v2635_v25 = vsel %vm2466_vm15, %v2590_v43, %v2329_v39  ;;  %v2026_v21 = vpop.permute.xlu1 %2025 }
 0x1df   : > { %2971 = vmatprep.mubr.bf16.mxu0 %v2635_v25  ;;  %v2429_v57 = vsel %vm2384_vm3, %v1267_v48, %v2026_v21 }
 0x1e0   : > { %2972 = vmatmul.mubr.bf16.gmra.mrb[52].mxu0 %v2507_v17 }
 0x1e7   : > { %v2247_v5 = vpop.permute.xlu0 %2246 }
 0x1e8   : > { %v2109_v62 = vpop.permute.xlu1 %2108  ;;  %v2559_v30 = vsel %vm2384_vm3, %v7191_v7, %v2247_v5  ;;  %v1268_v7 = vmul.bf16 %v7279_v37, %v6894_v63 }
 0x1e9   : > { %v2463_v40 = vsel %vm2433_vm14, %v2429_v57, %v2109_v62 }
 0x1ed   : > { %v2295_v26 = vpop.permute.xlu0 %2294  ;;  %v2157_v6 = vpop.permute.xlu1 %2156 }
 0x1ee   : > { %v2592_v19 = vsel %vm2433_vm14, %v2559_v30, %v2295_v26  ;;  %v2510_v43 = vsel %vm2466_vm15, %v2463_v40, %v2157_v6 }
 0x1f1   : > { %v2331_v34 = vpop.permute.xlu0 %2330  ;;  %v2028_v39 = vpop.permute.xlu1 %2027 }
 0x1f2   : > { %v2638_v36 = vsel %vm2466_vm15, %v2592_v19, %v2331_v34  ;;  %v2432_v5 = vsel %vm2384_vm3, %v1268_v7, %v2028_v39  ;;  %v5638_v39 = vld [vmem:[%s8698_s7 + $0x40] sm:$0xff]  }
 0x1f3   : > { %2979 = vmatprep.mubr.bf16.mxu0 %v2638_v36  ;;  %5364 = vmatprep.subr.bf16.mxu1 %v5638_v39 }
 0x1f4   : > { %2980 = vmatmul.mubr.bf16.gmra.mrb[56].mxu0 %v2510_v43 }
 0x1f5   : > { %v2249_v3 = vpop.permute.xlu0 %2248  ;;  %v2111_v10 = vpop.permute.xlu1 %2110 }
 0x1f6   : > { %v2562_v17 = vsel %vm2384_vm3, %v7254_v27, %v2249_v3  ;;  %v2465_v48 = vsel %vm2433_vm14, %v2432_v5, %v2111_v10  ;;  %v7429_v27 = vld [vmem:[%s8696_s5] ss:$0 sm:$0xff]  ;;  %v5640_v5 = vld [vmem:[%s8698_s7 + $0x48] sm:$0xff]  }
 0x1f7   : > { %v7438_v3 = vld [vmem:[%s8697_s6] ss:$0 sm:$0xff] }
 0x1f8   : > { %v5639_v10 = vld [vmem:[%s8698_s7] sm:$0xff]  }
 0x1f9   : > { %5365 = vmatpush3.bf16.msra.mxu1 %v5639_v10 }
 0x1fa   : > { %5366 = vmatprep.subr.bf16.mxu1 %v5640_v5 }
 0x1fd   : > { %v2297_v25 = vpop.permute.xlu0 %2296  ;;  %v2159_v21 = vpop.permute.xlu1 %2158 }
 0x1fe   : > { %v2594_v62 = vsel %vm2433_vm14, %v2562_v17, %v2297_v25  ;;  %v2513_v57 = vsel %vm2466_vm15, %v2465_v48, %v2159_v21 }
 0x201   : > { %v2333_v26 = vpop.permute.xlu0 %2332 }
 0x202   : > { %v2641_v30 = vsel %vm2466_vm15, %v2594_v62, %v2333_v26  ;;  %v5641_v26 = vld [vmem:[%s8698_s7 + $0x8] sm:$0xff]  }
 0x203   : > { %v5250_v6 = vpop.f32.mrb[0].mxu0  ;;  %2987 = vmatprep.mubr.bf16.mxu0 %v2641_v30  ;;  %5367 = vmatpush3.bf16.msra.mxu1 %v5641_v26 }
 0x204   : > { %v5251_v19 = vpop.f32.mrb[1].mxu0  ;;  %2988 = vmatmul.mubr.bf16.gmra.mrb[60].mxu0 %v2513_v57 }
 0x205   : > { %v5252_v63 = vadd.f32 %v5251_v19, %v5250_v6  ;;  %v5253_v34 = vpop.f32.mrb[2].mxu0 }
 0x206   : > { %v5254_v40 = vpop.f32.mrb[3].mxu0 }
 0x207   : > { %v3031_v36 = vadd.f32 %v5252_v63, %v7264_v28  ;;  %v5255_v43 = vadd.f32 %v5254_v40, %v5253_v34  ;;  %v5642_v34 = vld [vmem:[%s8698_s7 + $0x50] sm:$0xff]  }
 0x208   : > { %5368 = vmatprep.subr.bf16.mxu1 %v5642_v34 }
 0x209   : > { %v3164_v25 = vmul.f32 %v7429_v27, %v3031_v36  ;;  %v3034_v7 = vadd.f32 %v5255_v43, %v7273_v59  ;;  %v5643_v36 = vld [vmem:[%s8698_s7 + $0x10] sm:$0xff]  }
 0x20a   : > { %5369 = vmatpush3.bf16.msra.mxu1 %v5643_v36 }
 0x20b   : > { %v3203_v28 = vadd.f32 %v7438_v3, %v3164_v25  ;;  %v3165_v17 = vmul.f32 %v7429_v27, %v3034_v7  ;;  %v5256_v21 = vpop.f32.mrb[4].mxu0 }
 0x20c   : > { %v5257_v62 = vpop.f32.mrb[5].mxu0 }
 0x20d   : > { %v3267_v48 = vmul.f32 0.1, %v3203_v28  ;;  %v3204_v30 = vadd.f32 %v7438_v3, %v3165_v17  ;;  %v5258_v59 = vadd.f32 %v5257_v62, %v5256_v21  ;;  %v5259_v6 = vpop.f32.mrb[6].mxu0  ;;  %vm3235_vm7 = vcmp.gt.f32.partialorder %v3203_v28, 0.0  ;;  %v5644_v21 = vld [vmem:[%s8698_s7 + $0x58] sm:$0xff]  }
 0x20e   : > { %v5260_v57 = vpop.f32.mrb[7].mxu0  ;;  %5370 = vmatprep.subr.bf16.mxu1 %v5644_v21 }
 0x20f   : > { %vm3236_vm4 = vcmp.gt.f32.partialorder %v3204_v30, 0.0  ;;  %v3268_v19 = vmul.f32 0.1, %v3204_v30  ;;  %v3039_v63 = vadd.f32 %v7260_v50, %v5258_v59  ;;  %v5261_v40 = vadd.f32 %v5260_v57, %v5259_v6 }
 0x210   : > { %v3299_v43 = vsel %vm3235_vm7, %v3203_v28, %v3267_v48  ;;  %v5645_v28 = vld [vmem:[%s8698_s7 + $0x18] sm:$0xff]  }
 0x211   : > { %v3300_v39 = vsel %vm3236_vm4, %v3204_v30, %v3268_v19  ;;  %v3166_v10 = vmul.f32 %v7429_v27, %v3039_v63  ;;  %v3042_v7 = vadd.f32 %v7268_v9, %v5261_v40  ;;  %5371 = vmatpush3.bf16.msra.mxu1 %v5645_v28  ;;  %v5646_v40 = vld [vmem:[%s8698_s7 + $0x60] sm:$0xff]   ;;  %v8916_v28 = vld [vmem:[#allocation20_spill] sm:$0xff] }
 0x212   : > { %v3331_v25 = vpack.c.bf16 %v3300_v39, %v3299_v43  ;;  %v5647_v39 = vld [vmem:[%s8698_s7 + $0x20] sm:$0xff]   ;;  %5372 = vmatprep.subr.bf16.mxu1 %v5646_v40  ;;  %v5650_v40 = vld [vmem:[%s8698_s7 + $0x70] sm:$0xff]  }
 0x213   : > { %v3205_v50 = vadd.f32 %v7438_v3, %v3166_v10  ;;  %v5262_v17 = vpop.f32.mrb[8].mxu0  ;;  %v3167_v62 = vmul.f32 %v7429_v27, %v3042_v7 }
 0x214   : > { %v3348_v5 = vshrl.u32 %v3331_v25, 16  ;;  %v5263_v26 = vpop.f32.mrb[9].mxu0  ;;  %v3351_v59 = vshll.u32 %v3331_v25, 16 }
 0x215   : > { %v5264_v48 = vadd.f32 %v5263_v26, %v5262_v17  ;;  %v5265_v30 = vpop.f32.mrb[10].mxu0  ;;  %v3269_v6 = vmul.f32 0.1, %v3205_v50  ;;  %v3206_v57 = vadd.f32 %v7438_v3, %v3167_v62  ;;  %vm3237_vm5 = vcmp.gt.f32.partialorder %v3205_v50, 0.0  ;;  %5373 = vmatpush3.bf16.msra.mxu1 %v5647_v39 }
 0x216   : > { %v3350_v9 = vrot.slane %v3348_v5, 7  ;;  %v5266_v19 = vpop.f32.mrb[11].mxu0 }
 0x217   : > { %v3047_v63 = vadd.f32 %v5264_v48, %v7301_v22  ;;  %v5267_v34 = vadd.f32 %v5266_v19, %v5265_v30  ;;  %vm3238_vm8 = vcmp.gt.f32.partialorder %v3206_v57, 0.0  ;;  %v3270_v43 = vmul.f32 0.1, %v3206_v57  ;;  %v5649_v30 = vld [vmem:[%s8698_s7 + $0x28] sm:$0xff]  }
 0x218   : > { %v3353_v36 = vor.u32 %v3351_v59, %v3350_v9  ;;  %v3301_v7 = vsel %vm3237_vm5, %v3205_v50, %v3269_v6 }
 0x219   : > { %v3168_v10 = vmul.f32 %v7429_v27, %v3047_v63  ;;  %v3050_v25 = vadd.f32 %v5267_v34, %v7308_v29  ;;  %v3302_v17 = vsel %vm3238_vm8, %v3206_v57, %v3270_v43  ;;  %v5648_v29 = vld [vmem:[%s8698_s7 + $0x68] sm:$0xff]  }
 0x21a   : > { %v7483_v22 = vsel %vm6018_vm10, 0, %v3353_v36  ;;  %v3332_v21 = vpack.c.bf16 %v3302_v17, %v3301_v7  ;;  %5374 = vmatprep.subr.bf16.mxu1 %v5648_v29  ;;  %v8917_v7 = vld [vmem:[#allocation19_spill] sm:$0xff] }
 0x21b   : > { %v3207_v5 = vadd.f32 %v7438_v3, %v3168_v10  ;;  %v3169_v62 = vmul.f32 %v7429_v27, %v3050_v25  ;;  %v3524_v26 = vmul.bf16 %v6234_v45, %v7483_v22  ;;  %v3590_v50 = vshll.u32 %v7483_v22, 16  ;;  %5375 = vmatpush3.bf16.msra.mxu1 %v5649_v30  ;;  %v5651_v10 = vld [vmem:[%s8698_s7 + $0x30] sm:$0xff]  }
 0x21c   : > { %v3508_v48 = vmul.bf16 %v7483_v22, %v8916_v28  ;;  %v3355_v59 = vshrl.u32 %v3332_v21, 16  ;;  %v3358_v34 = vshll.u32 %v3332_v21, 16  ;;  %v3540_v17 = vmul.bf16 %v7483_v22, %v8917_v7  ;;  %5376 = vmatprep.subr.bf16.mxu1 %v5650_v40 }
 0x21d   : > { %3842 = vrot.lane.b32.xlu1 %v3524_v26, %s5726_s13  ;;  %v3271_v6 = vmul.f32 0.1, %v3207_v5  ;;  %v3208_v57 = vadd.f32 %v7438_v3, %v3169_v62  ;;  %v3592_v19 = vrot.slane %v3590_v50, 1  ;;  %vm3239_vm9 = vcmp.gt.f32.partialorder %v3207_v5, 0.0 }
 0x21e   : > { %v3357_v63 = vrot.slane %v3355_v59, 7  ;;  %v3762_v39 = vrot.slane %v3508_v48, 1  ;;  %v3594_v50 = vshrl.u32 %v7483_v22, 16  ;;  %v8919_v48 = vld [vmem:[#allocation28_spill] sm:$0xff] }
 0x21f   : > { %vm3240_vm11 = vcmp.gt.f32.partialorder %v3208_v57, 0.0  ;;  %v3272_v36 = vmul.f32 0.1, %v3208_v57  ;;  %v3593_v43 = vsel %vm1864_vm13, %v8912_v44, %v3592_v19  ;;  %v3303_v21 = vsel %vm3239_vm9, %v3207_v5, %v3271_v6  ;;  %5377 = vmatpush3.bf16.msra.mxu1 %v5651_v10  ;;  %v5652_v5 = vld [vmem:[%s8698_s7 + $0x78] sm:$0xff]  }
 0x220   : > { %v3360_v25 = vor.u32 %v3358_v34, %v3357_v63  ;;  %v3763_v30 = vsel %vm2046_vm2, %v8919_v48, %v3762_v39  ;;  %v3899_v6 = vrot.slane %v3540_v17, 1  ;;  %5378 = vmatprep.subr.bf16.mxu1 %v5652_v5 }
 0x221   : > { %3714 = vrot.lane.b32.xlu1 %v3593_v43, %s5725_s10  ;;  %v3304_v62 = vsel %vm3240_vm11, %v3208_v57, %v3272_v36  ;;  %v5653_v57 = vld [vmem:[%s8698_s7 + $0x38] sm:$0xff]   ;;  %v3596_v43 = vor.u32 %v3594_v50, %v3592_v19 }
 0x222   : > { %v7512_v26 = vsel %vm624_vm6, %v3350_v9, %v3360_v25  ;;  %v3333_v29 = vpack.c.bf16 %v3304_v62, %v3303_v21  ;;  %v8920_v25 = vld [vmem:[#allocation22_spill] sm:$0xff] }
 0x223   : > { %8918 = vst [vmem:[#allocation23_spill] sm:$0xff] %v7512_v26  ;;  %v3557_v59 = vmul.bf16 %v6234_v45, %v7512_v26  ;;  %v3541_v34 = vmul.bf16 %v7512_v26, %v8916_v28  ;;  %v3598_v40 = vshll.u32 %v7512_v26, 16  ;;  %v3509_v21 = vmul.bf16 %v7512_v26, %v8920_v25  ;;  %5379 = vmatpush3.bf16.msra.mxu1 %v5653_v57 }
 0x224   : > { %v3363_v9 = vshrl.u32 %v3333_v29, 16  ;;  %v3366_v48 = vshll.u32 %v3333_v29, 16  ;;  %v3525_v17 = vmul.bf16 %v6294_v12, %v7512_v26  ;;  %5566 = vmatprep.subr.bf16.mxu1 %v7358_v31  ;;  %v3573_v29 = vmul.bf16 %v7512_v26, %v8917_v7 }
 0x225   : > { %3794 = vrot.lane.b32.xlu1 %v3763_v30, %s5728_s21  ;;  %3980 = vrot.lane.b32.xlu0 %v3557_v59, %s5728_s21  ;;  %v3900_v36 = vrot.slane %v3541_v34, 1  ;;  %v3600_v10 = vrot.slane %v3598_v40, 1  ;;  %v3764_v19 = vrot.slane %v3509_v21, 1 }
 0x226   : > { %v7532_v62 = vrot.slane %v3363_v9, 7 }
 0x227   : > { %v5268_v44 = vpop.f32.mrb[12].mxu0  ;;  %v3901_v37 = vsel %vm2046_vm2, %v3899_v6, %v3900_v36  ;;  %v7538_v59 = vsel %vm1864_vm13, %v3596_v43, %v3600_v10  ;;  %v3765_v9 = vsel %vm2046_vm2, %v3762_v39, %v3764_v19  ;;  %v3602_v43 = vshrl.u32 %v7512_v26, 16 }
 0x228   : > { %v5269_v30 = vpop.f32.mrb[13].mxu0  ;;  %v3368_v50 = vor.u32 %v3366_v48, %v7532_v62  ;;  %v8922_v48 = vld [vmem:[#allocation25_spill] sm:$0xff] }
 0x229   : > { %v5270_v34 = vadd.f32 %v5269_v30, %v5268_v44  ;;  %v5271_v40 = vpop.f32.mrb[14].mxu0  ;;  %3844 = vrot.lane.b32.xlu1 %v3525_v17, %s5726_s13  ;;  %3932 = vrot.lane.b32.xlu0 %v3901_v37, %s5725_s10 }
 0x22a   : > { %v5272_v5 = vpop.f32.mrb[15].mxu0  ;;  %v7548_v6 = vsel %vm624_vm6, %v3357_v63, %v3368_v50 }
 0x22b   : > { %8921 = vst [vmem:[#allocation46_spill] sm:$0xff] %v7548_v6  ;;  %v3055_v57 = vadd.f32 %v7297_v54, %v5270_v34  ;;  %v5273_v31 = vadd.f32 %v5272_v5, %v5271_v40  ;;  %v3558_v44 = vmul.bf16 %v6294_v12, %v7548_v6  ;;  %v3574_v21 = vmul.bf16 %v7548_v6, %v8916_v28 }
 0x22c   : > { %v3606_v7 = vshll.u32 %v7548_v6, 16  ;;  %v3542_v37 = vmul.bf16 %v7548_v6, %v8920_v25  ;;  %v4064_v54 = vrot.slane %v3573_v29, 1  ;;  %v3510_v17 = vmul.bf16 %v7548_v6, %v8922_v48 }
 0x22d   : > { %v3170_v39 = vmul.f32 %v7429_v27, %v3055_v57  ;;  %v3058_v63 = vadd.f32 %v7305_v41, %v5273_v31  ;;  %3716 = vrot.lane.b32.xlu1 %v7538_v59, %s5725_s10  ;;  %3982 = vrot.lane.b32.xlu0 %v3558_v44, %s5728_s21  ;;  %v4065_v30 = vrot.slane %v3574_v21, 1  ;;  %v3604_v28 = vor.u32 %v3602_v43, %v3600_v10 }
 0x22e   : > { %v3608_v50 = vrot.slane %v3606_v7, 1  ;;  %v3902_v34 = vrot.slane %v3542_v37, 1  ;;  %v3766_v57 = vrot.slane %v3510_v17, 1  ;;  %v3526_v44 = vmul.bf16 %v6357_v60, %v7548_v6 }
 0x22f   : > { %v3209_v40 = vadd.f32 %v7438_v3, %v3170_v39  ;;  %v3171_v5 = vmul.f32 %v7429_v27, %v3058_v63  ;;  %v4066_v41 = vsel %vm2046_vm2, %v4064_v54, %v4065_v30 }
 0x230   : > { %v7570_v31 = vsel %vm1864_vm13, %v3604_v28, %v3608_v50  ;;  %v3903_v29 = vsel %vm2046_vm2, %v3900_v36, %v3902_v34  ;;  %5534 = vmatprep.mubr.msk.bf16.mxu0 %vm2384_vm3, %v4066_v41  ;;  %v3767_v10 = vsel %vm2046_vm2, %v3764_v19, %v3766_v57 }
 0x231   : > { %v3273_v2 = vmul.f32 0.1, %v3209_v40  ;;  %v3210_v11 = vadd.f32 %v7438_v3, %v3171_v5  ;;  %3796 = vrot.lane.b32.xlu1 %v3765_v9, %s5728_s21  ;;  %vm3241_vm12 = vcmp.gt.f32.partialorder %v3209_v40, 0.0  ;;  %4016 = vrot.lane.b32.xlu0 %v7570_v31, %s5726_s13 }
 0x233   : > { %vm3242_vm0 = vcmp.gt.f32.partialorder %v3210_v11, 0.0  ;;  %v3274_v43 = vmul.f32 0.1, %v3210_v11  ;;  %v3305_v36 = vsel %vm3241_vm12, %v3209_v40, %v3273_v2 }
 0x234   : > { %v7581_v21 = vpop.f32.mrb[24].mxu1 }
 0x235   : > { %v3306_v7 = vsel %vm3242_vm0, %v3210_v11, %v3274_v43  ;;  %v7583_v37 = vpop.f32.mrb[25].mxu1  ;;  %3846 = vrot.lane.b32.xlu1 %v3526_v44, %s5726_s13  ;;  %3934 = vrot.lane.b32.xlu0 %v3903_v29, %s5725_s10  ;;  %v3610_v43 = vshrl.u32 %v7548_v6, 16 }
 0x236   : > { %v3334_v9 = vpack.c.bf16 %v3306_v7, %v3305_v36  ;;  %v7587_v19 = vpop.f32.mrb[26].mxu1 }
 0x237   : > { %v7589_v39 = vpop.f32.mrb[27].mxu1 }
 0x238   : > { %v3371_v63 = vshrl.u32 %v3334_v9, 16  ;;  %v3374_v17 = vshll.u32 %v3334_v9, 16 }
 0x239   : > { %3718 = vrot.lane.b32.xlu1 %v7570_v31, %s5725_s10 }
 0x23a   : > { %v3373_v54 = vrot.slane %v3371_v63, 7 }
 0x23b   : > { %v5274_v28 = vpop.f32.mrb[16].mxu0 }
 0x23c   : > { %v3376_v2 = vor.u32 %v3374_v17, %v3373_v54  ;;  %v5275_v11 = vpop.f32.mrb[17].mxu0  ;;  %v8924_v17 = vld [vmem:[#allocation29_spill] sm:$0xff] }
 0x23d   : > { %v5276_v40 = vadd.f32 %v5275_v11, %v5274_v28  ;;  %v5277_v5 = vpop.f32.mrb[18].mxu0  ;;  %3798 = vrot.lane.b32.xlu1 %v3767_v10, %s5728_s21  ;;  %v3612_v11 = vor.u32 %v3610_v43, %v3608_v50 }
 0x23e   : > { %v7596_v41 = vsel %vm624_vm6, %v7532_v62, %v3376_v2  ;;  %v5278_v29 = vpop.f32.mrb[19].mxu0 }
 0x23f   : > { %8923 = vst [vmem:[#allocation24_spill] sm:$0xff] %v7596_v41  ;;  %v3063_v44 = vadd.f32 %v5276_v40, %v7323_v24  ;;  %v5279_v36 = vadd.f32 %v5278_v29, %v5277_v5  ;;  %v3559_v7 = vmul.bf16 %v6357_v60, %v7596_v41  ;;  %v3527_v9 = vmul.bf16 %v6480_v23, %v7596_v41 }
 0x240   : > { %v3575_v63 = vmul.bf16 %v7596_v41, %v8920_v25  ;;  %v3614_v10 = vshll.u32 %v7596_v41, 16  ;;  %v3543_v62 = vmul.bf16 %v7596_v41, %v8922_v48  ;;  %v3511_v28 = vmul.bf16 %v7596_v41, %v8924_v17 }
 0x241   : > { %v3172_v24 = vmul.f32 %v7429_v27, %v3063_v44  ;;  %v3066_v2 = vadd.f32 %v5279_v36, %v7327_v35  ;;  %3984 = vrot.lane.b32.xlu0 %v3559_v7, %s5728_s21  ;;  %3848 = vrot.lane.b32.xlu1 %v3527_v9, %s5726_s13 }
 0x242   : > { %v4067_v40 = vrot.slane %v3575_v63, 1  ;;  %v3616_v5 = vrot.slane %v3614_v10, 1  ;;  %v3904_v25 = vrot.slane %v3543_v62, 1  ;;  %v3768_v29 = vrot.slane %v3511_v28, 1 }
 0x243   : > { %v3211_v6 = vadd.f32 %v7438_v3, %v3172_v24  ;;  %v3173_v15 = vmul.f32 %v7429_v27, %v3066_v2 }
 0x244   : > { %v4068_v60 = vsel %vm2046_vm2, %v4065_v30, %v4067_v40  ;;  %v7619_v26 = vsel %vm1864_vm13, %v3612_v11, %v3616_v5  ;;  %v3905_v35 = vsel %vm2046_vm2, %v3902_v34, %v3904_v25  ;;  %v3769_v44 = vsel %vm2046_vm2, %v3766_v57, %v3768_v29 }
 0x245   : > { %v3275_v36 = vmul.f32 0.1, %v3211_v6  ;;  %v3212_v50 = vadd.f32 %v7438_v3, %v3173_v15  ;;  %5535 = vmatmul.mubr.msk.bf16.vlgmr.msra.gmra.mrb[64].mxu0 %vm2384_vm3, %v4068_v60  ;;  %4018 = vrot.lane.b32.xlu0 %v7619_v26, %s5726_s13  ;;  %vm3243_vm1 = vcmp.gt.f32.partialorder %v3211_v6, 0.0 }
 0x246   : > { %3720 = vrot.lane.b32.xlu1 %v7619_v26, %s5725_s10 }
 0x247   : > { %vm3244_vm7 = vcmp.gt.f32.partialorder %v3212_v50, 0.0  ;;  %v3276_v30 = vmul.f32 0.1, %v3212_v50  ;;  %v3307_v43 = vsel %vm3243_vm1, %v3211_v6, %v3275_v36 }
 0x249   : > { %v3308_v7 = vsel %vm3244_vm7, %v3212_v50, %v3276_v30  ;;  %3936 = vrot.lane.b32.xlu0 %v3905_v35, %s5725_s10  ;;  %v7630_v34 = vpop.f32.mrb[28].mxu1 }
 0x24a   : > { %8925 = vst [vmem:[#allocation49_spill] sm:$0xff] %v7630_v34  ;;  %v3335_v57 = vpack.c.bf16 %v3308_v7, %v3307_v43  ;;  %3800 = vrot.lane.b32.xlu1 %v3769_v44, %s5728_s21  ;;  %v7633_v15 = vpop.f32.mrb[29].mxu1  ;;  %v3618_v44 = vshrl.u32 %v7596_v41, 16 }
 0x24b   : > { %v7635_v60 = vpop.f32.mrb[30].mxu1 }
 0x24c   : > { %8926 = vst [vmem:[#allocation37_spill] sm:$0xff] %v7635_v60  ;;  %v3379_v9 = vshrl.u32 %v3335_v57, 16  ;;  %v7637_v63 = vpop.f32.mrb[31].mxu1  ;;  %v3382_v62 = vshll.u32 %v3335_v57, 16 }
 0x24e   : > { %v3381_v10 = vrot.slane %v3379_v9, 7 }
 0x24f   : > { %v5280_v28 = vpop.f32.mrb[20].mxu0 }
 0x250   : > { %v3384_v24 = vor.u32 %v3382_v62, %v3381_v10  ;;  %v5281_v6 = vpop.f32.mrb[21].mxu0  ;;  %v8927_v62 = vld [vmem:[#allocation31_spill] sm:$0xff] }
 0x251   : > { %v5282_v2 = vadd.f32 %v5281_v6, %v5280_v28  ;;  %v5283_v11 = vpop.f32.mrb[22].mxu0  ;;  %v3620_v6 = vor.u32 %v3618_v44, %v3616_v5 }
 0x252   : > { %v7640_v35 = vsel %vm624_vm6, %v3373_v54, %v3384_v24  ;;  %v5284_v36 = vpop.f32.mrb[23].mxu0 }
 0x253   : > { %v3071_v50 = vadd.f32 %v7320_v42, %v5282_v2  ;;  %v5285_v30 = vadd.f32 %v5284_v36, %v5283_v11  ;;  %v3560_v43 = vmul.bf16 %v6480_v23, %v7640_v35  ;;  %v3528_v7 = vmul.bf16 %v8898_v47, %v7640_v35 }
 0x254   : > { %v3576_v57 = vmul.bf16 %v7640_v35, %v8922_v48  ;;  %v3622_v9 = vshll.u32 %v7640_v35, 16  ;;  %v3544_v54 = vmul.bf16 %v7640_v35, %v8924_v17  ;;  %v3512_v28 = vmul.bf16 %v7640_v35, %v8927_v62 }
 0x255   : > { %v3174_v42 = vmul.f32 %v7429_v27, %v3071_v50  ;;  %v3074_v24 = vadd.f32 %v7325_v61, %v5285_v30  ;;  %3986 = vrot.lane.b32.xlu0 %v3560_v43, %s5728_s21  ;;  %3850 = vrot.lane.b32.xlu1 %v3528_v7, %s5726_s13 }
 0x256   : > { %v4069_v2 = vrot.slane %v3576_v57, 1  ;;  %v3624_v11 = vrot.slane %v3622_v9, 1  ;;  %v7659_v48 = vrot.slane %v3544_v54, 1  ;;  %v7661_v36 = vrot.slane %v3512_v28, 1 }
 0x257   : > { %v3213_v41 = vadd.f32 %v7438_v3, %v3174_v42  ;;  %v3175_v60 = vmul.f32 %v7429_v27, %v3074_v24 }
 0x258   : > { %v4070_v34 = vsel %vm2046_vm2, %v4067_v40, %v4069_v2  ;;  %v7667_v50 = vsel %vm1864_vm13, %v3620_v6, %v3624_v11  ;;  %v3907_v61 = vsel %vm2046_vm2, %v3904_v25, %v7659_v48  ;;  %v3771_v5 = vsel %vm2046_vm2, %v3768_v29, %v7661_v36 }
 0x259   : > { %8928 = vst [vmem:[#allocation20_spill] sm:$0xff] %v7667_v50  ;;  %v3277_v44 = vmul.f32 0.1, %v3213_v41  ;;  %v3214_v30 = vadd.f32 %v7438_v3, %v3175_v60  ;;  %5538 = vmatprep.mubr.msk.bf16.mxu0 %vm2384_vm3, %v4070_v34  ;;  %4020 = vrot.lane.b32.xlu0 %v7667_v50, %s5726_s13  ;;  %vm3245_vm4 = vcmp.gt.f32.partialorder %v3213_v41, 0.0 }
 0x25a   : > { %3722 = vrot.lane.b32.xlu1 %v7667_v50, %s5725_s10 }
 0x25b   : > { %vm3246_vm5 = vcmp.gt.f32.partialorder %v3214_v30, 0.0  ;;  %v3278_v40 = vmul.f32 0.1, %v3214_v30  ;;  %v3309_v43 = vsel %vm3245_vm4, %v3213_v41, %v3277_v44 }
 0x25d   : > { %v3310_v7 = vsel %vm3246_vm5, %v3214_v30, %v3278_v40  ;;  %3938 = vrot.lane.b32.xlu0 %v3907_v61, %s5725_s10 }
 0x25e   : > { %v3336_v25 = vpack.c.bf16 %v3310_v7, %v3309_v43  ;;  %3802 = vrot.lane.b32.xlu1 %v3771_v5, %s5728_s21  ;;  %v3626_v5 = vshrl.u32 %v7640_v35, 16 }
 0x25f   : > { %v5286_v29 = vpop.f32.mrb[24].mxu0 }
 0x260   : > { %v3387_v60 = vshrl.u32 %v3336_v25, 16  ;;  %v5287_v57 = vpop.f32.mrb[25].mxu0  ;;  %v3390_v28 = vshll.u32 %v3336_v25, 16 }
 0x261   : > { %v5288_v34 = vadd.f32 %v5287_v57, %v5286_v29  ;;  %v5289_v9 = vpop.f32.mrb[26].mxu0  ;;  %v3628_v57 = vor.u32 %v3626_v5, %v3624_v11 }
 0x262   : > { %v3389_v54 = vrot.slane %v3387_v60, 7  ;;  %v5290_v42 = vpop.f32.mrb[27].mxu0 }
 0x263   : > { %v3079_v24 = vadd.f32 %v5288_v34, %v7340_v56  ;;  %v5291_v6 = vadd.f32 %v5290_v42, %v5289_v9 }
 0x264   : > { %v3392_v50 = vor.u32 %v3390_v28, %v3389_v54 }
 0x265   : > { %v3176_v41 = vmul.f32 %v7429_v27, %v3079_v24  ;;  %v3082_v44 = vadd.f32 %v5291_v6, %v7344_v16 }
 0x266   : > { %v7685_v61 = vsel %vm624_vm6, %v3381_v10, %v3392_v50  ;;  %v8930_v50 = vld [vmem:[#allocation32_spill] sm:$0xff] }
 0x267   : > { %8929 = vst [vmem:[#allocation19_spill] sm:$0xff] %v7685_v61  ;;  %v3215_v30 = vadd.f32 %v7438_v3, %v3176_v41  ;;  %v3177_v40 = vmul.f32 %v7429_v27, %v3082_v44  ;;  %v3561_v43 = vmul.bf16 %v8898_v47, %v7685_v61  ;;  %v3529_v56 = vmul.bf16 %v8906_v49, %v7685_v61 }
 0x268   : > { %v3577_v7 = vmul.bf16 %v7685_v61, %v8924_v17  ;;  %v3630_v16 = vshll.u32 %v7685_v61, 16  ;;  %v3545_v10 = vmul.bf16 %v7685_v61, %v8927_v62  ;;  %v3513_v25 = vmul.bf16 %v7685_v61, %v8930_v50 }
 0x269   : > { %vm3247_vm8 = vcmp.gt.f32.partialorder %v3215_v30, 0.0  ;;  %v3279_v29 = vmul.f32 0.1, %v3215_v30  ;;  %v3216_v60 = vadd.f32 %v7438_v3, %v3177_v40  ;;  %3988 = vrot.lane.b32.xlu0 %v3561_v43, %s5728_s21  ;;  %3852 = vrot.lane.b32.xlu1 %v3529_v56, %s5726_s13 }
 0x26a   : > { %v5292_v34 = vpop.f32.mrb[28].mxu0  ;;  %v7704_v9 = vrot.slane %v3577_v7, 1  ;;  %v3632_v17 = vrot.slane %v3630_v16, 1  ;;  %v7706_v28 = vrot.slane %v3545_v10, 1  ;;  %v7708_v42 = vrot.slane %v3513_v25, 1 }
 0x26b   : > { %vm3248_vm9 = vcmp.gt.f32.partialorder %v3216_v60, 0.0  ;;  %v3280_v24 = vmul.f32 0.1, %v3216_v60  ;;  %v5293_v6 = vpop.f32.mrb[29].mxu0  ;;  %v3311_v5 = vsel %vm3247_vm8, %v3215_v30, %v3279_v29 }
 0x26c   : > { %v5294_v41 = vadd.f32 %v5293_v6, %v5292_v34  ;;  %v4072_v44 = vsel %vm2046_vm2, %v4069_v2, %v7704_v9  ;;  %v5295_v40 = vpop.f32.mrb[30].mxu0  ;;  %v7713_v43 = vsel %vm1864_vm13, %v3628_v57, %v3632_v17  ;;  %v3909_v11 = vsel %vm2046_vm2, %v7659_v48, %v7706_v28 }
 0x26d   : > { %v3312_v56 = vsel %vm3248_vm9, %v3216_v60, %v3280_v24  ;;  %5539 = vmatmul.mubr.msk.bf16.gmra.mrb[68].mxu0 %vm2384_vm3, %v4072_v44  ;;  %4022 = vrot.lane.b32.xlu0 %v7713_v43, %s5726_s13  ;;  %v5296_v7 = vpop.f32.mrb[31].mxu0  ;;  %v3773_v2 = vsel %vm2046_vm2, %v7661_v36, %v7708_v42 }
 0x26e   : > { %v3337_v16 = vpack.c.bf16 %v3312_v56, %v3311_v5  ;;  %v3087_v10 = vadd.f32 %v7338_v55, %v5294_v41  ;;  %3724 = vrot.lane.b32.xlu1 %v7713_v43, %s5725_s10  ;;  %v5297_v48 = vadd.f32 %v5296_v7, %v5295_v40  ;;  %v3634_v41 = vshrl.u32 %v7685_v61, 16 }
 0x270   : > { %v3395_v25 = vshrl.u32 %v3337_v16, 16  ;;  %v3178_v30 = vmul.f32 %v7429_v27, %v3087_v10  ;;  %v3090_v29 = vadd.f32 %v7342_v38, %v5297_v48  ;;  %v3398_v57 = vshll.u32 %v3337_v16, 16 }
 0x271   : > { %3940 = vrot.lane.b32.xlu0 %v3909_v11, %s5725_s10 }
 0x272   : > { %v3397_v60 = vrot.slane %v3395_v25, 7  ;;  %v3217_v34 = vadd.f32 %v7438_v3, %v3178_v30  ;;  %v3179_v36 = vmul.f32 %v7429_v27, %v3090_v29  ;;  %3804 = vrot.lane.b32.xlu1 %v3773_v2, %s5728_s21  ;;  %v8932_v30 = vld [vmem:[#allocation35_spill] sm:$0xff] }
 0x274   : > { %v3400_v55 = vor.u32 %v3398_v57, %v3397_v60  ;;  %vm3249_vm11 = vcmp.gt.f32.partialorder %v3217_v34, 0.0  ;;  %v3281_v24 = vmul.f32 0.1, %v3217_v34  ;;  %v3218_v6 = vadd.f32 %v7438_v3, %v3179_v36 }
 0x276   : > { %v7737_v44 = vsel %vm624_vm6, %v3389_v54, %v3400_v55  ;;  %v3313_v38 = vsel %vm3249_vm11, %v3217_v34, %v3281_v24  ;;  %vm3250_vm12 = vcmp.gt.f32.partialorder %v3218_v6, 0.0  ;;  %v3282_v40 = vmul.f32 0.1, %v3218_v6  ;;  %v5298_v11 = vpop.f32.mrb[32].mxu0 }
 0x277   : > { %8931 = vst [vmem:[#allocation28_spill] sm:$0xff] %v7737_v44  ;;  %v5299_v5 = vpop.f32.mrb[33].mxu0  ;;  %v3562_v56 = vmul.bf16 %v8906_v49, %v7737_v44  ;;  %v3530_v7 = vmul.bf16 %v8910_v1, %v7737_v44  ;;  %v3578_v2 = vmul.bf16 %v7737_v44, %v8927_v62  ;;  %v3638_v16 = vshll.u32 %v7737_v44, 16 }
 0x278   : > { %v3314_v10 = vsel %vm3250_vm12, %v3218_v6, %v3282_v40  ;;  %v5300_v48 = vadd.f32 %v5299_v5, %v5298_v11  ;;  %v5301_v54 = vpop.f32.mrb[34].mxu0  ;;  %v3546_v25 = vmul.bf16 %v7737_v44, %v8930_v50  ;;  %v3514_v29 = vmul.bf16 %v7737_v44, %v8932_v30 }
 0x279   : > { %v3338_v57 = vpack.c.bf16 %v3314_v10, %v3313_v38  ;;  %3990 = vrot.lane.b32.xlu0 %v3562_v56, %s5728_s21  ;;  %3854 = vrot.lane.b32.xlu1 %v3530_v7, %s5726_s13  ;;  %v5302_v34 = vpop.f32.mrb[35].mxu0  ;;  %v4073_v36 = vrot.slane %v3578_v2, 1  ;;  %v3636_v55 = vor.u32 %v3634_v41, %v3632_v17  ;;  %v3640_v62 = vrot.slane %v3638_v16, 1 }
 0x27a   : > { %v3095_v24 = vadd.f32 %v5300_v48, %v7371_v0  ;;  %v5303_v6 = vadd.f32 %v5302_v34, %v5301_v54  ;;  %v3910_v40 = vrot.slane %v3546_v25, 1  ;;  %v3774_v11 = vrot.slane %v3514_v29, 1 }
 0x27b   : > { %v3403_v5 = vshrl.u32 %v3338_v57, 16  ;;  %v4074_v61 = vsel %vm2046_vm2, %v7704_v9, %v4073_v36  ;;  %v7756_v49 = vsel %vm1864_vm13, %v3636_v55, %v3640_v62  ;;  %v3406_v7 = vshll.u32 %v3338_v57, 16 }
 0x27c   : > { %v3180_v38 = vmul.f32 %v7429_v27, %v3095_v24  ;;  %v3098_v56 = vadd.f32 %v5303_v6, %v7378_v51  ;;  %5542 = vmatprep.mubr.msk.bf16.mxu0 %vm2384_vm3, %v4074_v61  ;;  %v3911_v17 = vsel %vm2046_vm2, %v7706_v28, %v3910_v40  ;;  %v3775_v0 = vsel %vm2046_vm2, %v7708_v42, %v3774_v11 }
 0x27d   : > { %v3405_v41 = vrot.slane %v3403_v5, 7  ;;  %4024 = vrot.lane.b32.xlu0 %v7756_v49, %s5726_s13  ;;  %3726 = vrot.lane.b32.xlu1 %v7756_v49, %s5725_s10  ;;  %v3642_v28 = vshrl.u32 %v7737_v44, 16 }
 0x27e   : > { %v3219_v9 = vadd.f32 %v7438_v3, %v3180_v38  ;;  %v3181_v51 = vmul.f32 %v7429_v27, %v3098_v56  ;;  %v8933_v56 = vld [vmem:[#allocation39_spill] sm:$0xff] }
 0x27f   : > { %v3408_v2 = vor.u32 %v3406_v7, %v3405_v41  ;;  %v3644_v25 = vor.u32 %v3642_v28, %v3640_v62 }
 0x280   : > { %v3283_v61 = vmul.f32 0.1, %v3219_v9  ;;  %v3220_v16 = vadd.f32 %v7438_v3, %v3181_v51  ;;  %vm3251_vm0 = vcmp.gt.f32.partialorder %v3219_v9, 0.0 }
 0x281   : > { %v7774_v42 = vsel %vm624_vm6, %v3397_v60, %v3408_v2  ;;  %3942 = vrot.lane.b32.xlu0 %v3911_v17, %s5725_s10  ;;  %3806 = vrot.lane.b32.xlu1 %v3775_v0, %s5728_s21 }
 0x282   : > { %vm3252_vm1 = vcmp.gt.f32.partialorder %v3220_v16, 0.0  ;;  %v3284_v10 = vmul.f32 0.1, %v3220_v16  ;;  %v5304_v48 = vpop.f32.mrb[36].mxu0  ;;  %v3563_v54 = vmul.bf16 %v8910_v1, %v7774_v42  ;;  %v3531_v57 = vmul.bf16 %v6889_v13, %v7774_v42 }
 0x283   : > { %v5305_v29 = vpop.f32.mrb[37].mxu0  ;;  %v3579_v60 = vmul.bf16 %v7774_v42, %v8930_v50  ;;  %v3646_v34 = vshll.u32 %v7774_v42, 16  ;;  %v3547_v55 = vmul.bf16 %v7774_v42, %v8932_v30  ;;  %v3315_v24 = vsel %vm3251_vm0, %v3219_v9, %v3283_v61 }
 0x284   : > { %v3316_v6 = vsel %vm3252_vm1, %v3220_v16, %v3284_v10  ;;  %v5306_v5 = vadd.f32 %v5305_v29, %v5304_v48  ;;  %v5307_v38 = vpop.f32.mrb[38].mxu0  ;;  %v3515_v17 = vmul.bf16 %v7774_v42, %v8933_v56 }
 0x285   : > { %v3339_v62 = vpack.c.bf16 %v3316_v6, %v3315_v24  ;;  %3992 = vrot.lane.b32.xlu0 %v3563_v54, %s5728_s21  ;;  %3856 = vrot.lane.b32.xlu1 %v3531_v57, %s5726_s13  ;;  %v5308_v0 = vpop.f32.mrb[39].mxu0  ;;  %v4075_v7 = vrot.slane %v3579_v60, 1  ;;  %v3648_v50 = vrot.slane %v3646_v34, 1  ;;  %v3912_v51 = vrot.slane %v3547_v55, 1 }
 0x286   : > { %v3103_v2 = vadd.f32 %v7367_v20, %v5306_v5  ;;  %v5309_v28 = vadd.f32 %v5308_v0, %v5307_v38  ;;  %v3776_v44 = vrot.slane %v3515_v17, 1 }
 0x287   : > { %v3411_v9 = vshrl.u32 %v3339_v62, 16  ;;  %v4076_v61 = vsel %vm2046_vm2, %v4073_v36, %v4075_v7  ;;  %v7794_v16 = vsel %vm1864_vm13, %v3644_v25, %v3648_v50  ;;  %v3913_v54 = vsel %vm2046_vm2, %v3910_v40, %v3912_v51 }
 0x288   : > { %v3182_v10 = vmul.f32 %v7429_v27, %v3103_v2  ;;  %v3106_v48 = vadd.f32 %v7375_v18, %v5309_v28  ;;  %5543 = vmatmul.mubr.msk.bf16.gmra.mrb[72].mxu0 %vm2384_vm3, %v4076_v61  ;;  %v3777_v29 = vsel %vm2046_vm2, %v3774_v11, %v3776_v44  ;;  %v3414_v20 = vshll.u32 %v3339_v62, 16 }
 0x289   : > { %v3413_v57 = vrot.slane %v3411_v9, 7  ;;  %4026 = vrot.lane.b32.xlu0 %v7794_v16, %s5726_s13  ;;  %3728 = vrot.lane.b32.xlu1 %v7794_v16, %s5725_s10  ;;  %v3650_v40 = vshrl.u32 %v7774_v42, 16 }
 0x28a   : > { %v3221_v36 = vadd.f32 %v7438_v3, %v3182_v10  ;;  %v3183_v25 = vmul.f32 %v7429_v27, %v3106_v48  ;;  %v8935_v48 = vld [vmem:[#allocation40_spill] sm:$0xff] }
 0x28b   : > { %v3416_v60 = vor.u32 %v3414_v20, %v3413_v57  ;;  %v3652_v5 = vor.u32 %v3650_v40, %v3648_v50 }
 0x28c   : > { %v3285_v18 = vmul.f32 0.1, %v3221_v36  ;;  %v3222_v34 = vadd.f32 %v7438_v3, %v3183_v25  ;;  %vm3253_vm7 = vcmp.gt.f32.partialorder %v3221_v36, 0.0 }
 0x28d   : > { %v7810_v11 = vsel %vm624_vm6, %v3405_v41, %v3416_v60  ;;  %3944 = vrot.lane.b32.xlu0 %v3913_v54, %s5725_s10  ;;  %3808 = vrot.lane.b32.xlu1 %v3777_v29, %s5728_s21 }
 0x28e   : > { %8934 = vst [vmem:[#allocation22_spill] sm:$0xff] %v7810_v11  ;;  %vm3254_vm4 = vcmp.gt.f32.partialorder %v3222_v34, 0.0  ;;  %v3286_v55 = vmul.f32 0.1, %v3222_v34  ;;  %v5310_v24 = vpop.f32.mrb[40].mxu0  ;;  %v3564_v6 = vmul.bf16 %v6889_v13, %v7810_v11  ;;  %v3532_v62 = vmul.bf16 %v6936_v4, %v7810_v11 }
 0x28f   : > { %v7816_v38 = vpop.permute.xlu1 %3842  ;;  %v5311_v17 = vpop.f32.mrb[41].mxu0  ;;  %v3580_v41 = vmul.bf16 %v7810_v11, %v8932_v30  ;;  %v3654_v0 = vshll.u32 %v7810_v11, 16  ;;  %v3548_v2 = vmul.bf16 %v7810_v11, %v8933_v56  ;;  %v3317_v28 = vsel %vm3253_vm7, %v3221_v36, %v3285_v18 }
 0x290   : > { %v3318_v9 = vsel %vm3254_vm4, %v3222_v34, %v3286_v55  ;;  %v5312_v61 = vadd.f32 %v5311_v17, %v5310_v24  ;;  %v5313_v10 = vpop.f32.mrb[42].mxu0  ;;  %v3516_v50 = vmul.bf16 %v7810_v11, %v8935_v48 }
 0x291   : > { %v3340_v54 = vpack.c.bf16 %v3318_v9, %v3317_v28  ;;  %3994 = vrot.lane.b32.xlu0 %v3564_v6, %s5728_s21  ;;  %3858 = vrot.lane.b32.xlu1 %v3532_v62, %s5726_s13  ;;  %v5314_v29 = vpop.f32.mrb[43].mxu0  ;;  %v4077_v20 = vrot.slane %v3580_v41, 1  ;;  %v3656_v30 = vrot.slane %v3654_v0, 1  ;;  %v7829_v25 = vrot.slane %v3548_v2, 1 }
 0x292   : > { %v3111_v60 = vadd.f32 %v5312_v61, %v7395_v8  ;;  %v5315_v40 = vadd.f32 %v5314_v29, %v5313_v10  ;;  %v7832_v36 = vrot.slane %v3516_v50, 1  ;;  %v3658_v50 = vshrl.u32 %v7810_v11, 16 }
 0x293   : > { %v3419_v18 = vshrl.u32 %v3340_v54, 16  ;;  %v3715_v34 = vpop.permute.xlu1 %3714  ;;  %v4078_v55 = vsel %vm2046_vm2, %v4075_v7, %v4077_v20  ;;  %v7836_v24 = vsel %vm1864_vm13, %v3652_v5, %v3656_v30  ;;  %v3915_v62 = vsel %vm2046_vm2, %v3912_v51, %v7829_v25 }
 0x294   : > { %v3184_v6 = vmul.f32 %v7429_v27, %v3111_v60  ;;  %v3114_v17 = vadd.f32 %v5315_v40, %v7403_v52  ;;  %5546 = vmatprep.mubr.msk.bf16.mxu0 %vm2384_vm3, %v4078_v55  ;;  %v3422_v41 = vshll.u32 %v3340_v54, 16  ;;  %v3779_v7 = vsel %vm2046_vm2, %v3776_v44, %v7832_v36 }
 0x295   : > { %v7843_v8 = vrot.slane %v3419_v18, 7  ;;  %4028 = vrot.lane.b32.xlu0 %v7836_v24, %s5726_s13  ;;  %3730 = vrot.lane.b32.xlu1 %v7836_v24, %s5725_s10  ;;  %v3660_v11 = vor.u32 %v3658_v50, %v3656_v30  ;;  %v8937_v30 = vmul.bf16 0, %v6234_v45 }
 0x296   : > { %v3223_v5 = vadd.f32 %v7438_v3, %v3184_v6  ;;  %v3185_v52 = vmul.f32 %v7429_v27, %v3114_v17 }
 0x297   : > { %v3424_v0 = vor.u32 %v3422_v41, %v7843_v8  ;;  %v3795_v2 = vpop.permute.xlu1 %3794  ;;  %v3981_v9 = vpop.permute.xlu0 %3980  ;;  %v8936_v41 = vld [vmem:[#allocation43_spill] sm:$0xff]  ;;  %v4097_v50 = vsel %vm2384_vm3, %v8937_v30, %v3715_v34 }
 0x298   : > { %v3287_v51 = vmul.f32 0.1, %v3223_v5  ;;  %v3224_v28 = vadd.f32 %v7438_v3, %v3185_v52  ;;  %vm3255_vm5 = vcmp.gt.f32.partialorder %v3223_v5, 0.0 }
 0x299   : > { %v7856_v61 = vsel %vm624_vm6, %v3413_v57, %v3424_v0  ;;  %3946 = vrot.lane.b32.xlu0 %v3915_v62, %s5725_s10  ;;  %3810 = vrot.lane.b32.xlu1 %v3779_v7, %s5728_s21 }
 0x29a   : > { %vm3256_vm8 = vcmp.gt.f32.partialorder %v3224_v28, 0.0  ;;  %v3288_v44 = vmul.f32 0.1, %v3224_v28  ;;  %v5316_v10 = vpop.f32.mrb[44].mxu0  ;;  %v3565_v27 = vmul.bf16 %v6936_v4, %v7856_v61  ;;  %v3533_v3 = vmul.bf16 %v8914_v53, %v7856_v61 }
 0x29b   : > { %v5317_v54 = vpop.f32.mrb[45].mxu0  ;;  %v7863_v29 = vpop.permute.xlu1 %3844  ;;  %v3581_v57 = vmul.bf16 %v7856_v61, %v8933_v56  ;;  %v3662_v60 = vshll.u32 %v7856_v61, 16  ;;  %v3549_v40 = vmul.bf16 %v7856_v61, %v8935_v48  ;;  %v3319_v18 = vsel %vm3255_vm5, %v3223_v5, %v3287_v51 }
 0x29c   : > { %v3320_v55 = vsel %vm3256_vm8, %v3224_v28, %v3288_v44  ;;  %v5318_v6 = vadd.f32 %v5317_v54, %v5316_v10  ;;  %v3933_v17 = vpop.permute.xlu0 %3932  ;;  %v5319_v62 = vpop.f32.mrb[46].mxu0  ;;  %v3517_v7 = vmul.bf16 %v7856_v61, %v8936_v41 }
 0x29d   : > { %v3341_v52 = vpack.c.bf16 %v3320_v55, %v3319_v18  ;;  %3996 = vrot.lane.b32.xlu0 %v3565_v27, %s5728_s21  ;;  %3860 = vrot.lane.b32.xlu1 %v3533_v3, %s5726_s13  ;;  %v5320_v0 = vpop.f32.mrb[47].mxu0  ;;  %v7876_v56 = vrot.slane %v3581_v57, 1  ;;  %v7878_v4 = vrot.slane %v3662_v60, 1  ;;  %v7881_v28 = vrot.slane %v3549_v40, 1 }
 0x29e   : > { %v3119_v5 = vadd.f32 %v7391_v32, %v5318_v6  ;;  %v5321_v51 = vadd.f32 %v5320_v0, %v5319_v62  ;;  %v7883_v44 = vrot.slane %v3517_v7, 1  ;;  %v7899_v32 = vld [vmem:[%s8696_s5] ss:$0 sm:$0xff]  ;;  %v4225_v40 = vsel %vm2384_vm3, %v7538_v59, %v3933_v17 }
 0x29f   : > { %v3427_v10 = vshrl.u32 %v3341_v52, 16  ;;  %v4080_v54 = vsel %vm2046_vm2, %v4077_v20, %v7876_v56  ;;  %v7887_v27 = vpop.permute.xlu1 %3716  ;;  %v7891_v3 = vsel %vm1864_vm13, %v3660_v11, %v7878_v4  ;;  %v3917_v11 = vsel %vm2046_vm2, %v7829_v25, %v7881_v28  ;;  %v7924_v25 = vld [vmem:[%s8697_s6] ss:$0 sm:$0xff] }
 0x2a0   : > { %v3186_v57 = vmul.f32 %v7899_v32, %v3119_v5  ;;  %v3122_v60 = vadd.f32 %v7399_v46, %v5321_v51  ;;  %5547 = vmatmul.mubr.msk.bf16.gmra.mrb[76].mxu0 %vm2384_vm3, %v4080_v54  ;;  %v7904_v20 = vpop.permute.xlu0 %3982  ;;  %v3430_v34 = vshll.u32 %v3341_v52, 16  ;;  %v3781_v46 = vsel %vm2046_vm2, %v7832_v36, %v7883_v44 }
 0x2a1   : > { %v7909_v45 = vrot.slane %v3427_v10, 7  ;;  %4030 = vrot.lane.b32.xlu0 %v7891_v3, %s5726_s13  ;;  %3732 = vrot.lane.b32.xlu1 %v7891_v3, %s5725_s10  ;;  %v4144_v18 = vsel %vm2433_vm14, %v4097_v50, %v3795_v2  ;;  %v4272_v36 = vsel %vm2433_vm14, %v4225_v40, %v3981_v9 }
 0x2a2   : > { %v3225_v55 = vadd.f32 %v7924_v25, %v3186_v57  ;;  %v3187_v59 = vmul.f32 %v7899_v32, %v3122_v60  ;;  %v4176_v0 = vsel %vm2466_vm15, %v4144_v18, %v7816_v38  ;;  %v8939_v18 = vld [vmem:[#allocation45_spill] sm:$0xff] }
 0x2a3   : > { %v3432_v6 = vor.u32 %v3430_v34, %v7909_v45  ;;  %v7929_v17 = vpop.permute.xlu1 %3796 }
 0x2a4   : > { %v3289_v62 = vmul.f32 0.1, %v3225_v55  ;;  %v3226_v7 = vadd.f32 %v7924_v25, %v3187_v59  ;;  %v4017_v52 = vpop.permute.xlu0 %4016  ;;  %vm3257_vm9 = vcmp.gt.f32.partialorder %v3225_v55, 0.0 }
 0x2a5   : > { %v7935_v2 = vsel %vm624_vm6, %v7843_v8, %v3432_v6  ;;  %3948 = vrot.lane.b32.xlu0 %v3917_v11, %s5725_s10  ;;  %3812 = vrot.lane.b32.xlu1 %v3781_v46, %s5728_s21  ;;  %v4304_v5 = vsel %vm2466_vm15, %v4272_v36, %v4017_v52  ;;  %v3666_v8 = vshrl.u32 %v7856_v61, 16  ;;  %v5658_v6 = vld [vmem:[%s8698_s7 + $0x80] sm:$0xff]  }
 0x2a6   : > { %8938 = vst [vmem:[#allocation25_spill] sm:$0xff] %v7935_v2  ;;  %vm3258_vm11 = vcmp.gt.f32.partialorder %v3226_v7, 0.0  ;;  %v3290_v51 = vmul.f32 0.1, %v3226_v7  ;;  %4575 = vmatprep.mubr.bf16.mxu1 %v4304_v5  ;;  %v5322_v10 = vpop.f32.mrb[48].mxu0  ;;  %v3566_v9 = vmul.bf16 %v8914_v53, %v7935_v2  ;;  %v3534_v38 = vmul.bf16 %v7011_v58, %v7935_v2 }
 0x2a7   : > { %4576 = vmatmul.mubr.bf16.vlgmr.msra.gmra.mrb[32].mxu1 %v4176_v0  ;;  %v5323_v54 = vpop.f32.mrb[49].mxu0  ;;  %v3582_v30 = vmul.bf16 %v7935_v2, %v8935_v48  ;;  %v3670_v50 = vshll.u32 %v7935_v2, 16  ;;  %v3550_v57 = vmul.bf16 %v7935_v2, %v8936_v41  ;;  %v3321_v60 = vsel %vm3257_vm9, %v3225_v55, %v3289_v62  ;;  %v7953_v40 = vpop.permute.xlu1 %3846 }
 0x2a8   : > { %v3322_v11 = vsel %vm3258_vm11, %v3226_v7, %v3290_v51  ;;  %v5324_v34 = vadd.f32 %v5323_v54, %v5322_v10  ;;  %v5325_v46 = vpop.f32.mrb[50].mxu0  ;;  %v3518_v59 = vmul.bf16 %v7935_v2, %v8939_v18  ;;  %5568 = vmatpush3.bf16.msra.mxu1 %v5658_v6  ;;  %v3668_v62 = vor.u32 %v3666_v8, %v7878_v4  ;;  %v5659_v10 = vld [vmem:[%s8698_s7 + $0x88] sm:$0xff]  }
 0x2a9   : > { %v3342_v48 = vpack.c.bf16 %v3322_v11, %v3321_v60  ;;  %3998 = vrot.lane.b32.xlu0 %v3566_v9, %s5728_s21  ;;  %3862 = vrot.lane.b32.xlu1 %v3534_v38, %s5726_s13  ;;  %v5326_v52 = vpop.f32.mrb[51].mxu0  ;;  %v7962_v55 = vrot.slane %v3582_v30, 1  ;;  %v3672_v7 = vrot.slane %v3670_v50, 1  ;;  %v7966_v5 = vrot.slane %v3550_v57, 1 }
 0x2aa   : > { %v3127_v36 = vadd.f32 %v5324_v34, %v7583_v37  ;;  %v5327_v0 = vadd.f32 %v5326_v52, %v5325_v46  ;;  %v7968_v51 = vrot.slane %v3518_v59, 1  ;;  %5567 = vmatprep.subr.bf16.mxu1 %v5659_v10  ;;  %v3493_v11 = vmul.bf16 %v6294_v12, %v7483_v22  ;;  %v3935_v34 = vpop.permute.xlu0 %3934 }
 0x2ab   : > { %v3435_v9 = vshrl.u32 %v3342_v48, 16  ;;  %v4082_v54 = vsel %vm2046_vm2, %v7876_v56, %v7962_v55  ;;  %v7977_v4 = vsel %vm1864_vm13, %v3668_v62, %v3672_v7  ;;  %v3919_v38 = vsel %vm2046_vm2, %v7881_v28, %v7966_v5  ;;  %v7996_v60 = vpop.permute.xlu1 %3718 }
 0x2ac   : > { %v3188_v37 = vmul.f32 %v7899_v32, %v3127_v36  ;;  %v3130_v8 = vadd.f32 %v5327_v0, %v7589_v39  ;;  %5550 = vmatprep.mubr.msk.bf16.mxu0 %vm2384_vm3, %v4082_v54  ;;  %v3438_v50 = vshll.u32 %v3342_v48, 16  ;;  %v3783_v56 = vsel %vm2046_vm2, %v7883_v44, %v7968_v51  ;;  %5569 = vmatpush3.bf16.msra.mxu1 %v5659_v10 }
 0x2ad   : > { %v7985_v30 = vrot.slane %v3435_v9, 7  ;;  %4032 = vrot.lane.b32.xlu0 %v7977_v4, %s5726_s13  ;;  %3734 = vrot.lane.b32.xlu1 %v7977_v4, %s5725_s10  ;;  %v4100_v44 = vsel %vm2384_vm3, %v3493_v11, %v7887_v27  ;;  %v3674_v22 = vshrl.u32 %v7935_v2, 16  ;;  %v4228_v9 = vsel %vm2384_vm3, %v7570_v31, %v3935_v34 }
 0x2ae   : > { %v3227_v39 = vadd.f32 %v7924_v25, %v3188_v37  ;;  %v3189_v57 = vmul.f32 %v7899_v32, %v3130_v8 }
 0x2af   : > { %v3440_v28 = vor.u32 %v3438_v50, %v7985_v30  ;;  %v8024_v37 = vpop.permute.xlu1 %3798  ;;  %v3676_v11 = vor.u32 %v3674_v22, %v3672_v7 }
 0x2b0   : > { %v3291_v46 = vmul.f32 0.1, %v3227_v39  ;;  %v3228_v59 = vadd.f32 %v7924_v25, %v3189_v57  ;;  %vm3259_vm12 = vcmp.gt.f32.partialorder %v3227_v39, 0.0 }
 0x2b1   : > { %v8004_v6 = vsel %vm624_vm6, %v7909_v45, %v3440_v28  ;;  %3950 = vrot.lane.b32.xlu0 %v3919_v38, %s5725_s10  ;;  %3814 = vrot.lane.b32.xlu1 %v3783_v56, %s5728_s21 }
 0x2b2   : > { %vm3260_vm0 = vcmp.gt.f32.partialorder %v3228_v59, 0.0  ;;  %v3292_v48 = vmul.f32 0.1, %v3228_v59  ;;  %v3567_v12 = vmul.bf16 %v7011_v58, %v8004_v6  ;;  %v3535_v45 = vmul.bf16 %v7073_v33, %v8004_v6 }
 0x2b3   : > { %v8013_v52 = vpop.permute.xlu0 %3984  ;;  %v5328_v62 = vpop.f32.mrb[52].mxu0  ;;  %v3583_v27 = vmul.bf16 %v8004_v6, %v8936_v41  ;;  %v3678_v36 = vshll.u32 %v8004_v6, 16  ;;  %v3551_v0 = vmul.bf16 %v8004_v6, %v8939_v18  ;;  %v3323_v10 = vsel %vm3259_vm12, %v3227_v39, %v3291_v46 }
 0x2b4   : > { %v3324_v54 = vsel %vm3260_vm0, %v3228_v59, %v3292_v48  ;;  %v5329_v8 = vpop.f32.mrb[53].mxu0  ;;  %v3519_v38 = vmul.bf16 %v8004_v6, %v6847_v14  ;;  %v4146_v39 = vsel %vm2433_vm14, %v4100_v44, %v7929_v17 }
 0x2b5   : > { %v3343_v50 = vpack.c.bf16 %v3324_v54, %v3323_v10  ;;  %v5330_v56 = vadd.f32 %v5329_v8, %v5328_v62  ;;  %4000 = vrot.lane.b32.xlu0 %v3567_v12, %s5728_s21  ;;  %3864 = vrot.lane.b32.xlu1 %v3535_v45, %s5726_s13  ;;  %v5331_v41 = vpop.f32.mrb[54].mxu0  ;;  %v4083_v57 = vrot.slane %v3583_v27, 1  ;;  %v3680_v28 = vrot.slane %v3678_v36, 1 }
 0x2b6   : > { %v5332_v31 = vpop.f32.mrb[55].mxu0  ;;  %v3920_v34 = vrot.slane %v3551_v0, 1  ;;  %v3784_v46 = vrot.slane %v3519_v38, 1  ;;  %v4274_v12 = vsel %vm2433_vm14, %v4228_v9, %v7904_v20  ;;  %v8050_v20 = vpop.permute.xlu1 %3848 }
 0x2b7   : > { %v3443_v59 = vshrl.u32 %v3343_v50, 16  ;;  %v3135_v48 = vadd.f32 %v7581_v21, %v5330_v56  ;;  %v5333_v2 = vadd.f32 %v5332_v31, %v5331_v41  ;;  %v4019_v10 = vpop.permute.xlu0 %4018  ;;  %v4084_v62 = vsel %vm2046_vm2, %v7962_v55, %v4083_v57 }
 0x2b8   : > { %v8038_v45 = vsel %vm1864_vm13, %v3676_v11, %v3680_v28  ;;  %v4307_v17 = vsel %vm2466_vm15, %v4274_v12, %v4019_v10  ;;  %v3921_v7 = vsel %vm2046_vm2, %v7966_v5, %v3920_v34  ;;  %v3446_v22 = vshll.u32 %v3343_v50, 16  ;;  %5551 = vmatmul.mubr.msk.bf16.gmra.mrb[80].mxu0 %vm2384_vm3, %v4084_v62  ;;  %v8941_v11 = vld [vmem:[#allocation47_spill] sm:$0xff] }
 0x2b9   : > { %v8043_v44 = vrot.slane %v3443_v59, 7  ;;  %v3190_v21 = vmul.f32 %v7899_v32, %v3135_v48  ;;  %v3138_v27 = vadd.f32 %v7587_v19, %v5333_v2  ;;  %4034 = vrot.lane.b32.xlu0 %v8038_v45, %s5726_s13  ;;  %4583 = vmatprep.mubr.bf16.mxu1 %v4307_v17  ;;  %v4179_v55 = vsel %vm2466_vm15, %v4146_v39, %v7863_v29 }
 0x2ba   : > { %3736 = vrot.lane.b32.xlu1 %v8038_v45, %s5725_s10  ;;  %v3785_v5 = vsel %vm2046_vm2, %v7968_v51, %v3784_v46  ;;  %4584 = vmatmul.mubr.bf16.gmra.mrb[36].mxu1 %v4179_v55  ;;  %v8940_v51 = vld [vmem:[#allocation14_spill] sm:$0xff]  ;;  %v3682_v50 = vshrl.u32 %v8004_v6, 16  ;;  %v8076_v41 = vpop.permute.xlu1 %3720 }
 0x2bb   : > { %v3448_v36 = vor.u32 %v3446_v22, %v8043_v44  ;;  %v3229_v19 = vadd.f32 %v7924_v25, %v3190_v21  ;;  %v3191_v2 = vmul.f32 %v7899_v32, %v3138_v27  ;;  %v8942_v21 = vld [vmem:[#allocation23_spill] sm:$0xff]  ;;  %v8943_v27 = vld [vmem:[#allocation26_spill] sm:$0xff] }
 0x2bc   : > { %v3494_v55 = vmul.bf16 %v8943_v27, %v8942_v21 }
 0x2bd   : > { %v8063_v0 = vsel %vm624_vm6, %v7985_v30, %v3448_v36  ;;  %v3293_v9 = vmul.f32 0.1, %v3229_v19  ;;  %v3230_v54 = vadd.f32 %v7924_v25, %v3191_v2  ;;  %3952 = vrot.lane.b32.xlu0 %v3921_v7, %s5725_s10  ;;  %vm3261_vm1 = vcmp.gt.f32.partialorder %v3229_v19, 0.0 }
 0x2be   : > { %3816 = vrot.lane.b32.xlu1 %v3785_v5, %s5728_s21  ;;  %v3568_v29 = vmul.bf16 %v7073_v33, %v8063_v0  ;;  %v3536_v8 = vmul.bf16 %v8940_v51, %v8063_v0  ;;  %v3584_v38 = vmul.bf16 %v8063_v0, %v8939_v18  ;;  %v3686_v56 = vshll.u32 %v8063_v0, 16  ;;  %v3937_v5 = vpop.permute.xlu0 %3936 }
 0x2bf   : > { %vm3262_vm7 = vcmp.gt.f32.partialorder %v3230_v54, 0.0  ;;  %v3294_v30 = vmul.f32 0.1, %v3230_v54  ;;  %v3552_v31 = vmul.bf16 %v8063_v0, %v6847_v14  ;;  %v3520_v59 = vmul.bf16 %v8063_v0, %v8941_v11 }
 0x2c0   : > { %v8078_v39 = vrot.slane %v3584_v38, 1  ;;  %v3325_v48 = vsel %vm3261_vm1, %v3229_v19, %v3293_v9  ;;  %v3684_v18 = vor.u32 %v3682_v50, %v3680_v28  ;;  %v3688_v12 = vrot.slane %v3686_v56, 1 }
 0x2c1   : > { %v3326_v10 = vsel %vm3262_vm7, %v3230_v54, %v3294_v30  ;;  %4002 = vrot.lane.b32.xlu0 %v3568_v29, %s5728_s21  ;;  %v3922_v7 = vrot.slane %v3552_v31, 1  ;;  %v3786_v22 = vrot.slane %v3520_v59, 1  ;;  %v4103_v9 = vsel %vm2384_vm3, %v3494_v55, %v7996_v60 }
 0x2c2   : > { %v3344_v62 = vpack.c.bf16 %v3326_v10, %v3325_v48  ;;  %3866 = vrot.lane.b32.xlu1 %v3536_v8, %s5726_s13  ;;  %v4086_v17 = vsel %vm2046_vm2, %v4083_v57, %v8078_v39  ;;  %v8092_v36 = vsel %vm1864_vm13, %v3684_v18, %v3688_v12  ;;  %v4148_v57 = vsel %vm2433_vm14, %v4103_v9, %v8024_v37  ;;  %v8104_v8 = vpop.permute.xlu1 %3800  ;;  %v8945_v9 = vld [vmem:[#allocation51_spill] sm:$0xff] }
 0x2c3   : > { %5554 = vmatprep.mubr.msk.bf16.mxu0 %vm2384_vm3, %v4086_v17  ;;  %v3923_v28 = vsel %vm2046_vm2, %v3920_v34, %v3922_v7  ;;  %v3787_v2 = vsel %vm2046_vm2, %v3784_v46, %v3786_v22  ;;  %v4231_v34 = vsel %vm2384_vm3, %v7619_v26, %v3937_v5  ;;  %v4182_v37 = vsel %vm2466_vm15, %v4148_v57, %v7953_v40 }
 0x2c4   : > { %v3451_v19 = vshrl.u32 %v3344_v62, 16  ;;  %v3454_v29 = vshll.u32 %v3344_v62, 16  ;;  %v4276_v59 = vsel %vm2433_vm14, %v4231_v34, %v8013_v52  ;;  %v3690_v48 = vshrl.u32 %v8063_v0, 16  ;;  %v8944_v62 = vld [vmem:[#allocation12_spill] sm:$0xff] }
 0x2c5   : > { %4036 = vrot.lane.b32.xlu0 %v8092_v36, %s5726_s13 }
 0x2c6   : > { %v8102_v54 = vrot.slane %v3451_v19, 7  ;;  %3738 = vrot.lane.b32.xlu1 %v8092_v36, %s5725_s10 }
 0x2c7   : > { %v8110_v46 = vpop.permute.xlu0 %3986  ;;  %v5334_v38 = vpop.f32.mrb[56].mxu0 }
 0x2c8   : > { %v3456_v60 = vor.u32 %v3454_v29, %v8102_v54  ;;  %v5335_v30 = vpop.f32.mrb[57].mxu0  ;;  %v8120_v56 = vpop.permute.xlu1 %3850 }
 0x2c9   : > { %3954 = vrot.lane.b32.xlu0 %v3923_v28, %s5725_s10  ;;  %v5336_v31 = vadd.f32 %v5335_v30, %v5334_v38  ;;  %v5337_v26 = vpop.f32.mrb[58].mxu0  ;;  %v3692_v28 = vor.u32 %v3690_v48, %v3688_v12 }
 0x2ca   : > { %v8118_v50 = vsel %vm624_vm6, %v8043_v44, %v3456_v60  ;;  %3818 = vrot.lane.b32.xlu1 %v3787_v2, %s5728_s21  ;;  %v5338_v10 = vpop.f32.mrb[59].mxu0 }
 0x2cb   : > { %v4021_v18 = vpop.permute.xlu0 %4020  ;;  %v3569_v40 = vmul.bf16 %v8940_v51, %v8118_v50  ;;  %v3537_v44 = vmul.bf16 %v8944_v62, %v8118_v50  ;;  %v3585_v17 = vmul.bf16 %v8118_v50, %v6847_v14  ;;  %v3694_v21 = vshll.u32 %v8118_v50, 16 }
 0x2cc   : > { %v3143_v27 = vadd.f32 %v5336_v31, %v7633_v15  ;;  %v5339_v55 = vadd.f32 %v5338_v10, %v5337_v26  ;;  %v4310_v52 = vsel %vm2466_vm15, %v4276_v59, %v4021_v18  ;;  %v3553_v5 = vmul.bf16 %v8118_v50, %v8941_v11  ;;  %v8946_v18 = vld [vmem:[#allocation46_spill] sm:$0xff] }
 0x2cd   : > { %4591 = vmatprep.mubr.bf16.mxu1 %v4310_v52  ;;  %4004 = vrot.lane.b32.xlu0 %v3569_v40, %s5728_s21  ;;  %v8138_v19 = vrot.slane %v3585_v17, 1  ;;  %v8140_v2 = vrot.slane %v3694_v21, 1  ;;  %v3521_v14 = vmul.bf16 %v8118_v50, %v8945_v9  ;;  %v3495_v40 = vmul.bf16 %v6480_v23, %v8946_v18 }
 0x2ce   : > { %v3192_v57 = vmul.f32 %v7899_v32, %v3143_v27  ;;  %v3146_v15 = vadd.f32 %v5339_v55, %v7637_v63  ;;  %3868 = vrot.lane.b32.xlu1 %v3537_v44, %s5726_s13  ;;  %4592 = vmatmul.mubr.bf16.gmra.mrb[40].mxu1 %v4182_v37  ;;  %v8147_v29 = vrot.slane %v3553_v5, 1  ;;  %v8163_v37 = vpop.permute.xlu1 %3722 }
 0x2cf   : > { %v4088_v34 = vsel %vm2046_vm2, %v8078_v39, %v8138_v19  ;;  %v8154_v12 = vsel %vm1864_vm13, %v3692_v28, %v8140_v2  ;;  %v8156_v60 = vrot.slane %v3521_v14, 1  ;;  %v3939_v10 = vpop.permute.xlu0 %3938  ;;  %v4106_v27 = vsel %vm2384_vm3, %v3495_v40, %v8076_v41 }
 0x2d0   : > { %v3231_v38 = vadd.f32 %v7924_v25, %v3192_v57  ;;  %v3193_v30 = vmul.f32 %v7899_v32, %v3146_v15  ;;  %5555 = vmatmul.mubr.msk.bf16.gmra.mrb[84].mxu0 %vm2384_vm3, %v4088_v34  ;;  %v3925_v63 = vsel %vm2046_vm2, %v3922_v7, %v8147_v29  ;;  %v4150_v28 = vsel %vm2433_vm14, %v4106_v27, %v8104_v8  ;;  %v8947_v34 = vld [vmem:[#allocation49_spill] sm:$0xff] }
 0x2d1   : > { %4038 = vrot.lane.b32.xlu0 %v8154_v12, %s5726_s13  ;;  %v3789_v39 = vsel %vm2046_vm2, %v3786_v22, %v8156_v60  ;;  %v4185_v8 = vsel %vm2466_vm15, %v4150_v28, %v8050_v20  ;;  %v8950_v27 = vld [vmem:[#allocation13_spill] sm:$0xff] }
 0x2d2   : > { %v3295_v31 = vmul.f32 0.1, %v3231_v38  ;;  %v3232_v26 = vadd.f32 %v7924_v25, %v3193_v30  ;;  %3740 = vrot.lane.b32.xlu1 %v8154_v12, %s5725_s10  ;;  %vm3263_vm4 = vcmp.gt.f32.partialorder %v3231_v38, 0.0  ;;  %v8176_v44 = vpop.permute.xlu1 %3802 }
 0x2d4   : > { %vm3264_vm5 = vcmp.gt.f32.partialorder %v3232_v26, 0.0  ;;  %v3296_v59 = vmul.f32 0.1, %v3232_v26  ;;  %v3327_v7 = vsel %vm3263_vm4, %v3231_v38, %v3295_v31 }
 0x2d5   : > { %3956 = vrot.lane.b32.xlu0 %v3925_v63, %s5725_s10 }
 0x2d6   : > { %v3328_v48 = vsel %vm3264_vm5, %v3232_v26, %v3296_v59  ;;  %3820 = vrot.lane.b32.xlu1 %v3789_v39, %s5728_s21  ;;  %v8948_v39 = vld [vmem:[#allocation20_spill] sm:$0xff]  ;;  %v8949_v59 = vld [vmem:[#allocation37_spill] sm:$0xff] }
 0x2d7   : > { %v3345_v22 = vpack.c.bf16 %v3328_v48, %v3327_v7  ;;  %v5340_v17 = vpop.f32.mrb[60].mxu0  ;;  %v4234_v31 = vsel %vm2384_vm3, %v8948_v39, %v3939_v10 }
 0x2d8   : > { %v5341_v21 = vpop.f32.mrb[61].mxu0  ;;  %v4278_v10 = vsel %vm2433_vm14, %v4234_v31, %v8110_v46  ;;  %v3698_v46 = vshrl.u32 %v8118_v50, 16 }
 0x2d9   : > { %v3459_v55 = vshrl.u32 %v3345_v22, 16  ;;  %v5342_v52 = vadd.f32 %v5341_v21, %v5340_v17  ;;  %v5343_v5 = vpop.f32.mrb[62].mxu0  ;;  %v3462_v15 = vshll.u32 %v3345_v22, 16 }
 0x2da   : > { %v5344_v14 = vpop.f32.mrb[63].mxu0 }
 0x2db   : > { %v8182_v57 = vrot.slane %v3459_v55, 7  ;;  %v3151_v23 = vadd.f32 %v8947_v34, %v5342_v52  ;;  %v5345_v38 = vadd.f32 %v5344_v14, %v5343_v5  ;;  %v3989_v30 = vpop.permute.xlu0 %3988  ;;  %v8185_v63 = vpop.permute.xlu1 %3852  ;;  %v8951_v14 = vld [vmem:[#allocation34_spill] sm:$0xff] }
 0x2dd   : > { %v3464_v41 = vor.u32 %v3462_v15, %v8182_v57  ;;  %v3194_v26 = vmul.f32 %v7899_v32, %v3151_v23  ;;  %v3154_v7 = vadd.f32 %v8949_v59, %v5345_v38  ;;  %v3700_v23 = vor.u32 %v3698_v46, %v8140_v2 }
 0x2df   : > { %v8196_v48 = vsel %vm624_vm6, %v8102_v54, %v3464_v41  ;;  %v3233_v18 = vadd.f32 %v7924_v25, %v3194_v26  ;;  %v3195_v40 = vmul.f32 %v7899_v32, %v3154_v7  ;;  %v4023_v22 = vpop.permute.xlu0 %4022 }
 0x2e0   : > { %v4313_v17 = vsel %vm2466_vm15, %v4278_v10, %v4023_v22  ;;  %v3570_v21 = vmul.bf16 %v8944_v62, %v8196_v48  ;;  %v3538_v20 = vmul.bf16 %v8950_v27, %v8196_v48  ;;  %v3586_v54 = vmul.bf16 %v8196_v48, %v8941_v11  ;;  %v8210_v32 = vpop.permute.xlu1 %3724 }
 0x2e1   : > { %vm3265_vm8 = vcmp.gt.f32.partialorder %v3233_v18, 0.0  ;;  %v3297_v55 = vmul.f32 0.1, %v3233_v18  ;;  %v3234_v52 = vadd.f32 %v7924_v25, %v3195_v40  ;;  %4599 = vmatprep.mubr.bf16.mxu1 %v4313_v17  ;;  %v3702_v28 = vshll.u32 %v8196_v48, 16  ;;  %v8952_v40 = vld [vmem:[#allocation24_spill] sm:$0xff] }
 0x2e2   : > { %4006 = vrot.lane.b32.xlu0 %v3570_v21, %s5728_s21  ;;  %3870 = vrot.lane.b32.xlu1 %v3538_v20, %s5726_s13  ;;  %v8215_v5 = vrot.slane %v3586_v54, 1  ;;  %v3554_v11 = vmul.bf16 %v8196_v48, %v8945_v9  ;;  %v3522_v15 = vmul.bf16 %v8196_v48, %v8951_v14 }
 0x2e3   : > { %vm3266_vm9 = vcmp.gt.f32.partialorder %v3234_v52, 0.0  ;;  %v3298_v25 = vmul.f32 0.1, %v3234_v52  ;;  %4600 = vmatmul.mubr.bf16.gmra.mrb[44].mxu1 %v4185_v8  ;;  %v3704_v38 = vrot.slane %v3702_v28, 1  ;;  %v3329_v31 = vsel %vm3265_vm8, %v3233_v18, %v3297_v55  ;;  %v3941_v22 = vpop.permute.xlu0 %3940 }
 0x2e4   : > { %v4090_v34 = vsel %vm2046_vm2, %v8138_v19, %v8215_v5  ;;  %v3926_v39 = vrot.slane %v3554_v11, 1  ;;  %v3790_v26 = vrot.slane %v3522_v15, 1  ;;  %v3496_v19 = vmul.bf16 %v8898_v47, %v8952_v40  ;;  %v8235_v2 = vpop.permute.xlu1 %3804  ;;  %v8954_v11 = vld [vmem:[#allocation36_spill] sm:$0xff] }
 0x2e5   : > { %v3330_v41 = vsel %vm3266_vm9, %v3234_v52, %v3298_v25  ;;  %5558 = vmatprep.mubr.msk.bf16.mxu0 %vm2384_vm3, %v4090_v34  ;;  %v8229_v7 = vsel %vm1864_vm13, %v3700_v23, %v3704_v38  ;;  %v4237_v20 = vsel %vm2384_vm3, %v7713_v43, %v3941_v22  ;;  %v3706_v28 = vshrl.u32 %v8196_v48, 16 }
 0x2e6   : > { %v3346_v59 = vpack.c.bf16 %v3330_v41, %v3329_v31  ;;  %v3927_v8 = vsel %vm2046_vm2, %v8147_v29, %v3926_v39  ;;  %4040 = vrot.lane.b32.xlu0 %v8229_v7, %s5726_s13  ;;  %3742 = vrot.lane.b32.xlu1 %v8229_v7, %s5725_s10  ;;  %v3791_v18 = vsel %vm2046_vm2, %v8156_v60, %v3790_v26 }
 0x2e7   : > { %v4109_v17 = vsel %vm2384_vm3, %v3496_v19, %v8163_v37 }
 0x2e8   : > { %v3467_v10 = vshrl.u32 %v3346_v59, 16  ;;  %v4152_v29 = vsel %vm2433_vm14, %v4109_v17, %v8176_v44  ;;  %v3470_v21 = vshll.u32 %v3346_v59, 16  ;;  %v4280_v44 = vsel %vm2433_vm14, %v4237_v20, %v3989_v30 }
 0x2e9   : > { %v4188_v37 = vsel %vm2466_vm15, %v4152_v29, %v8120_v56  ;;  %v3708_v59 = vor.u32 %v3706_v28, %v3704_v38 }
 0x2ea   : > { %v3469_v47 = vrot.slane %v3467_v10, 7  ;;  %3958 = vrot.lane.b32.xlu0 %v3927_v8, %s5725_s10  ;;  %3822 = vrot.lane.b32.xlu1 %v3791_v18, %s5728_s21 }
 0x2eb   : > { %v3991_v54 = vpop.permute.xlu0 %3990  ;;  %v8251_v55 = vpop.permute.xlu1 %3854 }
 0x2ec   : > { %v3472_v60 = vor.u32 %v3470_v21, %v3469_v47  ;;  %v8255_v46 = vsel %vm6018_vm10, %v3469_v47, 0 }
 0x2ed   : > { %v3556_v15 = vmul.bf16 %v8255_v46, %v8954_v11  ;;  %v3588_v8 = vmul.bf16 %v8255_v46, %v8951_v14  ;;  %v3878_v18 = vshll.u32 %v8255_v46, 16 }
 0x2ee   : > { %v3473_v43 = vsel %vm624_vm6, %v8182_v57, %v3472_v60 }
 0x2ef   : > { %v4025_v25 = vpop.permute.xlu0 %4024  ;;  %v8265_v34 = vpop.permute.xlu1 %3726  ;;  %v3571_v23 = vmul.bf16 %v8950_v27, %v3473_v43  ;;  %v3587_v31 = vmul.bf16 %v3473_v43, %v8945_v9  ;;  %v3710_v41 = vshll.u32 %v3473_v43, 16  ;;  %v3523_v56 = vmul.bf16 %v3473_v43, %v8954_v11 }
 0x2f0   : > { %v4316_v30 = vsel %vm2466_vm15, %v4280_v44, %v4025_v25  ;;  %v3555_v57 = vmul.bf16 %v3473_v43, %v8951_v14  ;;  %v3930_v10 = vrot.slane %v3556_v15, 1  ;;  %v3874_v21 = vshrl.u32 %v3473_v43, 16  ;;  %v8955_v44 = vld [vmem:[#allocation44_spill] sm:$0xff] }
 0x2f1   : > { %4607 = vmatprep.mubr.bf16.mxu1 %v4316_v30  ;;  %4008 = vrot.lane.b32.xlu0 %v3571_v23, %s5728_s21  ;;  %v4091_v40 = vrot.slane %v3587_v31, 1  ;;  %v3712_v19 = vrot.slane %v3710_v41, 1  ;;  %v3792_v22 = vrot.slane %v3523_v56, 1  ;;  %v8286_v60 = vrot.slane %v3588_v8, 1  ;;  %v8956_v41 = vld [vmem:[#allocation41_spill] sm:$0xff] }
 0x2f2   : > { %4608 = vmatmul.mubr.bf16.gmra.mrb[48].mxu1 %v4188_v37  ;;  %v3928_v9 = vrot.slane %v3555_v57, 1  ;;  %v3880_v37 = vrot.slane %v3878_v18, 1  ;;  %v3497_v28 = vmul.bf16 %v8955_v44, %v7640_v35  ;;  %v3539_v35 = vmul.bf16 %v8956_v41, %v3473_v43  ;;  %v8957_v43 = vld [vmem:[#allocation19_spill] sm:$0xff] }
 0x2f3   : > { %v3943_v17 = vpop.permute.xlu0 %3942  ;;  %v3807_v29 = vpop.permute.xlu1 %3806  ;;  %v4092_v38 = vsel %vm2046_vm2, %v8215_v5, %v4091_v40  ;;  %v8279_v47 = vsel %vm1864_vm13, %v3708_v59, %v3712_v19  ;;  %v3793_v14 = vsel %vm2046_vm2, %v3790_v26, %v3792_v22  ;;  %v3876_v52 = vor.u32 %v3874_v21, %v3712_v19  ;;  %v8958_v21 = vld [vmem:[#allocation11_spill] sm:$0xff] }
 0x2f4   : > { %5559 = vmatmul.mubr.msk.bf16.gmra.mrb[88].mxu0 %vm2384_vm3, %v4092_v38  ;;  %3744 = vrot.lane.b32.xlu1 %v8279_v47, %s5725_s10  ;;  %v3929_v20 = vsel %vm2046_vm2, %v3926_v39, %v3928_v9  ;;  %v3931_v5 = vsel %vm2046_vm2, %v3928_v9, %v3930_v10  ;;  %v8293_v26 = vsel %vm2046_vm2, %v4091_v40, %v8286_v60 }
 0x2f5   : > { %4042 = vrot.lane.b32.xlu0 %v8279_v47, %s5726_s13  ;;  %v8298_v39 = vsel %vm1864_vm13, %v3876_v52, %v3880_v37  ;;  %v4240_v25 = vsel %vm2384_vm3, %v7756_v49, %v3943_v17  ;;  %v4112_v23 = vsel %vm2384_vm3, %v3497_v28, %v8210_v32  ;;  %v3572_v22 = vmul.bf16 %v8956_v41, %v8255_v46 }
 0x2f6   : > { %v4154_v31 = vsel %vm2433_vm14, %v4112_v23, %v8235_v2  ;;  %v4282_v59 = vsel %vm2433_vm14, %v4240_v25, %v3991_v54  ;;  %v4012_v2 = vshrl.u32 %v8255_v46, 16  ;;  %v3498_v54 = vmul.bf16 %v8910_v1, %v8957_v43 }
 0x2f7   : > { %v3993_v11 = vpop.permute.xlu0 %3992  ;;  %v3857_v15 = vpop.permute.xlu1 %3856  ;;  %v4191_v32 = vsel %vm2466_vm15, %v4154_v31, %v8185_v63 }
 0x2f8   : > { %3824 = vrot.lane.b32.xlu1 %v3793_v14, %s5728_s21  ;;  %v4014_v63 = vor.u32 %v4012_v2, %v3880_v37  ;;  %v4115_v9 = vsel %vm2384_vm3, %v3498_v54, %v8265_v34 }
 0x2f9   : > { %3960 = vrot.lane.b32.xlu0 %v3929_v20, %s5725_s10  ;;  %v4156_v10 = vsel %vm2433_vm14, %v4115_v9, %v3807_v29 }
 0x2fa   : > { %v4015_v46 = vsel %vm1864_vm13, %v4014_v63, %v8958_v21 }
 0x2fb   : > { %v4027_v56 = vpop.permute.xlu0 %4026  ;;  %v3729_v30 = vpop.permute.xlu1 %3728 }
 0x2fc   : > { %3872 = vrot.lane.b32.xlu1 %v3539_v35, %s5726_s13  ;;  %v4319_v49 = vsel %vm2466_vm15, %v4282_v59, %v4027_v56 }
 0x2fd   : > { %4615 = vmatprep.mubr.bf16.mxu1 %v4319_v49  ;;  %3962 = vrot.lane.b32.xlu0 %v3931_v5, %s5725_s10  ;;  %v8959_v5 = vld [vmem:[#allocation28_spill] sm:$0xff]  ;;  %s296_s10 = sand.u32 1, %s5714_s28  }
 0x2fe   : > { %4616 = vmatmul.mubr.bf16.gmra.mrb[52].mxu1 %v4191_v32  ;;  %v3499_v29 = vmul.bf16 %v6889_v13, %v8959_v5  ;;  %s8650_s23 = scalar_lea.sflag [#allocation3], %s296_s10 }
 0x2ff   : > { %v3945_v57 = vpop.permute.xlu0 %3944  ;;  %v3809_v8 = vpop.permute.xlu1 %3808 }
 0x300   : > { %v4243_v18 = vsel %vm2384_vm3, %v7794_v16, %v3945_v57  ;;  %v4194_v16 = vsel %vm2466_vm15, %v4156_v10, %v8251_v55  ;;  %v4118_v28 = vsel %vm2384_vm3, %v3499_v29, %v3729_v30  ;;  %v8960_v30 = vld [vmem:[#allocation48_spill] sm:$0xff]  ;;  %v3502_v29 = vmul.bf16 %v7011_v58, %v7856_v61  ;;  %v8962_v61 = vld [vmem:[#allocation25_spill] sm:$0xff] }
 0x301   : > { %4044 = vrot.lane.b32.xlu0 %v8298_v39, %s5726_s13  ;;  %v4284_v1 = vsel %vm2433_vm14, %v4243_v18, %v3993_v11  ;;  %v4158_v11 = vsel %vm2433_vm14, %v4118_v28, %v3809_v8  ;;  %v3500_v32 = vmul.bf16 %v8960_v30, %v7774_v42 }
 0x302   : > { %v4197_v35 = vsel %vm2466_vm15, %v4158_v11, %v3857_v15 }
 0x303   : > { %v3995_v40 = vpop.permute.xlu0 %3994  ;;  %v3859_v19 = vpop.permute.xlu1 %3858 }
 0x305   : > { %4010 = vrot.lane.b32.xlu0 %v3572_v22, %s5728_s21 }
 0x307   : > { %v4029_v17 = vpop.permute.xlu0 %4028  ;;  %v3731_v38 = vpop.permute.xlu1 %3730 }
 0x308   : > { %v4322_v14 = vsel %vm2466_vm15, %v4284_v1, %v4029_v17  ;;  %v4121_v15 = vsel %vm2384_vm3, %v3500_v32, %v3731_v38  ;;  %v8961_v17 = vld [vmem:[#allocation22_spill] sm:$0xff] }
 0x309   : > { %4623 = vmatprep.mubr.bf16.mxu1 %v4322_v14  ;;  %4046 = vrot.lane.b32.xlu0 %v4015_v46, %s5726_s13  ;;  %s5009_s13 = sshll.u32 %s296_s10, 8 }
 0x30a   : > { %4624 = vmatmul.mubr.bf16.gmra.mrb[56].mxu1 %v4194_v16  ;;  %s8457_s21 = scalar_lea.vmem [#allocation2], %s5009_s13 }
 0x30b   : > { %v3947_v34 = vpop.permute.xlu0 %3946  ;;  %v3811_v20 = vpop.permute.xlu1 %3810  ;;  %s4943_s20 = sshll.u32 %s8457_s21, 4  ;;  %s8638_s20 = int_to_ptr.vmem [resolvable:$true] %s4943_s20 }
 0x30c   : > { %v4246_v44 = vsel %vm2384_vm3, %v7836_v24, %v3947_v34  ;;  %v4160_v54 = vsel %vm2433_vm14, %v4121_v15, %v3811_v20  ;;  %s5660_s25 = scalar_lea.vmem %s8638_s20, 4096  ;;  %p5667_p0 = scmp.lt.s32.totalorder %s8638_s20, %s5665_s24 }
 0x30d   : > { %v4286_v31 = vsel %vm2433_vm14, %v4246_v44, %v3995_v40  ;;  %v4200_v42 = vsel %vm2466_vm15, %v4160_v54, %v3859_v19  ;;  %p5661_p11 = scmp.ne.s32.totalorder %s8638_s20, %s5660_s25  ;;  %p5668_p1 = scmp.lt.s32.totalorder %s5666_s17, %s5660_s25 }
 0x30f   : > { %v3997_v52 = vpop.permute.xlu0 %3996  ;;  %v3861_v37 = vpop.permute.xlu1 %3860  ;;  %p5662_p12 = pnand %p5661_p11, %p5815_p5  ;;  %p5669_p2 = por %p5668_p1, %p5667_p0 }
 0x311   : > { %p5663_p13 = pneg %p5662_p12 }
 0x313   : > { %v4031_v25 = vpop.permute.xlu0 %4030  ;;  %v3733_v23 = vpop.permute.xlu1 %3732  ;;  %p5670_p3 = pnand %p5669_p2, %p5663_p13 }
 0x314   : > { %v4325_v55 = vsel %vm2466_vm15, %v4286_v31, %v4031_v25 }
 0x315   : > { %4631 = vmatprep.mubr.bf16.mxu1 %v4325_v55 }
 0x316   : > { %4632 = vmatmul.mubr.bf16.gmra.mrb[60].mxu1 %v4197_v35  ;;  %v3503_v35 = vmul.bf16 %v7073_v33, %v8962_v61 }
 0x317   : > { %v3949_v13 = vpop.permute.xlu0 %3948  ;;  %v3813_v56 = vpop.permute.xlu1 %3812 }
 0x318   : > { %v8344_v59 = vpop.f32.mrb[64].mxu0  ;;  %v4249_v2 = vsel %vm2384_vm3, %v7891_v3, %v3949_v13  ;;  %v3501_v3 = vmul.bf16 %v8914_v53, %v8961_v17 }
 0x319   : > { %v8346_v49 = vpop.f32.mrb[65].mxu0  ;;  %v4288_v22 = vsel %vm2433_vm14, %v4249_v2, %v3997_v52 }
 0x31a   : > { %v8348_v24 = vpop.f32.mrb[66].mxu0  ;;  %v4124_v14 = vsel %vm2384_vm3, %v3501_v3, %v3733_v23 }
 0x31b   : > { %v8352_v57 = vpop.f32.mrb[67].mxu0  ;;  %v3999_v8 = vpop.permute.xlu0 %3998  ;;  %v4162_v21 = vsel %vm2433_vm14, %v4124_v14, %v3813_v56 }
 0x31c   : > { %v3863_v43 = vpop.permute.xlu1 %3862  ;;  %v4203_v20 = vsel %vm2466_vm15, %v4162_v21, %v3861_v37 }
 0x31f   : > { %v4033_v40 = vpop.permute.xlu0 %4032 }
 0x320   : > { %v3735_v18 = vpop.permute.xlu1 %3734  ;;  %v4328_v63 = vsel %vm2466_vm15, %v4288_v22, %v4033_v40 }
 0x321   : > { %4639 = vmatprep.mubr.bf16.mxu1 %v4328_v63  ;;  %v4127_v44 = vsel %vm2384_vm3, %v3502_v29, %v3735_v18 }
 0x322   : > { %4640 = vmatmul.mubr.bf16.gmra.mrb[64].mxu1 %v4200_v42 }
 0x323   : > { %v3951_v9 = vpop.permute.xlu0 %3950 }
 0x324   : > { %v3815_v10 = vpop.permute.xlu1 %3814  ;;  %v4252_v38 = vsel %vm2384_vm3, %v7977_v4, %v3951_v9 }
 0x325   : > { %v4290_v34 = vsel %vm2433_vm14, %v4252_v38, %v3999_v8  ;;  %v4164_v28 = vsel %vm2433_vm14, %v4127_v44, %v3815_v10  ;;  %v3504_v10 = vmul.bf16 %v8940_v51, %v8004_v6 }
 0x326   : > { %v4206_v31 = vsel %vm2466_vm15, %v4164_v28, %v3863_v43 }
 0x327   : > { %v4001_v1 = vpop.permute.xlu0 %4000 }
 0x328   : > { %v3865_v46 = vpop.permute.xlu1 %3864 }
 0x32b   : > { %v4035_v16 = vpop.permute.xlu0 %4034 }
 0x32c   : > { %v4331_v19 = vsel %vm2466_vm15, %v4290_v34, %v4035_v16  ;;  %v3737_v53 = vpop.permute.xlu1 %3736 }
 0x32d   : > { %4647 = vmatprep.mubr.bf16.mxu1 %v4331_v19  ;;  %v4130_v30 = vsel %vm2384_vm3, %v3503_v35, %v3737_v53 }
 0x32e   : > { %4648 = vmatmul.mubr.bf16.gmra.mrb[68].mxu1 %v4203_v20 }
 0x32f   : > { %v3953_v5 = vpop.permute.xlu0 %3952 }
 0x330   : > { %v4255_v52 = vsel %vm2384_vm3, %v8038_v45, %v3953_v5  ;;  %v3817_v11 = vpop.permute.xlu1 %3816  ;;  %v3505_v5 = vmul.bf16 %v8944_v62, %v8063_v0 }
 0x331   : > { %v4292_v23 = vsel %vm2433_vm14, %v4255_v52, %v4001_v1  ;;  %v4166_v8 = vsel %vm2433_vm14, %v4130_v30, %v3817_v11 }
 0x333   : > { %v4003_v4 = vpop.permute.xlu0 %4002 }
 0x334   : > { %v3867_v58 = vpop.permute.xlu1 %3866 }
 0x337   : > { %v4037_v25 = vpop.permute.xlu0 %4036 }
 0x338   : > { %v4334_v37 = vsel %vm2466_vm15, %v4292_v23, %v4037_v25  ;;  %v3739_v2 = vpop.permute.xlu1 %3738 }
 0x339   : > { %4655 = vmatprep.mubr.bf16.mxu1 %v4334_v37  ;;  %v4133_v3 = vsel %vm2384_vm3, %v3504_v10, %v3739_v2 }
 0x33a   : > { %4656 = vmatmul.mubr.bf16.gmra.mrb[72].mxu1 %v4206_v31  ;;  %v3506_v31 = vmul.bf16 %v8950_v27, %v8118_v50 }
 0x33b   : > { %v3955_v55 = vpop.permute.xlu0 %3954 }
 0x33c   : > { %v4258_v13 = vsel %vm2384_vm3, %v8092_v36, %v3955_v55  ;;  %v4209_v36 = vsel %vm2466_vm15, %v4166_v8, %v3865_v46  ;;  %v3819_v22 = vpop.permute.xlu1 %3818 }
 0x33d   : > { %v4294_v33 = vsel %vm2433_vm14, %v4258_v13, %v4003_v4  ;;  %v4168_v1 = vsel %vm2433_vm14, %v4133_v3, %v3819_v22 }
 0x33e   : > { %v4212_v16 = vsel %vm2466_vm15, %v4168_v1, %v3867_v58 }
 0x33f   : > { %v4005_v45 = vpop.permute.xlu0 %4004 }
 0x340   : > { %v8383_v56 = vpop.f32.mrb[68].mxu0  ;;  %v3869_v18 = vpop.permute.xlu1 %3868 }
 0x341   : > { %v8386_v32 = vpop.f32.mrb[69].mxu0 }
 0x342   : > { %v8389_v43 = vpop.f32.mrb[70].mxu0 }
 0x343   : > { %v8391_v15 = vpop.f32.mrb[71].mxu0  ;;  %v4039_v54 = vpop.permute.xlu0 %4038 }
 0x344   : > { %v4337_v40 = vsel %vm2466_vm15, %v4294_v33, %v4039_v54  ;;  %v3741_v42 = vpop.permute.xlu1 %3740  ;;  %v3507_v33 = vmul.bf16 %v8956_v41, %v8196_v48 }
 0x345   : > { %4663 = vmatprep.mubr.bf16.mxu1 %v4337_v40  ;;  %v4136_v52 = vsel %vm2384_vm3, %v3505_v5, %v3741_v42 }
 0x346   : > { %4664 = vmatmul.mubr.bf16.gmra.mrb[76].mxu1 %v4209_v36 }
 0x347   : > { %v3957_v63 = vpop.permute.xlu0 %3956 }
 0x348   : > { %v4261_v17 = vsel %vm2384_vm3, %v8154_v12, %v3957_v63  ;;  %v3821_v21 = vpop.permute.xlu1 %3820 }
 0x349   : > { %v4296_v14 = vsel %vm2433_vm14, %v4261_v17, %v4005_v45  ;;  %v4170_v44 = vsel %vm2433_vm14, %v4136_v52, %v3821_v21 }
 0x34a   : > { %v4215_v23 = vsel %vm2466_vm15, %v4170_v44, %v3869_v18 }
 0x354   : > { %v4007_v9 = vpop.permute.xlu0 %4006  ;;  %v3871_v51 = vpop.permute.xlu1 %3870 }
 0x358   : > { %v4041_v38 = vpop.permute.xlu0 %4040  ;;  %v3743_v29 = vpop.permute.xlu1 %3742 }
 0x359   : > { %v4340_v46 = vsel %vm2466_vm15, %v4296_v14, %v4041_v38  ;;  %v4139_v58 = vsel %vm2384_vm3, %v3506_v31, %v3743_v29  ;;  %v8963_v14 = vld [vmem:[#allocation5_spill] sm:$0xff] }
 0x35a   : > { %4671 = vmatprep.mubr.bf16.mxu1 %v4340_v46  ;;  %v8964_v21 = vunpack.c.l.bf16 %v8963_v14 }
 0x35b   : > { %v8405_v34 = vpop.f32.mrb[72].mxu0  ;;  %4672 = vmatmul.mubr.bf16.gmra.mrb[80].mxu1 %v4212_v16 }
 0x35c   : > { %v8407_v6 = vpop.f32.mrb[73].mxu0  ;;  %v3959_v19 = vpop.permute.xlu0 %3958 }
 0x35d   : > { %v8409_v12 = vpop.f32.mrb[74].mxu0  ;;  %v4264_v4 = vsel %vm2384_vm3, %v8229_v7, %v3959_v19  ;;  %v3823_v37 = vpop.permute.xlu1 %3822 }
 0x35e   : > { %v8411_v20 = vpop.f32.mrb[75].mxu0  ;;  %v4298_v11 = vsel %vm2433_vm14, %v4264_v4, %v4007_v9  ;;  %v4172_v61 = vsel %vm2433_vm14, %v4139_v58, %v3823_v37 }
 0x35f   : > { %v4218_v27 = vsel %vm2466_vm15, %v4172_v61, %v3871_v51  ;;  %v8965_v51 = vunpack.c.h.bf16 %v8963_v14 }
 0x363   : > { %v4009_v53 = vpop.permute.xlu0 %4008 }
 0x366   : > { %v3745_v62 = vpop.permute.xlu1 %3744 }
 0x367   : > { %v4043_v28 = vpop.permute.xlu0 %4042  ;;  %v4142_v18 = vsel %vm2384_vm3, %v3507_v33, %v3745_v62  ;;  %v8970_v33 = vld [vmem:[#allocation7_spill] sm:$0xff] }
 0x368   : > { %v4343_v25 = vsel %vm2466_vm15, %v4298_v11, %v4043_v28 }
 0x369   : > { %4679 = vmatprep.mubr.bf16.mxu1 %v4343_v25 }
 0x36a   : > { %4680 = vmatmul.mubr.bf16.gmra.mrb[84].mxu1 %v4215_v23  ;;  %v3825_v30 = vpop.permute.xlu1 %3824 }
 0x36b   : > { %v3961_v0 = vpop.permute.xlu0 %3960  ;;  %v4174_v10 = vsel %vm2433_vm14, %v4142_v18, %v3825_v30  ;;  %v8972_v18 = vunpack.c.h.bf16 %v8970_v33 }
 0x36c   : > { %v4267_v55 = vsel %vm2384_vm3, %v8279_v47, %v3961_v0 }
 0x36d   : > { %v4300_v13 = vsel %vm2433_vm14, %v4267_v55, %v4009_v53 }
 0x36e   : > { %v3873_v40 = vpop.permute.xlu1 %3872 }
 0x36f   : > { %v3963_v7 = vpop.permute.xlu0 %3962  ;;  %v4221_v1 = vsel %vm2466_vm15, %v4174_v10, %v3873_v40  ;;  %v8971_v40 = vunpack.c.l.bf16 %v8970_v33 }
 0x370   : > { %v4270_v36 = vsel %vm2384_vm3, %v8298_v39, %v3963_v7 }
 0x373   : > { %v8428_v35 = vpop.f32.mrb[76].mxu0  ;;  %v4045_v45 = vpop.permute.xlu0 %4044 }
 0x374   : > { %v8431_v8 = vpop.f32.mrb[77].mxu0  ;;  %v4346_v2 = vsel %vm2466_vm15, %v4300_v13, %v4045_v45 }
 0x375   : > { %v8434_v50 = vpop.f32.mrb[78].mxu0  ;;  %4687 = vmatprep.mubr.bf16.mxu1 %v4346_v2 }
 0x376   : > { %v8437_v47 = vpop.f32.mrb[79].mxu0  ;;  %4688 = vmatmul.mubr.bf16.gmra.mrb[88].mxu1 %v4218_v27 }
 0x377   : > { %v4011_v54 = vpop.permute.xlu0 %4010 }
 0x378   : > { %v4302_v63 = vsel %vm2433_vm14, %v4270_v36, %v4011_v54 }
 0x37a   : > { %v5380_v22 = vpop.f32.mrb[32].mxu1 }
 0x37b   : > { %v5381_v42 = vpop.f32.mrb[33].mxu1  ;;  %v4047_v9 = vpop.permute.xlu0 %4046 }
 0x37c   : > { %v5382_v17 = vadd.f32 %v5381_v42, %v5380_v22  ;;  %v5383_v3 = vpop.f32.mrb[34].mxu1  ;;  %v4349_v48 = vsel %vm2466_vm15, %v4302_v63, %v4047_v9 }
 0x37d   : > { %v5384_v41 = vpop.f32.mrb[35].mxu1  ;;  %4695 = vmatprep.mubr.bf16.mxu1 %v4349_v48 }
 0x37e   : > { %v4739_v39 = vadd.f32 %v5382_v17, %v8346_v49  ;;  %v5385_v38 = vadd.f32 %v5384_v41, %v5383_v3  ;;  %4696 = vmatmul.mubr.bf16.gmra.mrb[92].mxu1 %v4221_v1  ;;  %v8966_v49 = vld [vmem:[#allocation52_spill] sm:$0xff] }
 0x37f   : > { %5562 = vmatprep.mubr.msk.bf16.mxu1 %vm2384_vm3, %v8293_v26  ;;  %v4095_v26 = vsel %vm2046_vm2, %v8286_v60, %v8966_v49  ;;  %v8967_v60 = vld [vmem:[#allocation6_spill] sm:$0xff]  ;;  %v8973_v41 = vld [vmem:[#allocation8_spill] sm:$0xff] }
 0x380   : > { %v4865_v46 = vadd.f32 %v8964_v21, %v4739_v39  ;;  %v4742_v16 = vadd.f32 %v5385_v38, %v8352_v57  ;;  %v8968_v37 = vunpack.c.l.bf16 %v8967_v60  ;;  %v8969_v31 = vunpack.c.h.bf16 %v8967_v60 }
 0x381   : > { %v8974_v1 = vunpack.c.l.bf16 %v8973_v41  ;;  %v8975_v38 = vunpack.c.h.bf16 %v8973_v41 }
 0x382   : > { %4897 = vst.msk [vmem:[%s8457_s21] sm:$0xff] %vm2384_vm3, %v4865_v46  ;;  %v4866_v19 = vadd.f32 %v8965_v51, %v4742_v16 }
 0x384   : > { %4898 = vst.msk [vmem:[%s8457_s21 + $0x8] sm:$0xff] %vm2384_vm3, %v4866_v19 }
 0x386   : > { %5563 = vmatmul.mubr.msk.bf16.vlgmr.msra.gmra.mrb[96].mxu1 %vm2384_vm3, %v4095_v26 }
 0x38b   : > { %v8469_v57 = vpop.f32.mrb[80].mxu0 }
 0x38c   : > { %v8471_v5 = vpop.f32.mrb[81].mxu0 }
 0x38d   : > { %v5386_v53 = vpop.f32.mrb[36].mxu1  ;;  %v8473_v29 = vpop.f32.mrb[82].mxu0 }
 0x38e   : > { %v5387_v4 = vpop.f32.mrb[37].mxu1  ;;  %v8475_v52 = vpop.f32.mrb[83].mxu0 }
 0x38f   : > { %v5388_v44 = vadd.f32 %v5387_v4, %v5386_v53  ;;  %v5389_v28 = vpop.f32.mrb[38].mxu1 }
 0x390   : > { %v5390_v11 = vpop.f32.mrb[39].mxu1 }
 0x391   : > { %v4747_v25 = vadd.f32 %v8344_v59, %v5388_v44  ;;  %v5391_v23 = vadd.f32 %v5390_v11, %v5389_v28  ;;  %v8976_v44 = vld [vmem:[#allocation9_spill] sm:$0xff] }
 0x392   : > { %v8977_v28 = vunpack.c.l.bf16 %v8976_v44 }
 0x393   : > { %v4867_v0 = vadd.f32 %v8968_v37, %v4747_v25  ;;  %v4750_v62 = vadd.f32 %v8348_v24, %v5391_v23  ;;  %v8978_v23 = vunpack.c.h.bf16 %v8976_v44 }
 0x395   : > { %4899 = vst.msk [vmem:[%s8457_s21 + $0x10] sm:$0xff] %vm2384_vm3, %v4867_v0  ;;  %v4868_v7 = vadd.f32 %v8969_v31, %v4750_v62 }
 0x397   : > { %4900 = vst.msk [vmem:[%s8457_s21 + $0x18] sm:$0xff] %vm2384_vm3, %v4868_v7 }
 0x3a1   : > { %v5392_v55 = vpop.f32.mrb[40].mxu1 }
 0x3a2   : > { %v5393_v58 = vpop.f32.mrb[41].mxu1 }
 0x3a3   : > { %v5394_v61 = vadd.f32 %v5393_v58, %v5392_v55  ;;  %v5395_v45 = vpop.f32.mrb[42].mxu1  ;;  %v8487_v59 = vpop.f32.mrb[84].mxu0  ;;  %v8979_v58 = vld [vmem:[#allocation15_spill] sm:$0xff] }
 0x3a4   : > { %v5396_v13 = vpop.f32.mrb[43].mxu1  ;;  %v8489_v30 = vpop.f32.mrb[85].mxu0 }
 0x3a5   : > { %v4755_v24 = vadd.f32 %v5394_v61, %v8386_v32  ;;  %v5397_v2 = vadd.f32 %v5396_v13, %v5395_v45  ;;  %v8492_v27 = vpop.f32.mrb[86].mxu0  ;;  %v8980_v61 = vunpack.c.l.bf16 %v8979_v58  ;;  %v8981_v13 = vunpack.c.h.bf16 %v8979_v58 }
 0x3a6   : > { %v8494_v54 = vpop.f32.mrb[87].mxu0 }
 0x3a7   : > { %v4869_v36 = vadd.f32 %v8971_v40, %v4755_v24  ;;  %v4758_v22 = vadd.f32 %v5397_v2, %v8391_v15 }
 0x3a9   : > { %4901 = vst.msk [vmem:[%s8457_s21 + $0x20] sm:$0xff] %vm2384_vm3, %v4869_v36  ;;  %v4870_v63 = vadd.f32 %v8972_v18, %v4758_v22 }
 0x3ab   : > { %4902 = vst.msk [vmem:[%s8457_s21 + $0x28] sm:$0xff] %vm2384_vm3, %v4870_v63  ;;  %v8982_v63 = vld [vmem:[#allocation16_spill] sm:$0xff] }
 0x3b6   : > { %v5398_v32 = vpop.f32.mrb[44].mxu1 }
 0x3b7   : > { %v5399_v42 = vpop.f32.mrb[45].mxu1 }
 0x3b8   : > { %v5400_v9 = vadd.f32 %v5399_v42, %v5398_v32  ;;  %v5401_v10 = vpop.f32.mrb[46].mxu1  ;;  %v8983_v32 = vunpack.c.l.bf16 %v8982_v63 }
 0x3b9   : > { %v5402_v17 = vpop.f32.mrb[47].mxu1 }
 0x3ba   : > { %v4763_v3 = vadd.f32 %v8383_v56, %v5400_v9  ;;  %v5403_v48 = vadd.f32 %v5402_v17, %v5401_v10  ;;  %v8984_v9 = vunpack.c.h.bf16 %v8982_v63 }
 0x3bc   : > { %v4871_v39 = vadd.f32 %v8974_v1, %v4763_v3  ;;  %v4766_v15 = vadd.f32 %v8389_v43, %v5403_v48 }
 0x3be   : > { %4903 = vst.msk [vmem:[%s8457_s21 + $0x30] sm:$0xff] %vm2384_vm3, %v4871_v39  ;;  %v4872_v14 = vadd.f32 %v8975_v38, %v4766_v15  ;;  %v8985_v15 = vld [vmem:[#allocation17_spill] sm:$0xff] }
 0x3bf   : > { %v8986_v38 = vunpack.c.l.bf16 %v8985_v15 }
 0x3c0   : > { %4904 = vst.msk [vmem:[%s8457_s21 + $0x38] sm:$0xff] %vm2384_vm3, %v4872_v14 }
 0x3c5   : > { %v5404_v21 = vpop.f32.mrb[48].mxu1 }
 0x3c6   : > { %v5405_v46 = vpop.f32.mrb[49].mxu1 }
 0x3c7   : > { %v5406_v16 = vadd.f32 %v5405_v46, %v5404_v21  ;;  %v5407_v51 = vpop.f32.mrb[50].mxu1  ;;  %v8515_v56 = vpop.f32.mrb[88].mxu0  ;;  %v8987_v21 = vunpack.c.h.bf16 %v8985_v15 }
 0x3c8   : > { %v5408_v19 = vpop.f32.mrb[51].mxu1  ;;  %v8517_v49 = vpop.f32.mrb[89].mxu0 }
 0x3c9   : > { %v4771_v43 = vadd.f32 %v5406_v16, %v8407_v6  ;;  %v5409_v26 = vadd.f32 %v5408_v19, %v5407_v51  ;;  %v8520_v53 = vpop.f32.mrb[90].mxu0 }
 0x3ca   : > { %v8522_v4 = vpop.f32.mrb[91].mxu0 }
 0x3cb   : > { %v4873_v11 = vadd.f32 %v8977_v28, %v4771_v43  ;;  %v4774_v25 = vadd.f32 %v5409_v26, %v8411_v20  ;;  %v8988_v28 = vld [vmem:[#allocation18_spill] sm:$0xff] }
 0x3cd   : > { %4905 = vst.msk [vmem:[%s8457_s21 + $0x40] sm:$0xff] %vm2384_vm3, %v4873_v11  ;;  %v4874_v60 = vadd.f32 %v8978_v23, %v4774_v25  ;;  %v8989_v11 = vunpack.c.l.bf16 %v8988_v28  ;;  %v8990_v23 = vunpack.c.h.bf16 %v8988_v28 }
 0x3cf   : > { %4906 = vst.msk [vmem:[%s8457_s21 + $0x48] sm:$0xff] %vm2384_vm3, %v4874_v60 }
 0x3d1   : > { %v5410_v6 = vpop.f32.mrb[52].mxu1 }
 0x3d2   : > { %v5411_v37 = vpop.f32.mrb[53].mxu1 }
 0x3d3   : > { %v5412_v0 = vadd.f32 %v5411_v37, %v5410_v6  ;;  %v5413_v62 = vpop.f32.mrb[54].mxu1 }
 0x3d4   : > { %v5414_v31 = vpop.f32.mrb[55].mxu1 }
 0x3d5   : > { %v4779_v7 = vadd.f32 %v8405_v34, %v5412_v0  ;;  %v5415_v55 = vadd.f32 %v5414_v31, %v5413_v62 }
 0x3d7   : > { %v4875_v45 = vadd.f32 %v8980_v61, %v4779_v7  ;;  %v4782_v20 = vadd.f32 %v8409_v12, %v5415_v55  ;;  %v8991_v55 = vld [vmem:[#allocation21_spill] sm:$0xff] }
 0x3d8   : > { %v8992_v58 = vunpack.c.l.bf16 %v8991_v55 }
 0x3d9   : > { %4907 = vst.msk [vmem:[%s8457_s21 + $0x50] sm:$0xff] %vm2384_vm3, %v4875_v45  ;;  %v4876_v24 = vadd.f32 %v8981_v13, %v4782_v20  ;;  %v8993_v45 = vunpack.c.h.bf16 %v8991_v55 }
 0x3db   : > { %4908 = vst.msk [vmem:[%s8457_s21 + $0x58] sm:$0xff] %vm2384_vm3, %v4876_v24 }
 0x3dd   : > { %v5416_v2 = vpop.f32.mrb[56].mxu1 }
 0x3de   : > { %v5417_v33 = vpop.f32.mrb[57].mxu1 }
 0x3df   : > { %v5418_v40 = vadd.f32 %v5417_v33, %v5416_v2  ;;  %v5419_v36 = vpop.f32.mrb[58].mxu1 }
 0x3e0   : > { %v5420_v34 = vpop.f32.mrb[59].mxu1 }
 0x3e1   : > { %v4787_v22 = vadd.f32 %v5418_v40, %v8431_v8  ;;  %v5421_v18 = vadd.f32 %v5420_v34, %v5419_v36  ;;  %v8994_v34 = vld [vmem:[#allocation27_spill] sm:$0xff] }
 0x3e2   : > { %v8996_v63 = vunpack.c.h.bf16 %v8994_v34 }
 0x3e3   : > { %v4877_v42 = vadd.f32 %v8983_v32, %v4787_v22  ;;  %v4790_v12 = vadd.f32 %v5421_v18, %v8437_v47  ;;  %v8995_v22 = vunpack.c.l.bf16 %v8994_v34 }
 0x3e5   : > { %4909 = vst.msk [vmem:[%s8457_s21 + $0x60] sm:$0xff] %vm2384_vm3, %v4877_v42  ;;  %v4878_v10 = vadd.f32 %v8984_v9, %v4790_v12 }
 0x3e7   : > { %4910 = vst.msk [vmem:[%s8457_s21 + $0x68] sm:$0xff] %vm2384_vm3, %v4878_v10 }
 0x3e9   : > { %v5422_v17 = vpop.f32.mrb[60].mxu1 }
 0x3ea   : > { %v5423_v3 = vpop.f32.mrb[61].mxu1 }
 0x3eb   : > { %v5424_v48 = vadd.f32 %v5423_v3, %v5422_v17  ;;  %v5425_v41 = vpop.f32.mrb[62].mxu1 }
 0x3ec   : > { %v5426_v8 = vpop.f32.mrb[63].mxu1 }
 0x3ed   : > { %v4795_v1 = vadd.f32 %v8428_v35, %v5424_v48  ;;  %v5427_v39 = vadd.f32 %v5426_v8, %v5425_v41  ;;  %v8997_v48 = vld [vmem:[#allocation30_spill] sm:$0xff] }
 0x3ee   : > { %v8998_v41 = vunpack.c.l.bf16 %v8997_v48 }
 0x3ef   : > { %v4879_v14 = vadd.f32 %v8986_v38, %v4795_v1  ;;  %v4798_v47 = vadd.f32 %v8434_v50, %v5427_v39  ;;  %v8999_v1 = vunpack.c.h.bf16 %v8997_v48 }
 0x3f1   : > { %4911 = vst.msk [vmem:[%s8457_s21 + $0x70] sm:$0xff] %vm2384_vm3, %v4879_v14  ;;  %v4880_v46 = vadd.f32 %v8987_v21, %v4798_v47 }
 0x3f3   : > { %4912 = vst.msk [vmem:[%s8457_s21 + $0x78] sm:$0xff] %vm2384_vm3, %v4880_v46 }
 0x3f5   : > { %v5428_v16 = vpop.f32.mrb[64].mxu1 }
 0x3f6   : > { %v5429_v51 = vpop.f32.mrb[65].mxu1 }
 0x3f7   : > { %v5430_v19 = vadd.f32 %v5429_v51, %v5428_v16  ;;  %v5431_v43 = vpop.f32.mrb[66].mxu1  ;;  %v9000_v16 = vld [vmem:[#allocation33_spill] sm:$0xff] }
 0x3f8   : > { %v5432_v35 = vpop.f32.mrb[67].mxu1  ;;  %v9001_v51 = vunpack.c.l.bf16 %v9000_v16 }
 0x3f9   : > { %v4803_v26 = vadd.f32 %v5430_v19, %v8471_v5  ;;  %v5433_v44 = vadd.f32 %v5432_v35, %v5431_v43  ;;  %v9002_v43 = vunpack.c.h.bf16 %v9000_v16 }
 0x3fb   : > { %v4881_v25 = vadd.f32 %v8989_v11, %v4803_v26  ;;  %v4806_v50 = vadd.f32 %v5433_v44, %v8475_v52 }
 0x3fd   : > { %4913 = vst.msk [vmem:[%s8457_s21 + $0x80] sm:$0xff] %vm2384_vm3, %v4881_v25  ;;  %v4882_v60 = vadd.f32 %v8990_v23, %v4806_v50  ;;  %v9003_v23 = vld [vmem:[#allocation38_spill] sm:$0xff] }
 0x3ff   : > { %4914 = vst.msk [vmem:[%s8457_s21 + $0x88] sm:$0xff] %vm2384_vm3, %v4882_v60  ;;  %v9004_v60 = vunpack.c.l.bf16 %v9003_v23 }
 0x401   : > { %v5434_v6 = vpop.f32.mrb[68].mxu1 }
 0x402   : > { %v5435_v37 = vpop.f32.mrb[69].mxu1 }
 0x403   : > { %v5436_v0 = vadd.f32 %v5435_v37, %v5434_v6  ;;  %v5437_v62 = vpop.f32.mrb[70].mxu1  ;;  %v9005_v37 = vunpack.c.h.bf16 %v9003_v23 }
 0x404   : > { %v5438_v5 = vpop.f32.mrb[71].mxu1 }
 0x405   : > { %v4811_v31 = vadd.f32 %v8469_v57, %v5436_v0  ;;  %v5439_v7 = vadd.f32 %v5438_v5, %v5437_v62 }
 0x407   : > { %v4883_v61 = vadd.f32 %v8992_v58, %v4811_v31  ;;  %v4814_v52 = vadd.f32 %v8473_v29, %v5439_v7 }
 0x409   : > { %4915 = vst.msk [vmem:[%s8457_s21 + $0x90] sm:$0xff] %vm2384_vm3, %v4883_v61  ;;  %v4884_v20 = vadd.f32 %v8993_v45, %v4814_v52 }
 0x40b   : > { %4916 = vst.msk [vmem:[%s8457_s21 + $0x98] sm:$0xff] %vm2384_vm3, %v4884_v20 }
 0x40d   : > { %v5440_v13 = vpop.f32.mrb[72].mxu1 }
 0x40e   : > { %v5441_v24 = vpop.f32.mrb[73].mxu1 }
 0x40f   : > { %v5442_v2 = vadd.f32 %v5441_v24, %v5440_v13  ;;  %v5443_v33 = vpop.f32.mrb[74].mxu1 }
 0x410   : > { %v5444_v57 = vpop.f32.mrb[75].mxu1 }
 0x411   : > { %v4819_v40 = vadd.f32 %v5442_v2, %v8489_v30  ;;  %v5445_v36 = vadd.f32 %v5444_v57, %v5443_v33 }
 0x413   : > { %v4885_v18 = vadd.f32 %v8995_v22, %v4819_v40  ;;  %v4822_v29 = vadd.f32 %v5445_v36, %v8494_v54  ;;  %v9006_v40 = vld [vmem:[#allocation50_spill] sm:$0xff] }
 0x414   : > { %v9007_v36 = vunpack.c.l.bf16 %v9006_v40 }
 0x415   : > { %4917 = vst.msk [vmem:[%s8457_s21 + $0xa0] sm:$0xff] %vm2384_vm3, %v4885_v18  ;;  %v4886_v32 = vadd.f32 %v8996_v63, %v4822_v29  ;;  %v9008_v29 = vld [vmem:[#allocation42_spill] sm:$0xff] }
 0x416   : > { %v9009_v63 = vunpack.c.l.bf16 %v9008_v29 }
 0x417   : > { %4918 = vst.msk [vmem:[%s8457_s21 + $0xa8] sm:$0xff] %vm2384_vm3, %v4886_v32 }
 0x419   : > { %v5446_v42 = vpop.f32.mrb[76].mxu1 }
 0x41a   : > { %v5447_v12 = vpop.f32.mrb[77].mxu1 }
 0x41b   : > { %v5448_v9 = vadd.f32 %v5447_v12, %v5446_v42  ;;  %v5449_v10 = vpop.f32.mrb[78].mxu1  ;;  %v9010_v12 = vunpack.c.h.bf16 %v9006_v40 }
 0x41c   : > { %v5450_v30 = vpop.f32.mrb[79].mxu1 }
 0x41d   : > { %v4827_v17 = vadd.f32 %v8487_v59, %v5448_v9  ;;  %v5451_v3 = vadd.f32 %v5450_v30, %v5449_v10  ;;  %v9011_v10 = vunpack.c.h.bf16 %v9008_v29 }
 0x41f   : > { %v4887_v8 = vadd.f32 %v8998_v41, %v4827_v17  ;;  %v4830_v54 = vadd.f32 %v8492_v27, %v5451_v3 }
 0x421   : > { %4919 = vst.msk [vmem:[%s8457_s21 + $0xb0] sm:$0xff] %vm2384_vm3, %v4887_v8  ;;  %v4888_v39 = vadd.f32 %v8999_v1, %v4830_v54 }
 0x423   : > { %4920 = vst.msk [vmem:[%s8457_s21 + $0xb8] sm:$0xff] %vm2384_vm3, %v4888_v39 }
 0x42e   : > { %v5452_v15 = vpop.f32.mrb[80].mxu1 }
 0x42f   : > { %v5453_v38 = vpop.f32.mrb[81].mxu1 }
 0x430   : > { %v5454_v14 = vadd.f32 %v5453_v38, %v5452_v15  ;;  %v5455_v47 = vpop.f32.mrb[82].mxu1 }
 0x431   : > { %v5456_v59 = vpop.f32.mrb[83].mxu1 }
 0x432   : > { %v4835_v21 = vadd.f32 %v5454_v14, %v8517_v49  ;;  %v5457_v46 = vadd.f32 %v5456_v59, %v5455_v47 }
 0x434   : > { %v4889_v19 = vadd.f32 %v9001_v51, %v4835_v21  ;;  %v4838_v27 = vadd.f32 %v5457_v46, %v8522_v4 }
 0x436   : > { %4921 = vst.msk [vmem:[%s8457_s21 + $0xc0] sm:$0xff] %vm2384_vm3, %v4889_v19  ;;  %v4890_v35 = vadd.f32 %v9002_v43, %v4838_v27 }
 0x438   : > { %4922 = vst.msk [vmem:[%s8457_s21 + $0xc8] sm:$0xff] %vm2384_vm3, %v4890_v35 }
 0x43d   : > { %v5458_v26 = vpop.f32.mrb[84].mxu1 }
 0x43e   : > { %v5459_v44 = vpop.f32.mrb[85].mxu1 }
 0x43f   : > { %v5460_v28 = vadd.f32 %v5459_v44, %v5458_v26  ;;  %v5461_v11 = vpop.f32.mrb[86].mxu1 }
 0x440   : > { %v5462_v49 = vpop.f32.mrb[87].mxu1 }
 0x441   : > { %v4843_v25 = vadd.f32 %v8515_v56, %v5460_v28  ;;  %v5463_v50 = vadd.f32 %v5462_v49, %v5461_v11 }
 0x443   : > { %v4891_v6 = vadd.f32 %v9004_v60, %v4843_v25  ;;  %v4846_v4 = vadd.f32 %v8520_v53, %v5463_v50 }
 0x445   : > { %4923 = vst.msk [vmem:[%s8457_s21 + $0xd0] sm:$0xff] %vm2384_vm3, %v4891_v6  ;;  %v4892_v0 = vadd.f32 %v9005_v37, %v4846_v4 }
 0x447   : > { %4924 = vst.msk [vmem:[%s8457_s21 + $0xd8] sm:$0xff] %vm2384_vm3, %v4892_v0 }
 0x449   : > { %v5464_v62 = vpop.f32.mrb[88].mxu1 }
 0x44a   : > { %v5465_v5 = vpop.f32.mrb[89].mxu1 }
 0x44b   : > { %v5466_v31 = vadd.f32 %v5465_v5, %v5464_v62  ;;  %v5467_v7 = vpop.f32.mrb[90].mxu1 }
 0x44c   : > { %v5468_v56 = vpop.f32.mrb[91].mxu1 }
 0x44d   : > { %v5469_v55 = vadd.f32 %v5468_v56, %v5467_v7 }
 0x451   : > { %v5470_v58 = vpop.f32.mrb[92].mxu1 }
 0x452   : > { %v5471_v61 = vpop.f32.mrb[93].mxu1 }
 0x453   : > { %v5472_v52 = vadd.f32 %v5471_v61, %v5470_v58  ;;  %v5473_v53 = vpop.f32.mrb[94].mxu1 }
 0x454   : > { %v5474_v45 = vpop.f32.mrb[95].mxu1 }
 0x455   : > { %v5475_v20 = vadd.f32 %v5474_v45, %v5473_v53 }
 0x459   : > { %v5564_v13 = vpop.f32.mrb[96].mxu1 }
 0x45a   : > { %v4859_v24 = vadd.f32 %v5564_v13, %v5472_v52  ;;  %v4850_v2 = vpop.f32.mrb[97].mxu1 }
 0x45b   : > { %v4851_v33 = vadd.f32 %v5466_v31, %v4850_v2  ;;  %v5565_v57 = vpop.f32.mrb[98].mxu1 }
 0x45c   : > { %v4895_v34 = vadd.f32 %v9007_v36, %v4859_v24  ;;  %v4862_v22 = vadd.f32 %v5565_v57, %v5475_v20  ;;  %v4853_v18 = vpop.f32.mrb[99].mxu1 }
 0x45d   : > { %v4893_v32 = vadd.f32 %v9009_v63, %v4851_v33  ;;  %v4854_v42 = vadd.f32 %v5469_v55, %v4853_v18 }
 0x45e   : > { %4927 = vst.msk [vmem:[%s8457_s21 + $0xf0] sm:$0xff] %vm2384_vm3, %v4895_v34  ;;  %v4896_v9 = vadd.f32 %v9010_v12, %v4862_v22 }
 0x45f   : > { %4925 = vst.msk [vmem:[%s8457_s21 + $0xe0] sm:$0xff] %vm2384_vm3, %v4893_v32  ;;  %v4894_v30 = vadd.f32 %v9011_v10, %v4854_v42 }
 0x460   : > { %4928 = vst.msk [vmem:[%s8457_s21 + $0xf8] sm:$0xff] %vm2384_vm3, %v4896_v9 }
 0x461   : > { %4926 = vst.msk [vmem:[%s8457_s21 + $0xe8] sm:$0xff] %vm2384_vm3, %v4894_v30 }
 0x462   : > { %5673 = shalt.err (!%p5670_p3)
}
 0x463   : > { %s5674_s19 = scalar_lea.hbm %s8636_s9, 4096  ;;  %s5678_s21 = scalar_lea.hbm %s8699_s8, 8192 }
 0x464   : > { %p5675_p4 = scmp.ne.s32.totalorder %s8636_s9, %s5674_s19  ;;  %p5679_p9 = scmp.lt.u32.totalorder %s8636_s9, %s8699_s8 }
 0x465   : > { %p5680_p10 = scmp.lt.u32.totalorder %s5678_s21, %s5674_s19  ;;  %p5682_p12 = scmp.lt.u32.totalorder %s5674_s19, %s8636_s9 }
 0x466   : > { %p5676_p7 = pnand %p5675_p4, %p5815_p5 }
 0x467   : > { %p5681_p11 = por %p5680_p10, %p5679_p9 }
 0x468   : > { %p5677_p8 = pneg %p5676_p7 }
 0x469   : > { %p5683_p13 = por %p5682_p12, %p5681_p11 }
 0x46b   : > { %p5684_p0 = pnand %p5683_p13, %p5677_p8 }
 0x46d   : > { %5687 = shalt.err (!%p5684_p0)
}
 0x46e   : > { %s5730_s22 = smov 128   ;;  %s5731_s25 = smov 8  }
 0x46f   : > { %5570 = dma.vmem_to_hbm [thread:$0]  (%p5815_p5), %s8638_s20, 4096, %s8636_s9, %s8650_s23, %s5730_s22, %s5730_s22, %s5731_s25  }
 0x470 PF: > { %p5576_p1 = scmp.ge.s32.totalorder %s5722_s30, 2  ;;  %s4958_s12 = sand.u32 1, %s5710_s27  }
 0x471   : > { %s4959_s24 = scalar_lea.sflag [#allocation3], %s4958_s12 }
 0x472   : > { %p5573_p2 = pnand %p5576_p1, %p5819_p6 }
 0x474   : > { %5705 = dma.done.wait (!%p5573_p2), %s4959_s24, 4096  }
 0x475   : > { %5707 = vsyncadd (!%p5573_p2), %s4959_s24, 4294963200  ;;  %p18_p3 = scmp.ge.s32.totalorder %s5802_s11, 4   ;;  %s9012_s27 = smov %s5714_s28 }
 0x476   : > { %s9013_s28 = smov %s5718_s29  ;;  %s9014_s29 = smov %s5813_s14 }
 0x477   : > { %s9015_s30 = smov %s5802_s11  ;;  %20 = sbr.rel (!%p18_p3) target bundleno = 3 (0x3), region = 88 }
 0x47e   :  { %4964 = vsyncpa [#allocation3], 1 }
 0x47f   :  { %4966 = vsyncpa [#allocation3 + $0x1], 1 }

</bundles_post_ra>
